<compile_context>
chip_gen: v6e
topology: v6e:2x2x1
jax: 0.10.0
libtpu: 0.0.40
codegen_flags: <defaults>
</compile_context>

<pallas_src>
import functools

import jax
import jax.numpy as jnp
from jax import lax
from jax.experimental import pallas as pl
from jax.experimental.pallas import tpu as pltpu


def _round_up(x: int, m: int) -> int:
    return ((x + m - 1) // m) * m


def _vmem_budget_bytes() -> int:
    """Per-generation scoped-VMEM budget with headroom below physical VMEM."""
    try:
        cap = int(pltpu.get_tpu_info().vmem_capacity_bytes)
    except Exception:  # query unavailable -> assume the smallest (v7x: 64 MiB)
        cap = 64 << 20
    # ~75% of physical: ~96 MiB on v5e/v6e (128 MiB phys), ~48 MiB on v7x.
    return min(cap * 3 // 4, 96 << 20)


# ----------------------------------------------------------------------------
# Strategy 1: full (D, D) Gram accumulator in VMEM, X read from HBM once.
# ----------------------------------------------------------------------------
def _gram_loss_kernel(x_ref, out_ref, acc_ref, *, inv_n, d_pad):
    k = pl.program_id(0)

    @pl.when(k == 0)
    def _():
        acc_ref[...] = jnp.zeros_like(acc_ref)

    # (tn, D) contracted with itself over dim 0 -> (D, D) partial Gram on the
    # MXU; the dim-0 contraction avoids an explicit transpose in the hot loop.
    acc_ref[...] += lax.dot_general(
        x_ref[...],
        x_ref[...],
        dimension_numbers=(((0,), (0,)), ((), ())),
        preferred_element_type=jnp.float32,
    )

    # Finalize once: stream the accumulator in 8-row chunks (few live vregs),
    # subtract the identity on the diagonal, square, reduce into (8, D).
    @pl.when(k == pl.num_programs(0) - 1)
    def _():
        rows = lax.broadcasted_iota(jnp.int32, (8, d_pad), 0)   # hoisted
        cols = lax.broadcasted_iota(jnp.int32, (8, d_pad), 1)   # hoisted

        def body(r, partial):
            off = pl.multiple_of(r * 8, 8)
            c = acc_ref[pl.ds(off, 8), :] * jnp.float32(inv_n)
            eye = jnp.where(rows + off == cols, jnp.float32(1.0), jnp.float32(0.0))
            d = c - eye
            return partial + d * d

        out_ref[...] = lax.fori_loop(
            0, d_pad // 8, body, jnp.zeros((8, d_pad), jnp.float32))


def _gram_path(x, n_orig, d_orig, *, max_tn, budget):
    n, d = x.shape  # d is a multiple of 128, n a multiple of 8 (padded upstream)
    itemsize = x.dtype.itemsize
    usable = budget - (2 << 20)

    acc_bytes = d * d * 4
    out_bytes = 8 * d * 4
    tn_cap = (usable - acc_bytes - out_bytes) // (2 * d * itemsize)  # double-buffered input
    tn = int(min(tn_cap, 4096, n, max_tn))
    tn = max(8, (tn // 8) * 8)
    n_pad = _round_up(n, tn)
    if n_pad != n:
        x = jnp.pad(x, ((0, n_pad - n), (0, 0)))  # zero rows do not change the Gram
    kt = n_pad // tn

    kernel = functools.partial(_gram_loss_kernel, inv_n=1.0 / n_orig, d_pad=d)

    partial = pl.pallas_call(
        kernel,
        out_shape=jax.ShapeDtypeStruct((8, d), jnp.float32),
        grid_spec=pltpu.PrefetchScalarGridSpec(
            num_scalar_prefetch=0,
            grid=(kt,),
            in_specs=[pl.BlockSpec((tn, d), lambda k: (k, 0))],
            out_specs=pl.BlockSpec((8, d), lambda k: (0, 0)),
            scratch_shapes=[pltpu.VMEM((d, d), jnp.float32)],
        ),
        compiler_params=pltpu.CompilerParams(
            dimension_semantics=("arbitrary",),
            vmem_limit_bytes=budget,
        ),
        cost_estimate=pl.CostEstimate(
            flops=2 * n_pad * d * d,
            bytes_accessed=n_pad * d * itemsize + 8 * d * 4,
            transcendentals=0,
        ),
    )(x)

    # Each zero-padded phantom diagonal entry contributed (0 - 1)^2 = 1.
    return jnp.sum(partial) - jnp.float32(d - d_orig)


# ----------------------------------------------------------------------------
# Strategy 2: upper-triangular (i <= j) tile pairs (large D).
# ----------------------------------------------------------------------------
def _pairs_loss_kernel(i_ref, j_ref, a_ref, b_ref, out_ref, acc_ref, *, inv_n, td):
    p = pl.program_id(0)
    k = pl.program_id(1)

    @pl.when(k == 0)
    def _():
        acc_ref[...] = jnp.zeros_like(acc_ref)

    acc_ref[...] += lax.dot_general(
        a_ref[...],
        b_ref[...],
        dimension_numbers=(((0,), (0,)), ((), ())),
        preferred_element_type=jnp.float32,
    )

    @pl.when(k == pl.num_programs(1) - 1)
    def _():
        is_diag = i_ref[p] == j_ref[p]

        def frob_partial(subtract_identity):
            # Stream acc_ref in 8-row chunks; no full (td, td) materialization.
            if subtract_identity:
                rows = lax.broadcasted_iota(jnp.int32, (8, td), 0)
                cols = lax.broadcasted_iota(jnp.int32, (8, td), 1)

            def body(r, partial):
                off = pl.multiple_of(r * 8, 8)
                c = acc_ref[pl.ds(off, 8), :] * jnp.float32(inv_n)
                if subtract_identity:
                    c = c - jnp.where(rows + off == cols,
                                      jnp.float32(1.0), jnp.float32(0.0))
                return partial + c * c

            return lax.fori_loop(0, td // 8, body,
                                 jnp.zeros((8, td), jnp.float32))

        @pl.when(is_diag)
        def _():
            out_ref[0] = frob_partial(True)

        @pl.when(jnp.logical_not(is_diag))
        def _():
            # Off-diagonal tiles stand in for their symmetric twin -> weight 2;
            # no identity / iota work on this (majority) path.
            out_ref[0] = frob_partial(False) * jnp.float32(2.0)


def _pairs_path(x, n_orig, d_orig, *, max_tn, max_td, budget):
    n, d = x.shape  # d is a multiple of 128, n a multiple of 8
    itemsize = x.dtype.itemsize
    usable = budget - (2 << 20)

    td = int(min(max_td, 512, d))
    td = max(128, (td // 128) * 128)
    d_pad = _round_up(d, td)
    if d_pad != d:
        x = jnp.pad(x, ((0, 0), (0, d_pad - d)))
        d = d_pad

    acc_bytes = td * td * 4
    tn_cap = (usable - acc_bytes) // (4 * td * itemsize)  # 2 inputs x 2 buffers
    tn = int(min(tn_cap, 4096, n, max_tn))
    tn = max(8, (tn // 8) * 8)
    n_pad = _round_up(n, tn)
    if n_pad != n:
        x = jnp.pad(x, ((0, n_pad - n), (0, 0)))
    kt = n_pad // tn
    nt = d // td

    # Upper-triangular tile pairs (i <= j): Gram symmetry halves FLOPs/traffic.
    pairs = [(i, j) for i in range(nt) for j in range(i, nt)]
    num_pairs = len(pairs)
    i_idx = jnp.asarray([pr[0] for pr in pairs], dtype=jnp.int32)
    j_idx = jnp.asarray([pr[1] for pr in pairs], dtype=jnp.int32)

    kernel = functools.partial(_pairs_loss_kernel, inv_n=1.0 / n_orig, td=td)

    partials = pl.pallas_call(
        kernel,
        out_shape=jax.ShapeDtypeStruct((num_pairs, 8, td), jnp.float32),
        grid_spec=pltpu.PrefetchScalarGridSpec(
            num_scalar_prefetch=2,
            grid=(num_pairs, kt),
            in_specs=[
                # A tile: X[k*tn:(k+1)*tn, i*td:(i+1)*td]
                pl.BlockSpec((tn, td), lambda p, k, i_r, j_r: (k, i_r[p])),
                # B tile: X[k*tn:(k+1)*tn, j*td:(j+1)*td]
                pl.BlockSpec((tn, td), lambda p, k, i_r, j_r: (k, j_r[p])),
            ],
            out_specs=pl.BlockSpec((1, 8, td), lambda p, k, i_r, j_r: (p, 0, 0)),
            scratch_shapes=[pltpu.VMEM((td, td), jnp.float32)],
        ),
        compiler_params=pltpu.CompilerParams(
            # Pair axis writes disjoint output blocks -> parallel (both
            # TensorCores on v7x); k is the accumulator reduction -> arbitrary.
            dimension_semantics=("parallel", "arbitrary"),
            vmem_limit_bytes=budget,
        ),
        cost_estimate=pl.CostEstimate(
            flops=2 * n_pad * td * td * num_pairs,
            bytes_accessed=num_pairs * kt * 2 * tn * td * itemsize
            + num_pairs * 8 * td * 4,
            transcendentals=0,
        ),
    )(i_idx, j_idx, x, x)

    return jnp.sum(partials) - jnp.float32(d - d_orig)


# ----------------------------------------------------------------------------
# Public wrapper.
# ----------------------------------------------------------------------------
def compressive_sensing_loss(batch: jax.Array, *, strategy: str = "auto",
                             use_bf16: bool = False, max_tn: int = 4096,
                             max_td: int = 512, vmem_budget_bytes=None):
    """Pallas implementation of CompressiveSensingLoss.forward.

    batch: (N, D).  Returns a scalar float32 loss identical to the PyTorch
    reference (exact f32 path by default; `use_bf16=True` halves HBM traffic
    at a small, documented accuracy cost).
    """
    n, d = batch.shape
    x = batch.astype(jnp.bfloat16) if use_bf16 else batch.astype(jnp.float32)

    # Lane/sublane alignment padding.  Zero rows/cols do not change the Gram
    # matrix (the divisor stays the original N); each phantom diagonal entry
    # adds exactly (0 - 1)^2 = 1, subtracted again in the *_path helpers.
    d_pad = _round_up(max(d, 128), 128)
    n_pad = _round_up(max(n, 8), 8)
    if (n_pad, d_pad) != (n, d):
        x = jnp.pad(x, ((0, n_pad - n), (0, d_pad - d)))

    budget = vmem_budget_bytes or _vmem_budget_bytes()
    itemsize = x.dtype.itemsize
    gram_fits = (d_pad * d_pad * 4            # f32 accumulator
                 + 2 * 256 * d_pad * itemsize  # double-buffered (>=256, D) strip
                 + 8 * d_pad * 4               # output partial
                 ) <= budget - (2 << 20)

    if strategy == "gram" or (strategy == "auto" and gram_fits):
        return _gram_path(x, n, d, max_tn=max_tn, budget=budget)
    return _pairs_path(x, n, d, max_tn=max_tn, max_td=max_td, budget=budget)


def _reference_loss(batch: jax.Array):
    n = batch.shape[0]
    c = batch.T @ batch / n
    on_diag = jnp.sum((jnp.diagonal(c) - 1.0) ** 2)
    off = c - jnp.diag(jnp.diagonal(c))
    off_diag = jnp.sum(off ** 2)
    return on_diag + off_diag


if __name__ == "__main__":
    k0, k1 = jax.random.split(jax.random.PRNGKey(0))

    # Case 1: aligned shape, full-Gram-in-VMEM path; max_tn=256 forces kt=4 so
    # the accumulate / finalize pipeline over the k axis is exercised.
    N, D = 1024, 512
    batch = jax.random.normal(k0, (N, D), dtype=jnp.float32) * 0.05
    ref = jax.block_until_ready(_reference_loss(batch))

    loss_gram = jax.block_until_ready(
        compressive_sensing_loss(batch, strategy="gram", max_tn=256))
    assert jnp.allclose(loss_gram, ref, rtol=1e-4, atol=1e-4), (loss_gram, ref)

    # Case 2: forced tiled-pairs path (td=256 -> 3 tile pairs: exercises both
    # the diagonal and off-diagonal epilogue branches and the x2 symmetry).
    loss_pairs = jax.block_until_ready(
        compressive_sensing_loss(batch, strategy="pairs", max_tn=512, max_td=256))
    assert jnp.allclose(loss_pairs, ref, rtol=1e-4, atol=1e-4), (loss_pairs, ref)

    # Case 3: unaligned shape -> zero padding + phantom-diagonal correction.
    N2, D2 = 1000, 320
    batch2 = jax.random.normal(k1, (N2, D2), dtype=jnp.float32) * 0.1
    ref2 = jax.block_until_ready(_reference_loss(batch2))
    loss2 = jax.block_until_ready(compressive_sensing_loss(batch2))
    assert jnp.allclose(loss2, ref2, rtol=1e-4, atol=1e-4), (loss2, ref2)

    # Case 4: opt-in bf16 inputs (half the HBM bytes; f32 MXU accumulation).
    loss_bf16 = jax.block_until_ready(
        compressive_sensing_loss(batch, use_bf16=True))
    assert jnp.allclose(loss_bf16, ref, rtol=1e-2, atol=1e-2), (loss_bf16, ref)

    print("KERNEL_OK")
</pallas_src>

<mosaic_0001>
module attributes {stable_mosaic.version = 11 : i64} {
  func.func @_gram_loss_kernel(%arg0: i32, %arg1: memref<256x512xf32, #tpu.memory_space<vmem>>, %arg2: memref<8x512xf32, #tpu.memory_space<vmem>>, %arg3: memref<512x512xf32, #tpu.memory_space<vmem>>) attributes {dimension_semantics = [#tpu.dimension_semantics<arbitrary>], iteration_bounds = array<i64: 4>, scalar_prefetch = 0 : i64, scratch_operands = 1 : i64, tpu.core_type = #tpu.core_type<tc>, window_params = [{transform_indices = @transform_0, window_bounds = array<i64: 256, 512>}, {pipeline_mode = #tpu.pipeline_mode<synchronous>, transform_indices = @transform_1, window_bounds = array<i64: 8, 512>}]} {
    %c0_i32 = arith.constant 0 : i32
    %0 = arith.cmpi eq, %arg0, %c0_i32 : i32
    %1 = arith.extui %0 : i1 to i32
    %c0_i32_0 = arith.constant 0 : i32
    %2 = arith.cmpi ne, %1, %c0_i32_0 : i32
    scf.if %2 {
      %cst_9 = arith.constant 0.000000e+00 : f32
      %12 = vector.broadcast %cst_9 : f32 to vector<512x512xf32>
      %c0_10 = arith.constant 0 : index
      %c0_11 = arith.constant 0 : index
      %13 = vector.load %arg3[%c0_10, %c0_11] : memref<512x512xf32, #tpu.memory_space<vmem>>, vector<512x512xf32>
      tpu.vector_store %arg3[%c0_10, %c0_11], %12 {strides = array<i32>} : memref<512x512xf32, #tpu.memory_space<vmem>>, vector<512x512xf32>,
    } else {
    }
    %c0 = arith.constant 0 : index
    %c0_1 = arith.constant 0 : index
    %3 = vector.load %arg3[%c0, %c0_1] : memref<512x512xf32, #tpu.memory_space<vmem>>, vector<512x512xf32>
    %c0_2 = arith.constant 0 : index
    %c0_3 = arith.constant 0 : index
    %4 = vector.load %arg1[%c0_2, %c0_3] : memref<256x512xf32, #tpu.memory_space<vmem>>, vector<256x512xf32>
    %c0_4 = arith.constant 0 : index
    %c0_5 = arith.constant 0 : index
    %5 = vector.load %arg1[%c0_4, %c0_5] : memref<256x512xf32, #tpu.memory_space<vmem>>, vector<256x512xf32>
    %cst = arith.constant dense<0.000000e+00> : vector<512x512xf32>
    %6 = tpu.matmul %4, %5, %cst {dimension_numbers = #tpu.dot_dimension_numbers<[0], [0], [1], [1], [0, 1, 1, 1], [], []>} : vector<256x512xf32>, vector<256x512xf32>, vector<512x512xf32> -> vector<512x512xf32>
    %7 = arith.addf %3, %6 : vector<512x512xf32>
    %c0_6 = arith.constant 0 : index
    %c0_7 = arith.constant 0 : index
    %8 = vector.load %arg3[%c0_6, %c0_7] : memref<512x512xf32, #tpu.memory_space<vmem>>, vector<512x512xf32>
    tpu.vector_store %arg3[%c0_6, %c0_7], %7 {strides = array<i32>} : memref<512x512xf32, #tpu.memory_space<vmem>>, vector<512x512xf32>,
    %c3_i32 = arith.constant 3 : i32
    %9 = arith.cmpi eq, %arg0, %c3_i32 : i32
    %10 = arith.extui %9 : i1 to i32
    %c0_i32_8 = arith.constant 0 : i32
    %11 = arith.cmpi ne, %10, %c0_i32_8 : i32
    scf.if %11 {
      %12 = tpu.iota {dimensions = array<i32: 0>} : vector<8x512xi32>
      %13 = tpu.iota {dimensions = array<i32: 1>} : vector<8x512xi32>
      %cst_9 = arith.constant 0.000000e+00 : f32
      %14 = vector.broadcast %cst_9 : f32 to vector<8x512xf32>
      %c0_i32_10 = arith.constant 0 : i32
      %c64_i32 = arith.constant 64 : i32
      %15 = arith.addi %c0_i32_10, %c64_i32 : i32
      %c1_i32 = arith.constant 1 : i32
      %16 = scf.for %arg4 = %c0_i32_10 to %15 step %c1_i32 iter_args(%arg5 = %14) -> (vector<8x512xf32>)  : i32 {
        %c8_i32 = arith.constant 8 : i32
        %18 = arith.muli %arg4, %c8_i32 : i32
        %19 = tpu.assume_multiple %18, 8 : i32
        %20 = arith.index_cast %19 : i32 to index
        %c0_14 = arith.constant 0 : index
        %21 = vector.load %arg3[%20, %c0_14] : memref<512x512xf32, #tpu.memory_space<vmem>>, vector<8x512xf32>
        %cst_15 = arith.constant 9.765625E-4 : f32
        %22 = vector.broadcast %cst_15 : f32 to vector<8x512xf32>
        %23 = arith.mulf %21, %22 : vector<8x512xf32>
        %24 = vector.broadcast %19 : i32 to vector<8x512xi32>
        %25 = arith.addi %12, %24 : vector<8x512xi32>
        %26 = arith.cmpi eq, %25, %13 : vector<8x512xi32>
        %cst_16 = arith.constant 1.000000e+00 : f32
        %cst_17 = arith.constant 0.000000e+00 : f32
        %27 = vector.broadcast %cst_16 : f32 to vector<8x512xf32>
        %28 = vector.broadcast %cst_17 : f32 to vector<8x512xf32>
        %29 = arith.select %26, %27, %28 : vector<8x512xi1>, vector<8x512xf32>
        %30 = arith.subf %23, %29 : vector<8x512xf32>
        %31 = arith.mulf %30, %30 : vector<8x512xf32>
        %32 = arith.addf %arg5, %31 : vector<8x512xf32>
        scf.yield %32 : vector<8x512xf32>
      }
      %c64_i32_11 = arith.constant 64 : i32
      %c0_12 = arith.constant 0 : index
      %c0_13 = arith.constant 0 : index
      %17 = vector.load %arg2[%c0_12, %c0_13] : memref<8x512xf32, #tpu.memory_space<vmem>>, vector<8x512xf32>
      tpu.vector_store %arg2[%c0_12, %c0_13], %16 {strides = array<i32>} : memref<8x512xf32, #tpu.memory_space<vmem>>, vector<8x512xf32>,
    } else {
    }
    return
  }
  func.func @transform_0(%arg0: i32) -> (i32, i32) {
    %c0_i32 = arith.constant 0 : i32
    %c0_i32_0 = arith.constant 0 : i32
    return %arg0, %c0_i32 : i32, i32
  }
  func.func @transform_1(%arg0: i32) -> (i32, i32) {
    %c0_i32 = arith.constant 0 : i32
    %c0_i32_0 = arith.constant 0 : i32
    %c0_i32_1 = arith.constant 0 : i32
    return %c0_i32, %c0_i32_0 : i32, i32
  }
}

</mosaic_0001>

<bundles_post_ra>
// kernel: tpu_custom_call.1
= control target key start
LH: loop header
LB: loop body
LE: loop exit
PB: predicated region body
PF: predicated region fallthrough
CT: control target
= control target key end

     0   :  { %6 = vsyncpa [#allocation4], 0  ;;  %s4425_s0 = inlined_call_operand.hbm [shape: f32[1024,512], index: 0, kind: input, shape index: {}]   ;;  %s4426_s1 = inlined_call_operand.hbm [shape: f32[8,512], index: 1, kind: output, shape index: {}]  }
   0x1   :  { %8 = vsyncpa [#allocation4 + $0x1], 0 }
   0x2   :  { %9 = vsyncpa [#allocation5], 0  ;;  %s3279_s6 = smov 0   ;;  %s3281_s7 = smov 0  }
   0x3   :  { %s3283_s8 = smov 0   ;;  %s3285_s9 = smov 0  }
   0x4 LB: > { %s3298_s10 = sadd.s32 4294967295, %s3241_s9   ;;  %s3301_s11 = sadd.s32 1, %s3241_s9   ;;  %s3241_s9 = sphi %s3285_s9, %s4512_s9   ;;  %s3237_s8 = sphi %s3283_s8, %s4511_s8   ;;  %s3233_s7 = sphi %s3281_s7, %s4510_s7   ;;  %s3229_s6 = sphi %s3279_s6, %s4509_s6  }
   0x5   : > { %s19_s12 = ssub.s32 %s3241_s9, %s3301_s11  ;;  %s22_s13 = sadd.s32 1, %s3237_s8 }
   0x6   : > { %p20_p0 = scmp.eq.s32.totalorder %s19_s12, 0  ;;  %p29_p1 = scmp.ne.s32.totalorder %s3237_s8, %s3233_s7 }
   0x7   : > { %p30_p2 = scmp.eq.s32.totalorder %s3241_s9, 0  ;;  %p35_p3 = scmp.ne.s32.totalorder %s3233_s7, %s3229_s6 }
   0x8   : > { %s3311_s14 = scalar_select %p20_p0, %s3237_s8, %s22_s13  }
   0x9   : > { %p31_p4 = por %p30_p2, %p29_p1  ;;  %p36_p5 = scmp.eq.s32.totalorder %s3298_s10, 0 }
   0xa   : > { %p2603_p6 = scmp.lt.s32.totalorder %s3241_s9, 4  ;;  %s80_s16 = sand.u32 1, %s3237_s8  }
   0xb   : > { %p3315_p7 = por %p36_p5, %p35_p3  ;;  %s2575_s17 = sshll.u32 %s80_s16, 10 }
   0xc   : > { %s2591_s18 = sshll.u32 %s3241_s9, 14  ;;  %s84_s22 = scalar_lea.vmem [#allocation3], %s2575_s17 }
   0xd   : > { %s4450_s15 = scalar_select %p3315_p7, 1, 0 }
   0xe   : > { %s3324_s21 = scalar_lea.hbm %s4425_s0, %s2591_s18  ;;  %s92_s23 = sshll.u32 %s84_s22, 4  ;;  %s3326_s23 = int_to_ptr.vmem [resolvable:$true] %s92_s23 }
   0xf   : > { %p3328_p8 = pnand %p2603_p6, %p31_p4  ;;  %s3333_s25 = scalar_lea.sflag [#allocation4], %s80_s16 }
  0x10   : > { %s3131_s26 = scalar_lea.hbm %s3324_s21, 16384  ;;  %s3136_s29 = scalar_lea.hbm %s4425_s0, 65536 }
  0x11   : > { %p3132_p10 = scmp.ne.s32.totalorder %s3324_s21, %s3131_s26  ;;  %p3133_p11 = pneg %p3328_p8 }
  0x12   : > { %p3137_p0 = scmp.lt.s32.totalorder %s3324_s21, %s4425_s0  ;;  %p3138_p1 = scmp.lt.s32.totalorder %s3136_s29, %s3131_s26 }
  0x13   : > { %p3134_p12 = pnand %p3133_p11, %p3132_p10 }
  0x14   : > { %p3139_p2 = por %p3138_p1, %p3137_p0 }
  0x15   : > { %p3135_p13 = pneg %p3134_p12 }
  0x17   : > { %p3140_p3 = pnand %p3139_p2, %p3135_p13 }
  0x19   : > { %3143 = shalt.err (!%p3140_p3)
}
  0x1a   : > { %s3144_s3 = scalar_lea.vmem %s3326_s23, 16384  ;;  %s3263_s4 = smov [#allocation3]  }
  0x1b   : > { %p3145_p4 = scmp.ne.s32.totalorder %s3326_s23, %s3144_s3  ;;  %s3149_s5 = sshll.u32 %s3263_s4, 4  ;;  %s3150_s5 = int_to_ptr.vmem [resolvable:$false] %s3149_s5 }
  0x1c   : > { %s3151_s6 = scalar_lea.vmem %s3150_s5, 32768  ;;  %p3152_p10 = scmp.lt.s32.totalorder %s3326_s23, %s3150_s5 }
  0x1d   : > { %p3147_p5 = pnand %p3145_p4, %p3133_p11  ;;  %p3153_p12 = scmp.lt.s32.totalorder %s3151_s6, %s3144_s3 }
  0x1f   : > { %p3148_p6 = pneg %p3147_p5  ;;  %p3154_p9 = por %p3153_p12, %p3152_p10 }
  0x21   : > { %p3155_p7 = pnand %p3154_p9, %p3148_p6 }
  0x23   : > { %3158 = shalt.err (!%p3155_p7)
}
  0x24   : > { %s3264_s12 = smov 512   ;;  %s3265_s13 = smov 32  }
  0x25   : > { %2602 = dma.hbm_to_vmem [thread:$0]  (!%p3328_p8), %s3324_s21, 16384, %s3326_s23, %s3333_s25, %s3264_s12, %s3264_s12, %s3265_s13  }
  0x26   : > { %p100_p11 = scmp.lt.s32.totalorder %s3241_s9, 5  ;;  %p4452_p13 = scmp.ge.s32.totalorder %s3241_s9, 1 }
  0x28   : > { %p101_p0 = pnand %p4452_p13, %p100_p11 }
  0x2a   : > { %104 = sbr.rel (%p101_p0) target bundleno = 804 (0x324), region = 24 }
  0x2f   : > { %s106_s16 = sand.u32 1, %s3233_s7   ;;  %p4453_p7 = scmp.ne.s32.totalorder %s4450_s15, 0 }
  0x30   : > { %s2580_s17 = sshll.u32 %s106_s16, 10  ;;  %s107_s18 = scalar_lea.sflag [#allocation4], %s106_s16 }
  0x31   : > { %s3358_s19 = scalar_lea.vmem [#allocation3], %s2580_s17 }
  0x32   : > { %3220 = dma.done.wait (%p4453_p7), %s107_s18, 16384  }
  0x33   : > { %3222 = vsyncadd (%p4453_p7), %s107_s18, 4294950912  ;;  %p2581_p9 = scmp.ne.s32.totalorder %s3298_s10, 0 }
  0x35   : > { %128 = sbr.rel (%p2581_p9) target bundleno = 187 (0xbb), region = 32 }
  0x3a   : > { %v3266_v0 = vmov 0.0  }
  0x3b   : > { %129 = vst [vmem:[#allocation2] sm:$0xff] %v3266_v0  ;;  %130 = vst [vmem:[#allocation2 + $0x8] sm:$0xff] %v3266_v0 }
  0x3c   : > { %131 = vst [vmem:[#allocation2 + $0x10] sm:$0xff] %v3266_v0  ;;  %132 = vst [vmem:[#allocation2 + $0x18] sm:$0xff] %v3266_v0 }
  0x3d   : > { %133 = vst [vmem:[#allocation2 + $0x20] sm:$0xff] %v3266_v0  ;;  %134 = vst [vmem:[#allocation2 + $0x28] sm:$0xff] %v3266_v0 }
  0x3e   : > { %135 = vst [vmem:[#allocation2 + $0x30] sm:$0xff] %v3266_v0  ;;  %136 = vst [vmem:[#allocation2 + $0x38] sm:$0xff] %v3266_v0 }
  0x3f   : > { %137 = vst [vmem:[#allocation2 + $0x40] sm:$0xff] %v3266_v0  ;;  %138 = vst [vmem:[#allocation2 + $0x48] sm:$0xff] %v3266_v0 }
  0x40   : > { %139 = vst [vmem:[#allocation2 + $0x50] sm:$0xff] %v3266_v0  ;;  %140 = vst [vmem:[#allocation2 + $0x58] sm:$0xff] %v3266_v0 }
  0x41   : > { %141 = vst [vmem:[#allocation2 + $0x60] sm:$0xff] %v3266_v0  ;;  %142 = vst [vmem:[#allocation2 + $0x68] sm:$0xff] %v3266_v0 }
  0x42   : > { %143 = vst [vmem:[#allocation2 + $0x70] sm:$0xff] %v3266_v0  ;;  %144 = vst [vmem:[#allocation2 + $0x78] sm:$0xff] %v3266_v0 }
  0x43   : > { %145 = vst [vmem:[#allocation2 + $0x80] sm:$0xff] %v3266_v0  ;;  %146 = vst [vmem:[#allocation2 + $0x88] sm:$0xff] %v3266_v0 }
  0x44   : > { %147 = vst [vmem:[#allocation2 + $0x90] sm:$0xff] %v3266_v0  ;;  %148 = vst [vmem:[#allocation2 + $0x98] sm:$0xff] %v3266_v0 }
  0x45   : > { %149 = vst [vmem:[#allocation2 + $0xa0] sm:$0xff] %v3266_v0  ;;  %150 = vst [vmem:[#allocation2 + $0xa8] sm:$0xff] %v3266_v0 }
  0x46   : > { %151 = vst [vmem:[#allocation2 + $0xb0] sm:$0xff] %v3266_v0  ;;  %152 = vst [vmem:[#allocation2 + $0xb8] sm:$0xff] %v3266_v0 }
  0x47   : > { %153 = vst [vmem:[#allocation2 + $0xc0] sm:$0xff] %v3266_v0  ;;  %154 = vst [vmem:[#allocation2 + $0xc8] sm:$0xff] %v3266_v0 }
  0x48   : > { %155 = vst [vmem:[#allocation2 + $0xd0] sm:$0xff] %v3266_v0  ;;  %156 = vst [vmem:[#allocation2 + $0xd8] sm:$0xff] %v3266_v0 }
  0x49   : > { %157 = vst [vmem:[#allocation2 + $0xe0] sm:$0xff] %v3266_v0  ;;  %158 = vst [vmem:[#allocation2 + $0xe8] sm:$0xff] %v3266_v0 }
  0x4a   : > { %159 = vst [vmem:[#allocation2 + $0xf0] sm:$0xff] %v3266_v0  ;;  %160 = vst [vmem:[#allocation2 + $0xf8] sm:$0xff] %v3266_v0 }
  0x4b   : > { %161 = vst [vmem:[#allocation2 + $0x100] sm:$0xff] %v3266_v0  ;;  %162 = vst [vmem:[#allocation2 + $0x108] sm:$0xff] %v3266_v0 }
  0x4c   : > { %163 = vst [vmem:[#allocation2 + $0x110] sm:$0xff] %v3266_v0  ;;  %164 = vst [vmem:[#allocation2 + $0x118] sm:$0xff] %v3266_v0 }
  0x4d   : > { %165 = vst [vmem:[#allocation2 + $0x120] sm:$0xff] %v3266_v0  ;;  %166 = vst [vmem:[#allocation2 + $0x128] sm:$0xff] %v3266_v0 }
  0x4e   : > { %167 = vst [vmem:[#allocation2 + $0x130] sm:$0xff] %v3266_v0  ;;  %168 = vst [vmem:[#allocation2 + $0x138] sm:$0xff] %v3266_v0 }
  0x4f   : > { %169 = vst [vmem:[#allocation2 + $0x140] sm:$0xff] %v3266_v0  ;;  %170 = vst [vmem:[#allocation2 + $0x148] sm:$0xff] %v3266_v0 }
  0x50   : > { %171 = vst [vmem:[#allocation2 + $0x150] sm:$0xff] %v3266_v0  ;;  %172 = vst [vmem:[#allocation2 + $0x158] sm:$0xff] %v3266_v0 }
  0x51   : > { %173 = vst [vmem:[#allocation2 + $0x160] sm:$0xff] %v3266_v0  ;;  %174 = vst [vmem:[#allocation2 + $0x168] sm:$0xff] %v3266_v0 }
  0x52   : > { %175 = vst [vmem:[#allocation2 + $0x170] sm:$0xff] %v3266_v0  ;;  %176 = vst [vmem:[#allocation2 + $0x178] sm:$0xff] %v3266_v0 }
  0x53   : > { %177 = vst [vmem:[#allocation2 + $0x180] sm:$0xff] %v3266_v0  ;;  %178 = vst [vmem:[#allocation2 + $0x188] sm:$0xff] %v3266_v0 }
  0x54   : > { %179 = vst [vmem:[#allocation2 + $0x190] sm:$0xff] %v3266_v0  ;;  %180 = vst [vmem:[#allocation2 + $0x198] sm:$0xff] %v3266_v0 }
  0x55   : > { %181 = vst [vmem:[#allocation2 + $0x1a0] sm:$0xff] %v3266_v0  ;;  %182 = vst [vmem:[#allocation2 + $0x1a8] sm:$0xff] %v3266_v0 }
  0x56   : > { %183 = vst [vmem:[#allocation2 + $0x1b0] sm:$0xff] %v3266_v0  ;;  %184 = vst [vmem:[#allocation2 + $0x1b8] sm:$0xff] %v3266_v0 }
  0x57   : > { %185 = vst [vmem:[#allocation2 + $0x1c0] sm:$0xff] %v3266_v0  ;;  %186 = vst [vmem:[#allocation2 + $0x1c8] sm:$0xff] %v3266_v0 }
  0x58   : > { %187 = vst [vmem:[#allocation2 + $0x1d0] sm:$0xff] %v3266_v0  ;;  %188 = vst [vmem:[#allocation2 + $0x1d8] sm:$0xff] %v3266_v0 }
  0x59   : > { %189 = vst [vmem:[#allocation2 + $0x1e0] sm:$0xff] %v3266_v0  ;;  %190 = vst [vmem:[#allocation2 + $0x1e8] sm:$0xff] %v3266_v0 }
  0x5a   : > { %191 = vst [vmem:[#allocation2 + $0x1f0] sm:$0xff] %v3266_v0  ;;  %192 = vst [vmem:[#allocation2 + $0x1f8] sm:$0xff] %v3266_v0 }
  0x5b   : > { %193 = vst [vmem:[#allocation2 + $0x200] sm:$0xff] %v3266_v0  ;;  %194 = vst [vmem:[#allocation2 + $0x208] sm:$0xff] %v3266_v0 }
  0x5c   : > { %195 = vst [vmem:[#allocation2 + $0x210] sm:$0xff] %v3266_v0  ;;  %196 = vst [vmem:[#allocation2 + $0x218] sm:$0xff] %v3266_v0 }
  0x5d   : > { %197 = vst [vmem:[#allocation2 + $0x220] sm:$0xff] %v3266_v0  ;;  %198 = vst [vmem:[#allocation2 + $0x228] sm:$0xff] %v3266_v0 }
  0x5e   : > { %199 = vst [vmem:[#allocation2 + $0x230] sm:$0xff] %v3266_v0  ;;  %200 = vst [vmem:[#allocation2 + $0x238] sm:$0xff] %v3266_v0 }
  0x5f   : > { %201 = vst [vmem:[#allocation2 + $0x240] sm:$0xff] %v3266_v0  ;;  %202 = vst [vmem:[#allocation2 + $0x248] sm:$0xff] %v3266_v0 }
  0x60   : > { %203 = vst [vmem:[#allocation2 + $0x250] sm:$0xff] %v3266_v0  ;;  %204 = vst [vmem:[#allocation2 + $0x258] sm:$0xff] %v3266_v0 }
  0x61   : > { %205 = vst [vmem:[#allocation2 + $0x260] sm:$0xff] %v3266_v0  ;;  %206 = vst [vmem:[#allocation2 + $0x268] sm:$0xff] %v3266_v0 }
  0x62   : > { %207 = vst [vmem:[#allocation2 + $0x270] sm:$0xff] %v3266_v0  ;;  %208 = vst [vmem:[#allocation2 + $0x278] sm:$0xff] %v3266_v0 }
  0x63   : > { %209 = vst [vmem:[#allocation2 + $0x280] sm:$0xff] %v3266_v0  ;;  %210 = vst [vmem:[#allocation2 + $0x288] sm:$0xff] %v3266_v0 }
  0x64   : > { %211 = vst [vmem:[#allocation2 + $0x290] sm:$0xff] %v3266_v0  ;;  %212 = vst [vmem:[#allocation2 + $0x298] sm:$0xff] %v3266_v0 }
  0x65   : > { %213 = vst [vmem:[#allocation2 + $0x2a0] sm:$0xff] %v3266_v0  ;;  %214 = vst [vmem:[#allocation2 + $0x2a8] sm:$0xff] %v3266_v0 }
  0x66   : > { %215 = vst [vmem:[#allocation2 + $0x2b0] sm:$0xff] %v3266_v0  ;;  %216 = vst [vmem:[#allocation2 + $0x2b8] sm:$0xff] %v3266_v0 }
  0x67   : > { %217 = vst [vmem:[#allocation2 + $0x2c0] sm:$0xff] %v3266_v0  ;;  %218 = vst [vmem:[#allocation2 + $0x2c8] sm:$0xff] %v3266_v0 }
  0x68   : > { %219 = vst [vmem:[#allocation2 + $0x2d0] sm:$0xff] %v3266_v0  ;;  %220 = vst [vmem:[#allocation2 + $0x2d8] sm:$0xff] %v3266_v0 }
  0x69   : > { %221 = vst [vmem:[#allocation2 + $0x2e0] sm:$0xff] %v3266_v0  ;;  %222 = vst [vmem:[#allocation2 + $0x2e8] sm:$0xff] %v3266_v0 }
  0x6a   : > { %223 = vst [vmem:[#allocation2 + $0x2f0] sm:$0xff] %v3266_v0  ;;  %224 = vst [vmem:[#allocation2 + $0x2f8] sm:$0xff] %v3266_v0 }
  0x6b   : > { %225 = vst [vmem:[#allocation2 + $0x300] sm:$0xff] %v3266_v0  ;;  %226 = vst [vmem:[#allocation2 + $0x308] sm:$0xff] %v3266_v0 }
  0x6c   : > { %227 = vst [vmem:[#allocation2 + $0x310] sm:$0xff] %v3266_v0  ;;  %228 = vst [vmem:[#allocation2 + $0x318] sm:$0xff] %v3266_v0 }
  0x6d   : > { %229 = vst [vmem:[#allocation2 + $0x320] sm:$0xff] %v3266_v0  ;;  %230 = vst [vmem:[#allocation2 + $0x328] sm:$0xff] %v3266_v0 }
  0x6e   : > { %231 = vst [vmem:[#allocation2 + $0x330] sm:$0xff] %v3266_v0  ;;  %232 = vst [vmem:[#allocation2 + $0x338] sm:$0xff] %v3266_v0 }
  0x6f   : > { %233 = vst [vmem:[#allocation2 + $0x340] sm:$0xff] %v3266_v0  ;;  %234 = vst [vmem:[#allocation2 + $0x348] sm:$0xff] %v3266_v0 }
  0x70   : > { %235 = vst [vmem:[#allocation2 + $0x350] sm:$0xff] %v3266_v0  ;;  %236 = vst [vmem:[#allocation2 + $0x358] sm:$0xff] %v3266_v0 }
  0x71   : > { %237 = vst [vmem:[#allocation2 + $0x360] sm:$0xff] %v3266_v0  ;;  %238 = vst [vmem:[#allocation2 + $0x368] sm:$0xff] %v3266_v0 }
  0x72   : > { %239 = vst [vmem:[#allocation2 + $0x370] sm:$0xff] %v3266_v0  ;;  %240 = vst [vmem:[#allocation2 + $0x378] sm:$0xff] %v3266_v0 }
  0x73   : > { %241 = vst [vmem:[#allocation2 + $0x380] sm:$0xff] %v3266_v0  ;;  %242 = vst [vmem:[#allocation2 + $0x388] sm:$0xff] %v3266_v0 }
  0x74   : > { %243 = vst [vmem:[#allocation2 + $0x390] sm:$0xff] %v3266_v0  ;;  %244 = vst [vmem:[#allocation2 + $0x398] sm:$0xff] %v3266_v0 }
  0x75   : > { %245 = vst [vmem:[#allocation2 + $0x3a0] sm:$0xff] %v3266_v0  ;;  %246 = vst [vmem:[#allocation2 + $0x3a8] sm:$0xff] %v3266_v0 }
  0x76   : > { %247 = vst [vmem:[#allocation2 + $0x3b0] sm:$0xff] %v3266_v0  ;;  %248 = vst [vmem:[#allocation2 + $0x3b8] sm:$0xff] %v3266_v0 }
  0x77   : > { %249 = vst [vmem:[#allocation2 + $0x3c0] sm:$0xff] %v3266_v0  ;;  %250 = vst [vmem:[#allocation2 + $0x3c8] sm:$0xff] %v3266_v0 }
  0x78   : > { %251 = vst [vmem:[#allocation2 + $0x3d0] sm:$0xff] %v3266_v0  ;;  %252 = vst [vmem:[#allocation2 + $0x3d8] sm:$0xff] %v3266_v0 }
  0x79   : > { %253 = vst [vmem:[#allocation2 + $0x3e0] sm:$0xff] %v3266_v0  ;;  %254 = vst [vmem:[#allocation2 + $0x3e8] sm:$0xff] %v3266_v0 }
  0x7a   : > { %255 = vst [vmem:[#allocation2 + $0x3f0] sm:$0xff] %v3266_v0  ;;  %256 = vst [vmem:[#allocation2 + $0x3f8] sm:$0xff] %v3266_v0 }
  0x7b   : > { %257 = vst [vmem:[#allocation2 + $0x400] sm:$0xff] %v3266_v0  ;;  %258 = vst [vmem:[#allocation2 + $0x408] sm:$0xff] %v3266_v0 }
  0x7c   : > { %259 = vst [vmem:[#allocation2 + $0x410] sm:$0xff] %v3266_v0  ;;  %260 = vst [vmem:[#allocation2 + $0x418] sm:$0xff] %v3266_v0 }
  0x7d   : > { %261 = vst [vmem:[#allocation2 + $0x420] sm:$0xff] %v3266_v0  ;;  %262 = vst [vmem:[#allocation2 + $0x428] sm:$0xff] %v3266_v0 }
  0x7e   : > { %263 = vst [vmem:[#allocation2 + $0x430] sm:$0xff] %v3266_v0  ;;  %264 = vst [vmem:[#allocation2 + $0x438] sm:$0xff] %v3266_v0 }
  0x7f   : > { %265 = vst [vmem:[#allocation2 + $0x440] sm:$0xff] %v3266_v0  ;;  %266 = vst [vmem:[#allocation2 + $0x448] sm:$0xff] %v3266_v0 }
  0x80   : > { %267 = vst [vmem:[#allocation2 + $0x450] sm:$0xff] %v3266_v0  ;;  %268 = vst [vmem:[#allocation2 + $0x458] sm:$0xff] %v3266_v0 }
  0x81   : > { %269 = vst [vmem:[#allocation2 + $0x460] sm:$0xff] %v3266_v0  ;;  %270 = vst [vmem:[#allocation2 + $0x468] sm:$0xff] %v3266_v0 }
  0x82   : > { %271 = vst [vmem:[#allocation2 + $0x470] sm:$0xff] %v3266_v0  ;;  %272 = vst [vmem:[#allocation2 + $0x478] sm:$0xff] %v3266_v0 }
  0x83   : > { %273 = vst [vmem:[#allocation2 + $0x480] sm:$0xff] %v3266_v0  ;;  %274 = vst [vmem:[#allocation2 + $0x488] sm:$0xff] %v3266_v0 }
  0x84   : > { %275 = vst [vmem:[#allocation2 + $0x490] sm:$0xff] %v3266_v0  ;;  %276 = vst [vmem:[#allocation2 + $0x498] sm:$0xff] %v3266_v0 }
  0x85   : > { %277 = vst [vmem:[#allocation2 + $0x4a0] sm:$0xff] %v3266_v0  ;;  %278 = vst [vmem:[#allocation2 + $0x4a8] sm:$0xff] %v3266_v0 }
  0x86   : > { %279 = vst [vmem:[#allocation2 + $0x4b0] sm:$0xff] %v3266_v0  ;;  %280 = vst [vmem:[#allocation2 + $0x4b8] sm:$0xff] %v3266_v0 }
  0x87   : > { %281 = vst [vmem:[#allocation2 + $0x4c0] sm:$0xff] %v3266_v0  ;;  %282 = vst [vmem:[#allocation2 + $0x4c8] sm:$0xff] %v3266_v0 }
  0x88   : > { %283 = vst [vmem:[#allocation2 + $0x4d0] sm:$0xff] %v3266_v0  ;;  %284 = vst [vmem:[#allocation2 + $0x4d8] sm:$0xff] %v3266_v0 }
  0x89   : > { %285 = vst [vmem:[#allocation2 + $0x4e0] sm:$0xff] %v3266_v0  ;;  %286 = vst [vmem:[#allocation2 + $0x4e8] sm:$0xff] %v3266_v0 }
  0x8a   : > { %287 = vst [vmem:[#allocation2 + $0x4f0] sm:$0xff] %v3266_v0  ;;  %288 = vst [vmem:[#allocation2 + $0x4f8] sm:$0xff] %v3266_v0 }
  0x8b   : > { %289 = vst [vmem:[#allocation2 + $0x500] sm:$0xff] %v3266_v0  ;;  %290 = vst [vmem:[#allocation2 + $0x508] sm:$0xff] %v3266_v0 }
  0x8c   : > { %291 = vst [vmem:[#allocation2 + $0x510] sm:$0xff] %v3266_v0  ;;  %292 = vst [vmem:[#allocation2 + $0x518] sm:$0xff] %v3266_v0 }
  0x8d   : > { %293 = vst [vmem:[#allocation2 + $0x520] sm:$0xff] %v3266_v0  ;;  %294 = vst [vmem:[#allocation2 + $0x528] sm:$0xff] %v3266_v0 }
  0x8e   : > { %295 = vst [vmem:[#allocation2 + $0x530] sm:$0xff] %v3266_v0  ;;  %296 = vst [vmem:[#allocation2 + $0x538] sm:$0xff] %v3266_v0 }
  0x8f   : > { %297 = vst [vmem:[#allocation2 + $0x540] sm:$0xff] %v3266_v0  ;;  %298 = vst [vmem:[#allocation2 + $0x548] sm:$0xff] %v3266_v0 }
  0x90   : > { %299 = vst [vmem:[#allocation2 + $0x550] sm:$0xff] %v3266_v0  ;;  %300 = vst [vmem:[#allocation2 + $0x558] sm:$0xff] %v3266_v0 }
  0x91   : > { %301 = vst [vmem:[#allocation2 + $0x560] sm:$0xff] %v3266_v0  ;;  %302 = vst [vmem:[#allocation2 + $0x568] sm:$0xff] %v3266_v0 }
  0x92   : > { %303 = vst [vmem:[#allocation2 + $0x570] sm:$0xff] %v3266_v0  ;;  %304 = vst [vmem:[#allocation2 + $0x578] sm:$0xff] %v3266_v0 }
  0x93   : > { %305 = vst [vmem:[#allocation2 + $0x580] sm:$0xff] %v3266_v0  ;;  %306 = vst [vmem:[#allocation2 + $0x588] sm:$0xff] %v3266_v0 }
  0x94   : > { %307 = vst [vmem:[#allocation2 + $0x590] sm:$0xff] %v3266_v0  ;;  %308 = vst [vmem:[#allocation2 + $0x598] sm:$0xff] %v3266_v0 }
  0x95   : > { %309 = vst [vmem:[#allocation2 + $0x5a0] sm:$0xff] %v3266_v0  ;;  %310 = vst [vmem:[#allocation2 + $0x5a8] sm:$0xff] %v3266_v0 }
  0x96   : > { %311 = vst [vmem:[#allocation2 + $0x5b0] sm:$0xff] %v3266_v0  ;;  %312 = vst [vmem:[#allocation2 + $0x5b8] sm:$0xff] %v3266_v0 }
  0x97   : > { %313 = vst [vmem:[#allocation2 + $0x5c0] sm:$0xff] %v3266_v0  ;;  %314 = vst [vmem:[#allocation2 + $0x5c8] sm:$0xff] %v3266_v0 }
  0x98   : > { %315 = vst [vmem:[#allocation2 + $0x5d0] sm:$0xff] %v3266_v0  ;;  %316 = vst [vmem:[#allocation2 + $0x5d8] sm:$0xff] %v3266_v0 }
  0x99   : > { %317 = vst [vmem:[#allocation2 + $0x5e0] sm:$0xff] %v3266_v0  ;;  %318 = vst [vmem:[#allocation2 + $0x5e8] sm:$0xff] %v3266_v0 }
  0x9a   : > { %319 = vst [vmem:[#allocation2 + $0x5f0] sm:$0xff] %v3266_v0  ;;  %320 = vst [vmem:[#allocation2 + $0x5f8] sm:$0xff] %v3266_v0 }
  0x9b   : > { %321 = vst [vmem:[#allocation2 + $0x600] sm:$0xff] %v3266_v0  ;;  %322 = vst [vmem:[#allocation2 + $0x608] sm:$0xff] %v3266_v0 }
  0x9c   : > { %323 = vst [vmem:[#allocation2 + $0x610] sm:$0xff] %v3266_v0  ;;  %324 = vst [vmem:[#allocation2 + $0x618] sm:$0xff] %v3266_v0 }
  0x9d   : > { %325 = vst [vmem:[#allocation2 + $0x620] sm:$0xff] %v3266_v0  ;;  %326 = vst [vmem:[#allocation2 + $0x628] sm:$0xff] %v3266_v0 }
  0x9e   : > { %327 = vst [vmem:[#allocation2 + $0x630] sm:$0xff] %v3266_v0  ;;  %328 = vst [vmem:[#allocation2 + $0x638] sm:$0xff] %v3266_v0 }
  0x9f   : > { %329 = vst [vmem:[#allocation2 + $0x640] sm:$0xff] %v3266_v0  ;;  %330 = vst [vmem:[#allocation2 + $0x648] sm:$0xff] %v3266_v0 }
  0xa0   : > { %331 = vst [vmem:[#allocation2 + $0x650] sm:$0xff] %v3266_v0  ;;  %332 = vst [vmem:[#allocation2 + $0x658] sm:$0xff] %v3266_v0 }
  0xa1   : > { %333 = vst [vmem:[#allocation2 + $0x660] sm:$0xff] %v3266_v0  ;;  %334 = vst [vmem:[#allocation2 + $0x668] sm:$0xff] %v3266_v0 }
  0xa2   : > { %335 = vst [vmem:[#allocation2 + $0x670] sm:$0xff] %v3266_v0  ;;  %336 = vst [vmem:[#allocation2 + $0x678] sm:$0xff] %v3266_v0 }
  0xa3   : > { %337 = vst [vmem:[#allocation2 + $0x680] sm:$0xff] %v3266_v0  ;;  %338 = vst [vmem:[#allocation2 + $0x688] sm:$0xff] %v3266_v0 }
  0xa4   : > { %339 = vst [vmem:[#allocation2 + $0x690] sm:$0xff] %v3266_v0  ;;  %340 = vst [vmem:[#allocation2 + $0x698] sm:$0xff] %v3266_v0 }
  0xa5   : > { %341 = vst [vmem:[#allocation2 + $0x6a0] sm:$0xff] %v3266_v0  ;;  %342 = vst [vmem:[#allocation2 + $0x6a8] sm:$0xff] %v3266_v0 }
  0xa6   : > { %343 = vst [vmem:[#allocation2 + $0x6b0] sm:$0xff] %v3266_v0  ;;  %344 = vst [vmem:[#allocation2 + $0x6b8] sm:$0xff] %v3266_v0 }
  0xa7   : > { %345 = vst [vmem:[#allocation2 + $0x6c0] sm:$0xff] %v3266_v0  ;;  %346 = vst [vmem:[#allocation2 + $0x6c8] sm:$0xff] %v3266_v0 }
  0xa8   : > { %347 = vst [vmem:[#allocation2 + $0x6d0] sm:$0xff] %v3266_v0  ;;  %348 = vst [vmem:[#allocation2 + $0x6d8] sm:$0xff] %v3266_v0 }
  0xa9   : > { %349 = vst [vmem:[#allocation2 + $0x6e0] sm:$0xff] %v3266_v0  ;;  %350 = vst [vmem:[#allocation2 + $0x6e8] sm:$0xff] %v3266_v0 }
  0xaa   : > { %351 = vst [vmem:[#allocation2 + $0x6f0] sm:$0xff] %v3266_v0  ;;  %352 = vst [vmem:[#allocation2 + $0x6f8] sm:$0xff] %v3266_v0 }
  0xab   : > { %353 = vst [vmem:[#allocation2 + $0x700] sm:$0xff] %v3266_v0  ;;  %354 = vst [vmem:[#allocation2 + $0x708] sm:$0xff] %v3266_v0 }
  0xac   : > { %355 = vst [vmem:[#allocation2 + $0x710] sm:$0xff] %v3266_v0  ;;  %356 = vst [vmem:[#allocation2 + $0x718] sm:$0xff] %v3266_v0 }
  0xad   : > { %357 = vst [vmem:[#allocation2 + $0x720] sm:$0xff] %v3266_v0  ;;  %358 = vst [vmem:[#allocation2 + $0x728] sm:$0xff] %v3266_v0 }
  0xae   : > { %359 = vst [vmem:[#allocation2 + $0x730] sm:$0xff] %v3266_v0  ;;  %360 = vst [vmem:[#allocation2 + $0x738] sm:$0xff] %v3266_v0 }
  0xaf   : > { %361 = vst [vmem:[#allocation2 + $0x740] sm:$0xff] %v3266_v0  ;;  %362 = vst [vmem:[#allocation2 + $0x748] sm:$0xff] %v3266_v0 }
  0xb0   : > { %363 = vst [vmem:[#allocation2 + $0x750] sm:$0xff] %v3266_v0  ;;  %364 = vst [vmem:[#allocation2 + $0x758] sm:$0xff] %v3266_v0 }
  0xb1   : > { %365 = vst [vmem:[#allocation2 + $0x760] sm:$0xff] %v3266_v0  ;;  %366 = vst [vmem:[#allocation2 + $0x768] sm:$0xff] %v3266_v0 }
  0xb2   : > { %367 = vst [vmem:[#allocation2 + $0x770] sm:$0xff] %v3266_v0  ;;  %368 = vst [vmem:[#allocation2 + $0x778] sm:$0xff] %v3266_v0 }
  0xb3   : > { %369 = vst [vmem:[#allocation2 + $0x780] sm:$0xff] %v3266_v0  ;;  %370 = vst [vmem:[#allocation2 + $0x788] sm:$0xff] %v3266_v0 }
  0xb4   : > { %371 = vst [vmem:[#allocation2 + $0x790] sm:$0xff] %v3266_v0  ;;  %372 = vst [vmem:[#allocation2 + $0x798] sm:$0xff] %v3266_v0 }
  0xb5   : > { %373 = vst [vmem:[#allocation2 + $0x7a0] sm:$0xff] %v3266_v0  ;;  %374 = vst [vmem:[#allocation2 + $0x7a8] sm:$0xff] %v3266_v0 }
  0xb6   : > { %375 = vst [vmem:[#allocation2 + $0x7b0] sm:$0xff] %v3266_v0  ;;  %376 = vst [vmem:[#allocation2 + $0x7b8] sm:$0xff] %v3266_v0 }
  0xb7   : > { %377 = vst [vmem:[#allocation2 + $0x7c0] sm:$0xff] %v3266_v0  ;;  %378 = vst [vmem:[#allocation2 + $0x7c8] sm:$0xff] %v3266_v0 }
  0xb8   : > { %379 = vst [vmem:[#allocation2 + $0x7d0] sm:$0xff] %v3266_v0  ;;  %380 = vst [vmem:[#allocation2 + $0x7d8] sm:$0xff] %v3266_v0 }
  0xb9   : > { %381 = vst [vmem:[#allocation2 + $0x7e0] sm:$0xff] %v3266_v0  ;;  %382 = vst [vmem:[#allocation2 + $0x7e8] sm:$0xff] %v3266_v0 }
  0xba   : > { %383 = vst [vmem:[#allocation2 + $0x7f0] sm:$0xff] %v3266_v0  ;;  %384 = vst [vmem:[#allocation2 + $0x7f8] sm:$0xff] %v3266_v0 }
  0xbb PF: > { %v3622_v1 = vld [vmem:[%s3358_s19] sm:$0xff]  ;;  %v3661_v15 = vld [vmem:[%s3358_s19 + $0x1e8] sm:$0xff]  ;;  %v3667_v17 = vld [vmem:[%s3358_s19 + $0x1f8] sm:$0xff]  ;;  %p2582_p8 = scmp.ne.s32.totalorder %s3298_s10, 3 }
  0xbc   : > { %v3625_v2 = vld [vmem:[%s3358_s19 + $0x200] sm:$0xff]  ;;  %1025 = vmatprep.subr.mxu0 %v3661_v15  ;;  %4458 = vst [vmem:[#allocation13_spill] sm:$0xff] %v3667_v17  ;;  %v3670_v18 = vld [vmem:[%s3358_s19 + $0x3f8] sm:$0xff]  ;;  %v3673_v19 = vld [vmem:[%s3358_s19 + $0x8] sm:$0xff]  ;;  %1474 = vmatprep.subr.mxu1 %v3667_v17  ;;  %s4391_s9 = smov (!%p2582_p8), 0  }
  0xbd   : > { %4454 = vst [vmem:[#allocation9_spill] sm:$0xff] %v3625_v2  ;;  %v3628_v3 = vld [vmem:[%s3358_s19 + $0x20] sm:$0xff]  ;;  %v2683_v4 = vpack.i.bf16 %v3622_v1, %v3625_v2  ;;  %4459 = vst [vmem:[#allocation14_spill] sm:$0xff] %v3670_v18  ;;  %v3679_v21 = vld [vmem:[%s3358_s19 + $0x208] sm:$0xff] }
  0xbe   : > { %v3633_v5 = vld [vmem:[%s3358_s19 + $0x220] sm:$0xff]  ;;  %4460 = vst [vmem:[#allocation15_spill] sm:$0xff] %v3679_v21  ;;  %v3683_v22 = vld [vmem:[%s3358_s19 + $0x1f0] sm:$0xff]  ;;  %v2795_v24 = vpack.i.bf16 %v3673_v19, %v3679_v21  ;;  %v3694_v26 = vld [vmem:[%s3358_s19 + $0x1c8] sm:$0xff] }
  0xbf   : > { %4455 = vst [vmem:[#allocation10_spill] sm:$0xff] %v3633_v5  ;;  %2684 = vxpose.xlu0.b32.start [1/16] %v2683_v4, 128  ;;  %v2685_v6 = vpack.i.bf16 %v3628_v3, %v3633_v5  ;;  %v3638_v7 = vld [vmem:[%s3358_s19 + $0x40] sm:$0xff]  ;;  %4461 = vst [vmem:[#allocation16_spill] sm:$0xff] %v3683_v22  ;;  %v3686_v23 = vld [vmem:[%s3358_s19 + $0x3f0] sm:$0xff]  ;;  %1475 = vmatpush1.msra.mxu1 %v3683_v22 }
  0xc0   : > { %v3641_v8 = vld [vmem:[%s3358_s19 + $0x240] sm:$0xff]  ;;  %v3697_v27 = vld [vmem:[%s3358_s19 + $0x1d8] sm:$0xff]  ;;  %v3700_v28 = vld [vmem:[%s3358_s19 + $0x1d0] sm:$0xff]  ;;  %2796 = vxpose.xlu1.b32.start [1/16] %v2795_v24, 128 }
  0xc1   : > { %4456 = vst [vmem:[#allocation11_spill] sm:$0xff] %v3641_v8  ;;  %v2687_v9 = vpack.i.bf16 %v3638_v7, %v3641_v8  ;;  %v3646_v10 = vld [vmem:[%s3358_s19 + $0x60] sm:$0xff]  ;;  %4462 = vst [vmem:[#allocation17_spill] sm:$0xff] %v3697_v27  ;;  %1476 = vmatprep.subr.mxu1 %v3697_v27  ;;  %v3708_v30 = vld [vmem:[%s3358_s19 + $0x1a8] sm:$0xff] }
  0xc2   : > { %v3649_v11 = vld [vmem:[%s3358_s19 + $0x260] sm:$0xff]  ;;  %4463 = vst [vmem:[#allocation18_spill] sm:$0xff] %v3700_v28  ;;  %v3711_v31 = vld [vmem:[%s3358_s19 + $0x1b8] sm:$0xff]  ;;  %v3714_v32 = vld [vmem:[%s3358_s19 + $0x28] sm:$0xff]  ;;  %1477 = vmatpush1.msra.mxu1 %v3700_v28 }
  0xc3   : > { %2686 = vxpose.xlu0.b32.cont [2/16] %v2685_v6, 128  ;;  %4457 = vst [vmem:[#allocation12_spill] sm:$0xff] %v3649_v11  ;;  %v3652_v12 = vld [vmem:[%s3358_s19 + $0x80] sm:$0xff]  ;;  %v2689_v16 = vpack.i.bf16 %v3646_v10, %v3649_v11  ;;  %4464 = vst [vmem:[#allocation19_spill] sm:$0xff] %v3711_v31  ;;  %v3722_v35 = vld [vmem:[%s3358_s19 + $0x228] sm:$0xff]  ;;  %1478 = vmatprep.subr.mxu1 %v3711_v31 }
  0xc4   : > { %v3655_v13 = vld [vmem:[%s3358_s19 + $0x280] sm:$0xff]  ;;  %4465 = vst [vmem:[#allocation20_spill] sm:$0xff] %v3722_v35  ;;  %v3725_v36 = vld [vmem:[%s3358_s19 + $0x1b0] sm:$0xff]  ;;  %v2797_v39 = vpack.i.bf16 %v3714_v32, %v3722_v35  ;;  %v3738_v40 = vld [vmem:[%s3358_s19 + $0x188] sm:$0xff] }
  0xc5   : > { %v3658_v14 = vld [vmem:[%s3358_s19 + $0x1e0] sm:$0xff]  ;;  %v2691_v33 = vpack.i.bf16 %v3652_v12, %v3655_v13  ;;  %4466 = vst [vmem:[#allocation21_spill] sm:$0xff] %v3725_v36  ;;  %v3743_v41 = vld [vmem:[%s3358_s19 + $0x198] sm:$0xff]  ;;  %v3746_v42 = vld [vmem:[%s3358_s19 + $0x48] sm:$0xff]  ;;  %1479 = vmatpush1.msra.mxu1 %v3725_v36 }
  0xc6   : > { %1026 = vmatpush1.msra.mxu0 %v3658_v14  ;;  %v3703_v29 = vld [vmem:[%s3358_s19 + $0xa0] sm:$0xff]  ;;  %4467 = vst [vmem:[#allocation22_spill] sm:$0xff] %v3743_v41  ;;  %v3749_v43 = vld [vmem:[%s3358_s19 + $0x248] sm:$0xff]  ;;  %v3754_v44 = vld [vmem:[%s3358_s19 + $0x190] sm:$0xff]  ;;  %2798 = vxpose.xlu1.b32.cont [2/16] %v2797_v39, 128 }
  0xc7   : > { %2688 = vxpose.xlu0.b32.cont [3/16] %v2687_v9, 128  ;;  %1027 = vmatprep.subr.mxu0 %v3694_v26  ;;  %v3719_v34 = vld [vmem:[%s3358_s19 + $0x1c0] sm:$0xff]  ;;  %4468 = vst [vmem:[#allocation23_spill] sm:$0xff] %v3749_v43  ;;  %4469 = vst [vmem:[#allocation24_spill] sm:$0xff] %v3754_v44  ;;  %v3759_v46 = vld [vmem:[%s3358_s19 + $0x168] sm:$0xff]  ;;  %v2799_v48 = vpack.i.bf16 %v3746_v42, %v3749_v43 }
  0xc8   : > { %v3728_v37 = vld [vmem:[%s3358_s19 + $0x2a0] sm:$0xff]  ;;  %1028 = vmatpush1.msra.mxu0 %v3719_v34  ;;  %v3762_v47 = vld [vmem:[%s3358_s19 + $0x178] sm:$0xff]  ;;  %1480 = vmatprep.subr.mxu1 %v3743_v41  ;;  %v3780_v52 = vld [vmem:[%s3358_s19 + $0x170] sm:$0xff] }
  0xc9   : > { %v3731_v38 = vld [vmem:[%s3358_s19 + $0x1a0] sm:$0xff]  ;;  %1029 = vmatprep.subr.mxu0 %v3708_v30  ;;  %v2693_v45 = vpack.i.bf16 %v3703_v29, %v3728_v37  ;;  %1481 = vmatpush1.msra.mxu1 %v3754_v44  ;;  %v3783_v53 = vld [vmem:[%s3358_s19 + $0x68] sm:$0xff]  ;;  %v3794_v56 = vld [vmem:[%s3358_s19 + $0x158] sm:$0xff] }
  0xca   : > { %1030 = vmatpush1.msra.mxu0 %v3731_v38  ;;  %v3767_v49 = vld [vmem:[%s3358_s19 + $0xc0] sm:$0xff]  ;;  %v3786_v54 = vld [vmem:[%s3358_s19 + $0x268] sm:$0xff]  ;;  %1482 = vmatprep.subr.mxu1 %v3762_v47  ;;  %v3802_v59 = vld [vmem:[%s3358_s19 + $0x150] sm:$0xff] }
  0xcb   : > { %2690 = vxpose.xlu0.b32.cont [4/16] %v2689_v16, 128  ;;  %v3770_v50 = vld [vmem:[%s3358_s19 + $0x2c0] sm:$0xff]  ;;  %1031 = vmatprep.subr.mxu0 %v3738_v40  ;;  %v3791_v55 = vld [vmem:[%s3358_s19 + $0x148] sm:$0xff]  ;;  %4470 = vst [vmem:[#allocation25_spill] sm:$0xff] %v3802_v59  ;;  %v2801_v63 = vpack.i.bf16 %v3783_v53, %v3786_v54  ;;  %v3821_v4 = vld [vmem:[%s3358_s19 + $0x138] sm:$0xff] }
  0xcc   : > { %v3773_v51 = vld [vmem:[%s3358_s19 + $0x180] sm:$0xff]  ;;  %v2695_v57 = vpack.i.bf16 %v3767_v49, %v3770_v50  ;;  %2800 = vxpose.xlu1.b32.cont [3/16] %v2799_v48, 128  ;;  %1483 = vmatpush1.msra.mxu1 %v3780_v52  ;;  %v3811_v62 = vld [vmem:[%s3358_s19 + $0x128] sm:$0xff]  ;;  %4471 = vst [vmem:[#allocation26_spill] sm:$0xff] %v3821_v4  ;;  %v3826_v6 = vld [vmem:[%s3358_s19 + $0x130] sm:$0xff] }
  0xcd   : > { %1032 = vmatpush1.msra.mxu0 %v3773_v51  ;;  %v3799_v58 = vld [vmem:[%s3358_s19 + $0x160] sm:$0xff]  ;;  %1484 = vmatprep.subr.mxu1 %v3794_v56  ;;  %4472 = vst [vmem:[#allocation27_spill] sm:$0xff] %v3826_v6  ;;  %v3829_v9 = vld [vmem:[%s3358_s19 + $0x88] sm:$0xff]  ;;  %v3840_v39 = vld [vmem:[%s3358_s19 + $0x118] sm:$0xff] }
  0xce   : > { %1033 = vmatprep.subr.mxu0 %v3759_v46  ;;  %v669_v60 = vld [vmem:[%s3358_s19 + $0xe0] sm:$0xff]  ;;  %1485 = vmatpush1.msra.mxu1 %v3802_v59  ;;  %v3832_v16 = vld [vmem:[%s3358_s19 + $0x288] sm:$0xff]  ;;  %4473 = vst [vmem:[#allocation28_spill] sm:$0xff] %v3840_v39  ;;  %v3856_v17 = vld [vmem:[%s3358_s19 + $0xf8] sm:$0xff] }
  0xcf   : > { %2692 = vxpose.xlu0.b32.cont [5/16] %v2691_v33, 128  ;;  %v3806_v61 = vld [vmem:[%s3358_s19 + $0x2e0] sm:$0xff]  ;;  %1034 = vmatpush1.msra.mxu0 %v3799_v58  ;;  %v3837_v33 = vld [vmem:[%s3358_s19 + $0x108] sm:$0xff]  ;;  %4475 = vst [vmem:[#allocation30_spill] sm:$0xff] %v3856_v17  ;;  %v2803_v22 = vpack.i.bf16 %v3829_v9, %v3832_v16  ;;  %v3871_v2 = vld [vmem:[%s3358_s19 + $0x3d8] sm:$0xff] }
  0xd0   : > { %v3816_v0 = vld [vmem:[%s3358_s19 + $0x140] sm:$0xff]  ;;  %1035 = vmatprep.subr.mxu0 %v3791_v55  ;;  %v2697_v24 = vpack.i.bf16 %v669_v60, %v3806_v61  ;;  %1486 = vmatprep.subr.mxu1 %v3821_v4  ;;  %v3853_v25 = vld [vmem:[%s3358_s19 + $0xe8] sm:$0xff]  ;;  %v3874_v21 = vld [vmem:[%s3358_s19 + $0x3d0] sm:$0xff] }
  0xd1   : > { %1036 = vmatpush1.msra.mxu0 %v3816_v0  ;;  %v3844_v48 = vld [vmem:[%s3358_s19 + $0x300] sm:$0xff]  ;;  %2802 = vxpose.xlu1.b32.cont [4/16] %v2801_v63, 128  ;;  %v3863_v63 = vld [vmem:[%s3358_s19 + $0xf0] sm:$0xff]  ;;  %v662_v59 = vld [vmem:[%s3358_s19 + $0xa8] sm:$0xff] }
  0xd2   : > { %1037 = vmatprep.subr.mxu0 %v3811_v62  ;;  %v677_v20 = vld [vmem:[%s3358_s19 + $0x120] sm:$0xff]  ;;  %1487 = vmatpush1.msra.mxu1 %v3826_v6  ;;  %v3867_v4 = vld [vmem:[%s3358_s19 + $0x2a8] sm:$0xff]  ;;  %v3877_v5 = vld [vmem:[%s3358_s19 + $0x3b8] sm:$0xff] }
  0xd3   : > { %2694 = vxpose.xlu0.b32.cont [6/16] %v2693_v45, 128  ;;  %v673_v45 = vld [vmem:[%s3358_s19 + $0x100] sm:$0xff]  ;;  %1038 = vmatpush1.msra.mxu0 %v677_v20  ;;  %v3892_v43 = vld [vmem:[%s3358_s19 + $0x3b0] sm:$0xff]  ;;  %v3901_v35 = vld [vmem:[%s3358_s19 + $0x398] sm:$0xff]  ;;  %v2805_v27 = vpack.i.bf16 %v662_v59, %v3867_v4 }
  0xd4   : > { %1039 = vmatprep.subr.mxu0 %v3837_v33  ;;  %1488 = vmatprep.subr.mxu1 %v3840_v39  ;;  %v2699_v6 = vpack.i.bf16 %v673_v45, %v3844_v48  ;;  %v3880_v39 = vld [vmem:[%s3358_s19 + $0x320] sm:$0xff]  ;;  %v3908_v8 = vld [vmem:[%s3358_s19 + $0xd0] sm:$0xff]  ;;  %v3916_v11 = vld [vmem:[%s3358_s19 + $0x378] sm:$0xff] }
  0xd5   : > { %1040 = vmatpush1.msra.mxu0 %v673_v45  ;;  %2804 = vxpose.xlu1.b32.cont [5/16] %v2803_v22, 128  ;;  %v3904_v45 = vld [vmem:[%s3358_s19 + $0x390] sm:$0xff]  ;;  %v2701_v31 = vpack.i.bf16 %v677_v20, %v3880_v39  ;;  %v3928_v22 = vld [vmem:[%s3358_s19 + $0x358] sm:$0xff]  ;;  %v3931_v28 = vld [vmem:[%s3358_s19 + $0x340] sm:$0xff] }
  0xd6   : > { %1041 = vmatprep.subr.mxu0 %v3853_v25  ;;  %v3941_v36 = vld [vmem:[%s3358_s19 + $0xb0] sm:$0xff]  ;;  %v3944_v41 = vld [vmem:[%s3358_s19 + $0x2c8] sm:$0xff]  ;;  %v2703_v20 = vpack.i.bf16 %v3816_v0, %v3931_v28  ;;  %v757_v44 = vld [vmem:[%s3358_s19 + $0x3a0] sm:$0xff] }
  0xd7   : > { %2696 = vxpose.xlu0.b32.cont [7/16] %v2695_v57, 128  ;;  %v3850_v57 = vld [vmem:[%s3358_s19 + $0x110] sm:$0xff]  ;;  %1042 = vmatpush1.msra.mxu0 %v669_v60  ;;  %v3920_v60 = vld [vmem:[%s3358_s19 + $0xb8] sm:$0xff]  ;;  %v3973_v0 = vld [vmem:[%s3358_s19 + $0x2e8] sm:$0xff] }
  0xd8   : > { %4474 = vst [vmem:[#allocation29_spill] sm:$0xff] %v3850_v57  ;;  %1489 = vmatpush1.msra.mxu1 %v3850_v57  ;;  %v3896_v57 = vld [vmem:[%s3358_s19 + $0xd8] sm:$0xff] }
  0xd9   : > { %1490 = vmatprep.subr.mxu1 %v3856_v17  ;;  %v3925_v17 = vld [vmem:[%s3358_s19 + $0x370] sm:$0xff]  ;;  %2806 = vxpose.xlu1.b32.cont [6/16] %v2805_v27, 128  ;;  %v3962_v27 = vld [vmem:[%s3358_s19 + $0x78] sm:$0xff] }
  0xda   : > { %1491 = vmatpush1.msra.mxu1 %v3863_v63 }
  0xdb   : > { %2698 = vxpose.xlu0.b32.cont [8/16] %v2697_v24, 128  ;;  %v666_v24 = vld [vmem:[%s3358_s19 + $0xc8] sm:$0xff]  ;;  %1492 = vmatprep.subr.mxu1 %v3896_v57 }
  0xdc   : > { %1043 = vmatprep.subr.mxu0 %v666_v24  ;;  %1493 = vmatpush1.msra.mxu1 %v3908_v8 }
  0xdd   : > { %1044 = vmatpush1.msra.mxu0 %v3767_v49  ;;  %1494 = vmatprep.subr.mxu1 %v3920_v60  ;;  %v3948_v49 = vld [vmem:[%s3358_s19 + $0x98] sm:$0xff] }
  0xde   : > { %1045 = vmatprep.subr.mxu0 %v662_v59  ;;  %v3957_v59 = vld [vmem:[%s3358_s19 + $0x360] sm:$0xff]  ;;  %1495 = vmatpush1.msra.mxu1 %v3941_v36 }
  0xdf   : > { %2700 = vxpose.xlu0.b32.cont [9/16] %v2699_v6, 128  ;;  %1046 = vmatpush1.msra.mxu0 %v3703_v29  ;;  %v3954_v6 = vld [vmem:[%s3358_s19 + $0x90] sm:$0xff] }
  0xe0   : > { %1047 = vmatprep.subr.mxu0 %v3829_v9  ;;  %1496 = vmatprep.subr.mxu1 %v3948_v49  ;;  %v3970_v29 = vld [vmem:[%s3358_s19 + $0x70] sm:$0xff]  ;;  %v2705_v9 = vpack.i.bf16 %v3799_v58, %v3957_v59  ;;  %v2809_v58 = vpack.i.bf16 %v3853_v25, %v3973_v0  ;;  %v4007_v25 = vld [vmem:[%s3358_s19 + $0x18] sm:$0xff] }
  0xe1   : > { %1048 = vmatpush1.msra.mxu0 %v3652_v12  ;;  %1497 = vmatpush1.msra.mxu1 %v3954_v6  ;;  %v753_v12 = vld [vmem:[%s3358_s19 + $0x380] sm:$0xff] }
  0xe2   : > { %1049 = vmatprep.subr.mxu0 %v3783_v53  ;;  %1498 = vmatprep.subr.mxu1 %v3962_v27  ;;  %v3984_v53 = vld [vmem:[%s3358_s19 + $0x50] sm:$0xff] }
  0xe3   : > { %2702 = vxpose.xlu0.b32.cont [10/16] %v2701_v31, 128  ;;  %v2807_v31 = vpack.i.bf16 %v666_v24, %v3944_v41  ;;  %v3979_v24 = vld [vmem:[%s3358_s19 + $0x58] sm:$0xff]  ;;  %1050 = vmatpush1.msra.mxu0 %v3646_v10  ;;  %v2707_v10 = vpack.i.bf16 %v3773_v51, %v753_v12 }
  0xe4   : > { %1499 = vmatpush1.msra.mxu1 %v3970_v29  ;;  %1051 = vmatprep.subr.mxu0 %v3746_v42  ;;  %v4001_v42 = vld [vmem:[%s3358_s19 + $0x30] sm:$0xff] }
  0xe5   : > { %2808 = vxpose.xlu1.b32.cont [7/16] %v2807_v31, 128  ;;  %1500 = vmatprep.subr.mxu1 %v3979_v24  ;;  %v3996_v31 = vld [vmem:[%s3358_s19 + $0x308] sm:$0xff] }
  0xe6   : > { %1052 = vmatpush1.msra.mxu0 %v3638_v7  ;;  %1501 = vmatpush1.msra.mxu1 %v3984_v53  ;;  %v4011_v7 = vld [vmem:[%s3358_s19 + $0x10] sm:$0xff]  ;;  %v2811_v51 = vpack.i.bf16 %v3837_v33, %v3996_v31  ;;  %v4028_v33 = vld [vmem:[%s3358_s19 + $0x3c8] sm:$0xff] }
  0xe7   : > { %2704 = vxpose.xlu0.b32.cont [11/16] %v2703_v20, 128  ;;  %v3989_v20 = vld [vmem:[%s3358_s19 + $0x38] sm:$0xff]  ;;  %1053 = vmatprep.subr.mxu0 %v3714_v32  ;;  %v2709_v32 = vpack.i.bf16 %v3731_v38, %v757_v44 }
  0xe8   : > { %1502 = vmatprep.subr.mxu1 %v3989_v20  ;;  %1054 = vmatpush1.msra.mxu0 %v3628_v3  ;;  %v761_v3 = vld [vmem:[%s3358_s19 + $0x3c0] sm:$0xff] }
  0xe9   : > { %2810 = vxpose.xlu1.b32.cont [8/16] %v2809_v58, 128  ;;  %1503 = vmatpush1.msra.mxu1 %v4001_v42  ;;  %v742_v58 = vld [vmem:[%s3358_s19 + $0x328] sm:$0xff] }
  0xea   : > { %1055 = vmatprep.subr.mxu0 %v3673_v19  ;;  %1504 = vmatprep.subr.mxu1 %v4007_v25  ;;  %v765_v19 = vld [vmem:[%s3358_s19 + $0x3e0] sm:$0xff]  ;;  %v2813_v38 = vpack.i.bf16 %v3811_v62, %v742_v58 }
  0xeb   : > { %2706 = vxpose.xlu0.b32.cont [12/16] %v2705_v9, 128  ;;  %v4020_v9 = vld [vmem:[%s3358_s19 + $0x3e8] sm:$0xff]  ;;  %1056 = vmatpush1.msra.mxu0 %v3622_v1  ;;  %v2713_v62 = vpack.i.bf16 %v3658_v14, %v765_v19  ;;  %v4050_v14 = vld [vmem:[%s3358_s19 + $0x350] sm:$0xff] }
  0xec   : > { %1505 = vmatpush1.msra.mxu1 %v4011_v7  ;;  %1057 = vmatprep.subr.mxu0 %v4020_v9  ;;  %v758_v1 = vld [vmem:[%s3358_s19 + $0x3a8] sm:$0xff] }
  0xed   : > { %1506 = vmatprep.subr.mxu1 %v3670_v18  ;;  %2812 = vxpose.xlu1.b32.cont [9/16] %v2811_v51, 128  ;;  %v746_v51 = vld [vmem:[%s3358_s19 + $0x348] sm:$0xff] }
  0xee   : > { %1507 = vmatpush2.msra.mxu1 %v3686_v23  ;;  %1058 = vmatpush2.msra.mxu0 %v765_v19  ;;  %v754_v18 = vld [vmem:[%s3358_s19 + $0x388] sm:$0xff] }
  0xef   : > { %2708 = vxpose.xlu0.b32.cont [13/16] %v2707_v10, 128  ;;  %v2711_v10 = vpack.i.bf16 %v3719_v34, %v761_v3  ;;  %1059 = vmatprep.subr.mxu0 %v4028_v33  ;;  %v2815_v34 = vpack.i.bf16 %v3791_v55, %v746_v51  ;;  %v4056_v55 = vld [vmem:[%s3358_s19 + $0x338] sm:$0xff]  ;;  %v2819_v19 = vpack.i.bf16 %v3738_v40, %v754_v18 }
  0xf0   : > { %1508 = vmatprep.subr.mxu1 %v3871_v2  ;;  %1060 = vmatpush2.msra.mxu0 %v761_v3  ;;  %v4065_v3 = vld [vmem:[%s3358_s19 + $0x318] sm:$0xff]  ;;  %v2821_v40 = vpack.i.bf16 %v3708_v30, %v758_v1  ;;  %v723_v30 = vld [vmem:[%s3358_s19 + $0x290] sm:$0xff] }
  0xf1   : > { %1509 = vmatpush2.msra.mxu1 %v3874_v21  ;;  %2814 = vxpose.xlu1.b32.cont [10/16] %v2813_v38, 128  ;;  %v4477_v38 = vld [vmem:[#allocation23_spill] sm:$0xff] }
  0xf2   : > { %1510 = vmatprep.subr.mxu1 %v3877_v5  ;;  %1061 = vmatprep.subr.mxu0 %v758_v1  ;;  %v708_v1 = vld [vmem:[%s3358_s19 + $0x218] sm:$0xff] }
  0xf3   : > { %2710 = vxpose.xlu0.b32.cont [14/16] %v2709_v32, 128  ;;  %1062 = vmatpush2.msra.mxu0 %v757_v44  ;;  %v750_v32 = vld [vmem:[%s3358_s19 + $0x368] sm:$0xff] }
  0xf4   : > { %1511 = vmatpush2.msra.mxu1 %v3892_v43  ;;  %1063 = vmatprep.subr.mxu0 %v754_v18  ;;  %v2817_v44 = vpack.i.bf16 %v3759_v46, %v750_v32  ;;  %v4069_v46 = vld [vmem:[%s3358_s19 + $0x310] sm:$0xff] }
  0xf5   : > { %1512 = vmatprep.subr.mxu1 %v3901_v35  ;;  %1064 = vmatpush2.msra.mxu0 %v753_v12  ;;  %v4060_v12 = vld [vmem:[%s3358_s19 + $0x330] sm:$0xff] }
  0xf6   : > { %1513 = vmatpush2.msra.mxu1 %v3904_v45  ;;  %2816 = vxpose.xlu1.b32.cont [11/16] %v2815_v34, 128  ;;  %v4090_v18 = vld [vmem:[%s3358_s19 + $0x2d0] sm:$0xff] }
  0xf7   : > { %2712 = vxpose.xlu0.b32.cont [15/16] %v2711_v10, 128  ;;  %1514 = vmatprep.subr.mxu1 %v3916_v11  ;;  %v711_v10 = vld [vmem:[%s3358_s19 + $0x230] sm:$0xff] }
  0xf8   : > { %1065 = vmatprep.subr.mxu0 %v750_v32  ;;  %1515 = vmatpush2.msra.mxu1 %v3925_v17  ;;  %v2909_v34 = vpack.i.bf16 %v4001_v42, %v711_v10  ;;  %v4482_v32 = vld [vmem:[#allocation9_spill] sm:$0xff]  ;;  %v2915_v42 = vpack.i.bf16 %v3954_v6, %v723_v30 }
  0xf9   : > { %1066 = vmatpush2.msra.mxu0 %v3957_v59  ;;  %1516 = vmatprep.subr.mxu1 %v3928_v22  ;;  %v4073_v59 = vld [vmem:[%s3358_s19 + $0x2f8] sm:$0xff] }
  0xfa   : > { %1067 = vmatprep.subr.mxu0 %v746_v51  ;;  %1517 = vmatpush2.msra.mxu1 %v4050_v14  ;;  %v4479_v51 = vld [vmem:[#allocation20_spill] sm:$0xff] }
  0xfb   : > { %2714 = vxpose.xlu0.b32.end [16/16] %v2713_v62, 128  ;;  %1068 = vmatpush2.msra.mxu0 %v3931_v28  ;;  %v4081_v28 = vld [vmem:[%s3358_s19 + $0x2f0] sm:$0xff] }
  0xfc   : > { %1518 = vmatprep.subr.mxu1 %v4056_v55  ;;  %2818 = vxpose.xlu1.b32.cont [12/16] %v2817_v44, 128  ;;  %v4481_v62 = vld [vmem:[#allocation15_spill] sm:$0xff]  ;;  %v2921_v6 = vpack.i.bf16 %v3863_v63, %v4081_v28 }
  0xfd   : > { %1069 = vmatprep.subr.mxu0 %v742_v58  ;;  %1519 = vmatpush2.msra.mxu1 %v4060_v12  ;;  %v4086_v58 = vld [vmem:[%s3358_s19 + $0x2d8] sm:$0xff] }
  0xfe   : > { %1070 = vmatpush2.msra.mxu0 %v3880_v39  ;;  %1520 = vmatprep.subr.mxu1 %v4065_v3  ;;  %v4096_v39 = vld [vmem:[%s3358_s19 + $0x2b8] sm:$0xff] }
  0xff   : > { %1071 = vmatprep.subr.mxu0 %v3996_v31  ;;  %1521 = vmatpush2.msra.mxu1 %v4069_v46  ;;  %v715_v31 = vld [vmem:[%s3358_s19 + $0x250] sm:$0xff] }
 0x100   : > { %1072 = vmatpush2.msra.mxu0 %v3844_v48  ;;  %1522 = vmatprep.subr.mxu1 %v4073_v59  ;;  %v4101_v48 = vld [vmem:[%s3358_s19 + $0x2b0] sm:$0xff] }
 0x101   : > { %2820 = vxpose.xlu1.b32.cont [13/16] %v2819_v19, 128  ;;  %1073 = vmatprep.subr.mxu0 %v3973_v0  ;;  %v724_v0 = vld [vmem:[%s3358_s19 + $0x298] sm:$0xff] }
 0x102   : > { %1074 = vmatpush2.msra.mxu0 %v3806_v61  ;;  %1523 = vmatpush2.msra.mxu1 %v4081_v28  ;;  %v2823_v61 = vpack.i.bf16 %v3694_v26, %v4028_v33  ;;  %v2825_v26 = vpack.i.bf16 %v3661_v15, %v4020_v9  ;;  %v4476_v33 = vld [vmem:[#allocation12_spill] sm:$0xff]  ;;  %v3019_v15 = vpack.i.bf16 %v4007_v25, %v708_v1  ;;  %v4480_v9 = vld [vmem:[#allocation10_spill] sm:$0xff] }
 0x103   : > { %1075 = vmatprep.subr.mxu0 %v3944_v41  ;;  %1524 = vmatprep.subr.mxu1 %v4086_v58  ;;  %v720_v41 = vld [vmem:[%s3358_s19 + $0x278] sm:$0xff] }
 0x104   : > { %1076 = vmatpush2.msra.mxu0 %v3770_v50  ;;  %1525 = vmatpush2.msra.mxu1 %v4090_v18  ;;  %v719_v50 = vld [vmem:[%s3358_s19 + $0x270] sm:$0xff] }
 0x105   : > { %1526 = vmatprep.subr.mxu1 %v4096_v39  ;;  %2822 = vxpose.xlu1.b32.cont [14/16] %v2821_v40, 128  ;;  %v2913_v25 = vpack.i.bf16 %v3970_v29, %v719_v50  ;;  %v3025_v40 = vpack.i.bf16 %v3962_v27, %v720_v41  ;;  %v2919_v29 = vpack.i.bf16 %v3908_v8, %v4090_v18  ;;  %v4486_v18 = vld [vmem:[#allocation27_spill] sm:$0xff] }
 0x106   : > { %1077 = vmatprep.subr.mxu0 %v3867_v4  ;;  %1527 = vmatpush2.msra.mxu1 %v4101_v48  ;;  %v716_v4 = vld [vmem:[%s3358_s19 + $0x258] sm:$0xff]  ;;  %v3031_v27 = vpack.i.bf16 %v3896_v57, %v4086_v58  ;;  %v2925_v57 = vpack.i.bf16 %v4486_v18, %v4060_v12  ;;  %v4487_v58 = vld [vmem:[#allocation26_spill] sm:$0xff] }
 0x107   : > { %1078 = vmatpush2.msra.mxu0 %v3728_v37  ;;  %1528 = vmatprep.subr.mxu1 %v724_v0  ;;  %v712_v37 = vld [vmem:[%s3358_s19 + $0x238] sm:$0xff]  ;;  %v3023_v19 = vpack.i.bf16 %v3979_v24, %v716_v4  ;;  %v3029_v24 = vpack.i.bf16 %v3920_v60, %v4096_v39  ;;  %v3037_v63 = vpack.i.bf16 %v4487_v58, %v4056_v55 }
 0x108   : > { %1079 = vmatprep.subr.mxu0 %v3832_v16  ;;  %1529 = vmatpush2.msra.mxu1 %v723_v30  ;;  %v707_v16 = vld [vmem:[%s3358_s19 + $0x210] sm:$0xff]  ;;  %v3021_v44 = vpack.i.bf16 %v3989_v20, %v712_v37  ;;  %v2917_v20 = vpack.i.bf16 %v3941_v36, %v4101_v48  ;;  %v4485_v39 = vld [vmem:[#allocation28_spill] sm:$0xff]  ;;  %v4489_v55 = vpack.i.bf16 %v3794_v56, %v3928_v22 }
 0x109   : > { %1080 = vmatpush2.msra.mxu0 %v3655_v13  ;;  %1530 = vmatprep.subr.mxu1 %v720_v41  ;;  %v4478_v13 = vld [vmem:[#allocation11_spill] sm:$0xff]  ;;  %v3035_v8 = vpack.i.bf16 %v4485_v39, %v4065_v3 }
 0x10a   : > { %2824 = vxpose.xlu1.b32.cont [15/16] %v2823_v61, 128  ;;  %1081 = vmatprep.subr.mxu0 %v3786_v54  ;;  %v2907_v54 = vpack.i.bf16 %v4011_v7, %v707_v16  ;;  %v2911_v7 = vpack.i.bf16 %v3984_v53, %v715_v31  ;;  %v3027_v61 = vpack.i.bf16 %v3948_v49, %v724_v0  ;;  %v4483_v49 = vld [vmem:[#allocation30_spill] sm:$0xff]  ;;  %v4484_v53 = vld [vmem:[#allocation29_spill] sm:$0xff] }
 0x10b   : > { %1082 = vmatpush2.msra.mxu0 %v4476_v33  ;;  %1531 = vmatpush2.msra.mxu1 %v719_v50  ;;  %v3033_v36 = vpack.i.bf16 %v4483_v49, %v4073_v59  ;;  %v2923_v60 = vpack.i.bf16 %v4484_v53, %v4069_v46  ;;  %v4488_v59 = vld [vmem:[#allocation25_spill] sm:$0xff]  ;;  %v4492_v33 = vld [vmem:[#allocation24_spill] sm:$0xff] }
 0x10c   : > { %1083 = vmatprep.subr.mxu0 %v4477_v38  ;;  %1532 = vmatprep.subr.mxu1 %v716_v4  ;;  %v2927_v28 = vpack.i.bf16 %v4488_v59, %v4050_v14  ;;  %v4490_v4 = vpack.i.bf16 %v3780_v52, %v3925_v17  ;;  %v4496_v52 = vld [vmem:[#allocation21_spill] sm:$0xff] }
 0x10d   : > { %1084 = vmatpush2.msra.mxu0 %v4478_v13  ;;  %1533 = vmatpush2.msra.mxu1 %v715_v31  ;;  %v4491_v31 = vpack.i.bf16 %v3762_v47, %v3916_v11  ;;  %v4498_v13 = vld [vmem:[#allocation19_spill] sm:$0xff] }
 0x10e   : > { %1534 = vmatprep.subr.mxu1 %v712_v37  ;;  %2826 = vxpose.xlu1.b32.end [16/16] %v2825_v26, 128  ;;  %v4493_v37 = vpack.i.bf16 %v4492_v33, %v3904_v45 }
 0x10f   : > { %1085 = vmatprep.subr.mxu0 %v4479_v51  ;;  %1535 = vmatpush2.msra.mxu1 %v711_v10  ;;  %v4497_v10 = vpack.i.bf16 %v4496_v52, %v3892_v43  ;;  %v4500_v51 = vld [vmem:[#allocation18_spill] sm:$0xff] }
 0x110   : > { %1086 = vmatpush2.msra.mxu0 %v4480_v9  ;;  %1536 = vmatprep.subr.mxu1 %v708_v1  ;;  %v4499_v1 = vpack.i.bf16 %v4498_v13, %v3877_v5  ;;  %v4502_v9 = vld [vmem:[#allocation17_spill] sm:$0xff] }
 0x111   : > { %1087 = vmatprep.subr.mxu0 %v4481_v62  ;;  %1537 = vmatpush2.msra.mxu1 %v707_v16  ;;  %v4494_v16 = vld [vmem:[#allocation22_spill] sm:$0xff]  ;;  %v4503_v62 = vpack.i.bf16 %v4502_v9, %v3871_v2 }
 0x112   : > { %1088 = vmatpush2.msra.mxu0 %v4482_v32  ;;  %2908 = vxpose.xlu0.b32.start [1/16] %v2907_v54, 128  ;;  %v4495_v38 = vpack.i.bf16 %v4494_v16, %v3901_v35 }
 0x113   : > { %3020 = vxpose.xlu1.b32.start [1/16] %v3019_v15, 128  ;;  %v4501_v15 = vpack.i.bf16 %v4500_v51, %v3874_v21  ;;  %v4507_v21 = vld [vmem:[#allocation14_spill] sm:$0xff] }
 0x116   : > { %2910 = vxpose.xlu0.b32.cont [2/16] %v2909_v34, 128 }
 0x117   : > { %3022 = vxpose.xlu1.b32.cont [2/16] %v3021_v44, 128  ;;  %v4504_v44 = vld [vmem:[#allocation16_spill] sm:$0xff] }
 0x11a   : > { %2912 = vxpose.xlu0.b32.cont [3/16] %v2911_v7, 128  ;;  %v4505_v7 = vpack.i.bf16 %v4504_v44, %v3686_v23 }
 0x11b   : > { %3024 = vxpose.xlu1.b32.cont [3/16] %v3023_v19, 128  ;;  %v4506_v19 = vld [vmem:[#allocation13_spill] sm:$0xff] }
 0x11e   : > { %2914 = vxpose.xlu0.b32.cont [4/16] %v2913_v25, 128  ;;  %v4508_v25 = vpack.i.bf16 %v4506_v19, %v4507_v21 }
 0x11f   : > { %3026 = vxpose.xlu1.b32.cont [4/16] %v3025_v40, 128 }
 0x122   : > { %2916 = vxpose.xlu0.b32.cont [5/16] %v2915_v42, 128 }
 0x123   : > { %3028 = vxpose.xlu1.b32.cont [5/16] %v3027_v61, 128 }
 0x126   : > { %2918 = vxpose.xlu0.b32.cont [6/16] %v2917_v20, 128 }
 0x127   : > { %3030 = vxpose.xlu1.b32.cont [6/16] %v3029_v24, 128 }
 0x12a   : > { %2920 = vxpose.xlu0.b32.cont [7/16] %v2919_v29, 128 }
 0x12b   : > { %3032 = vxpose.xlu1.b32.cont [7/16] %v3031_v27, 128 }
 0x12e   : > { %2922 = vxpose.xlu0.b32.cont [8/16] %v2921_v6, 128 }
 0x12f   : > { %3034 = vxpose.xlu1.b32.cont [8/16] %v3033_v36, 128 }
 0x132   : > { %2924 = vxpose.xlu0.b32.cont [9/16] %v2923_v60, 128 }
 0x133   : > { %3036 = vxpose.xlu1.b32.cont [9/16] %v3035_v8, 128 }
 0x136   : > { %2926 = vxpose.xlu0.b32.cont [10/16] %v2925_v57, 128 }
 0x137   : > { %3038 = vxpose.xlu1.b32.cont [10/16] %v3037_v63, 128 }
 0x13a   : > { %2928 = vxpose.xlu0.b32.cont [11/16] %v2927_v28, 128 }
 0x13b   : > { %v2715_v48 = vpop.trf.xlu0  ;;  %3040 = vxpose.xlu1.b32.cont [11/16] %v4489_v55, 128 }
 0x13c   : > { %v2716_v46 = vunpack.i.l.bf16 %v2715_v48  ;;  %v2719_v0 = vunpack.i.h.bf16 %v2715_v48 }
 0x13e   : > { %1089 = vmatprep.mubr.f32.mxu0 %v2716_v46  ;;  %1538 = vmatprep.mubr.f32.mxu1 %v2716_v46 }
 0x13f   : > { %v2720_v3 = vpop.trf.xlu0  ;;  %1090 = vmatmul.mubr.f32.vlgmr.msra.gmra.mxu0 %v2719_v0  ;;  %1539 = vmatmul.mubr.f32.vlgmr.msra.gmra.mxu1 %v2719_v0 }
 0x140   : > { %v2721_v30 = vunpack.i.l.bf16 %v2720_v3  ;;  %v2724_v12 = vunpack.i.h.bf16 %v2720_v3  ;;  %2930 = vxpose.xlu0.b32.cont [12/16] %v4490_v4, 128  ;;  %3042 = vxpose.xlu1.b32.cont [12/16] %v4491_v31, 128 }
 0x142   : > { %1095 = vmatprep.mubr.f32.mxu0 %v2721_v30  ;;  %1544 = vmatprep.mubr.f32.mxu1 %v2721_v30 }
 0x143   : > { %v2725_v41 = vpop.trf.xlu0  ;;  %1096 = vmatmul.mubr.f32.gmra.mxu0 %v2724_v12  ;;  %1545 = vmatmul.mubr.f32.gmra.mxu1 %v2724_v12 }
 0x144   : > { %v2726_v14 = vunpack.i.l.bf16 %v2725_v41  ;;  %v2729_v50 = vunpack.i.h.bf16 %v2725_v41  ;;  %2932 = vxpose.xlu0.b32.cont [13/16] %v4493_v37, 128  ;;  %3044 = vxpose.xlu1.b32.cont [13/16] %v4495_v38, 128 }
 0x146   : > { %1101 = vmatprep.mubr.f32.mxu0 %v2726_v14  ;;  %1550 = vmatprep.mubr.f32.mxu1 %v2726_v14 }
 0x147   : > { %v2730_v26 = vpop.trf.xlu0  ;;  %1102 = vmatmul.mubr.f32.gmra.mxu0 %v2729_v50  ;;  %1551 = vmatmul.mubr.f32.gmra.mxu1 %v2729_v50 }
 0x148   : > { %v2731_v56 = vunpack.i.l.bf16 %v2730_v26  ;;  %v2734_v22 = vunpack.i.h.bf16 %v2730_v26  ;;  %2934 = vxpose.xlu0.b32.cont [14/16] %v4497_v10, 128  ;;  %3046 = vxpose.xlu1.b32.cont [14/16] %v4499_v1, 128 }
 0x14a   : > { %1107 = vmatprep.mubr.f32.mxu0 %v2731_v56  ;;  %1556 = vmatprep.mubr.f32.mxu1 %v2731_v56 }
 0x14b   : > { %v2735_v17 = vpop.trf.xlu0  ;;  %1108 = vmatmul.mubr.f32.gmra.mxu0 %v2734_v22  ;;  %1557 = vmatmul.mubr.f32.gmra.mxu1 %v2734_v22 }
 0x14c   : > { %v2736_v11 = vunpack.i.l.bf16 %v2735_v17  ;;  %v2739_v47 = vunpack.i.h.bf16 %v2735_v17  ;;  %2936 = vxpose.xlu0.b32.cont [15/16] %v4501_v15, 128  ;;  %3048 = vxpose.xlu1.b32.cont [15/16] %v4503_v62, 128 }
 0x14e   : > { %1113 = vmatprep.mubr.f32.mxu0 %v2736_v11  ;;  %1562 = vmatprep.mubr.f32.mxu1 %v2736_v11  ;;  %v4192_v43 = vpop.trf.xlu1 }
 0x14f   : > { %v2740_v45 = vpop.trf.xlu0  ;;  %1114 = vmatmul.mubr.f32.gmra.mxu0 %v2739_v47  ;;  %1563 = vmatmul.mubr.f32.gmra.mxu1 %v2739_v47  ;;  %v2828_v26 = vunpack.i.l.bf16 %v4192_v43  ;;  %v2831_v37 = vunpack.i.h.bf16 %v4192_v43 }
 0x150   : > { %v2741_v35 = vunpack.i.l.bf16 %v2740_v45  ;;  %v2744_v54 = vunpack.i.h.bf16 %v2740_v45  ;;  %2938 = vxpose.xlu0.b32.end [16/16] %v4505_v7, 128  ;;  %3050 = vxpose.xlu1.b32.end [16/16] %v4508_v25, 128 }
 0x152   : > { %1119 = vmatprep.mubr.f32.mxu0 %v2741_v35  ;;  %1568 = vmatprep.mubr.f32.mxu1 %v2741_v35  ;;  %v4200_v2 = vpop.trf.xlu1 }
 0x153   : > { %v2745_v5 = vpop.trf.xlu0  ;;  %1120 = vmatmul.mubr.f32.gmra.mxu0 %v2744_v54  ;;  %1569 = vmatmul.mubr.f32.gmra.mxu1 %v2744_v54  ;;  %v2833_v16 = vunpack.i.l.bf16 %v4200_v2  ;;  %v2836_v17 = vunpack.i.h.bf16 %v4200_v2 }
 0x154   : > { %v2746_v34 = vunpack.i.l.bf16 %v2745_v5  ;;  %v2749_v32 = vunpack.i.h.bf16 %v2745_v5 }
 0x156   : > { %1125 = vmatprep.mubr.f32.mxu0 %v2746_v34  ;;  %1574 = vmatprep.mubr.f32.mxu1 %v2746_v34  ;;  %v4202_v20 = vpop.trf.xlu1 }
 0x157   : > { %v2750_v40 = vpop.trf.xlu0  ;;  %1126 = vmatmul.mubr.f32.gmra.mxu0 %v2749_v32  ;;  %1575 = vmatmul.mubr.f32.gmra.mxu1 %v2749_v32  ;;  %v2838_v11 = vunpack.i.l.bf16 %v4202_v20  ;;  %v2841_v52 = vunpack.i.h.bf16 %v4202_v20 }
 0x158   : > { %v2751_v42 = vunpack.i.l.bf16 %v2750_v40  ;;  %v2754_v61 = vunpack.i.h.bf16 %v2750_v40 }
 0x15a   : > { %1131 = vmatprep.mubr.f32.mxu0 %v2751_v42  ;;  %1580 = vmatprep.mubr.f32.mxu1 %v2751_v42  ;;  %v4204_v27 = vpop.trf.xlu1 }
 0x15b   : > { %v2755_v24 = vpop.trf.xlu0  ;;  %1132 = vmatmul.mubr.f32.gmra.mxu0 %v2754_v61  ;;  %1581 = vmatmul.mubr.f32.gmra.mxu1 %v2754_v61  ;;  %v2843_v10 = vunpack.i.l.bf16 %v4204_v27  ;;  %v2846_v1 = vunpack.i.h.bf16 %v4204_v27 }
 0x15c   : > { %v2756_v23 = vunpack.i.l.bf16 %v2755_v24  ;;  %v2759_v29 = vunpack.i.h.bf16 %v2755_v24 }
 0x15e   : > { %1137 = vmatprep.mubr.f32.mxu0 %v2756_v23  ;;  %1586 = vmatprep.mubr.f32.mxu1 %v2756_v23  ;;  %v4206_v53 = vpop.trf.xlu1 }
 0x15f   : > { %v2760_v6 = vpop.trf.xlu0  ;;  %1138 = vmatmul.mubr.f32.gmra.mxu0 %v2759_v29  ;;  %1587 = vmatmul.mubr.f32.gmra.mxu1 %v2759_v29  ;;  %v2848_v45 = vunpack.i.l.bf16 %v4206_v53  ;;  %v2851_v54 = vunpack.i.h.bf16 %v4206_v53 }
 0x160   : > { %v2761_v49 = vunpack.i.l.bf16 %v2760_v6  ;;  %v2764_v36 = vunpack.i.h.bf16 %v2760_v6 }
 0x162   : > { %1143 = vmatprep.mubr.f32.mxu0 %v2761_v49  ;;  %1592 = vmatprep.mubr.f32.mxu1 %v2761_v49  ;;  %v4208_v18 = vpop.trf.xlu1 }
 0x163   : > { %v2765_v60 = vpop.trf.xlu0  ;;  %1144 = vmatmul.mubr.f32.gmra.mxu0 %v2764_v36  ;;  %1593 = vmatmul.mubr.f32.gmra.mxu1 %v2764_v36  ;;  %v2853_v51 = vunpack.i.l.bf16 %v4208_v18  ;;  %v2856_v9 = vunpack.i.h.bf16 %v4208_v18 }
 0x164   : > { %v2766_v39 = vunpack.i.l.bf16 %v2765_v60  ;;  %v2769_v8 = vunpack.i.h.bf16 %v2765_v60 }
 0x166   : > { %1149 = vmatprep.mubr.f32.mxu0 %v2766_v39  ;;  %1598 = vmatprep.mubr.f32.mxu1 %v2766_v39  ;;  %v4210_v59 = vpop.trf.xlu1 }
 0x167   : > { %v2770_v57 = vpop.trf.xlu0  ;;  %1150 = vmatmul.mubr.f32.gmra.mxu0 %v2769_v8  ;;  %1599 = vmatmul.mubr.f32.gmra.mxu1 %v2769_v8  ;;  %v2858_v62 = vunpack.i.l.bf16 %v4210_v59  ;;  %v2861_v43 = vunpack.i.h.bf16 %v4210_v59 }
 0x168   : > { %v2771_v58 = vunpack.i.l.bf16 %v2770_v57  ;;  %v2774_v63 = vunpack.i.h.bf16 %v2770_v57 }
 0x16a   : > { %1155 = vmatprep.mubr.f32.mxu0 %v2771_v58  ;;  %1604 = vmatprep.mubr.f32.mxu1 %v2771_v58  ;;  %v4212_v0 = vpop.trf.xlu1 }
 0x16b   : > { %v2775_v28 = vpop.trf.xlu0  ;;  %1156 = vmatmul.mubr.f32.gmra.mxu0 %v2774_v63  ;;  %1605 = vmatmul.mubr.f32.gmra.mxu1 %v2774_v63  ;;  %v2863_v5 = vunpack.i.l.bf16 %v4212_v0  ;;  %v2866_v44 = vunpack.i.h.bf16 %v4212_v0 }
 0x16c   : > { %v2776_v48 = vunpack.i.l.bf16 %v2775_v28  ;;  %v2779_v46 = vunpack.i.h.bf16 %v2775_v28 }
 0x16e   : > { %1161 = vmatprep.mubr.f32.mxu0 %v2776_v48  ;;  %1610 = vmatprep.mubr.f32.mxu1 %v2776_v48  ;;  %v4214_v55 = vpop.trf.xlu1 }
 0x16f   : > { %v2780_v3 = vpop.trf.xlu0  ;;  %1162 = vmatmul.mubr.f32.gmra.mxu0 %v2779_v46  ;;  %1611 = vmatmul.mubr.f32.gmra.mxu1 %v2779_v46  ;;  %v2868_v7 = vunpack.i.l.bf16 %v4214_v55  ;;  %v2871_v25 = vunpack.i.h.bf16 %v4214_v55 }
 0x170   : > { %v2781_v30 = vunpack.i.l.bf16 %v2780_v3  ;;  %v2784_v12 = vunpack.i.h.bf16 %v2780_v3 }
 0x172   : > { %1167 = vmatprep.mubr.f32.mxu0 %v2781_v30  ;;  %1616 = vmatprep.mubr.f32.mxu1 %v2781_v30  ;;  %v4216_v4 = vpop.trf.xlu1 }
 0x173   : > { %v2785_v41 = vpop.trf.xlu0  ;;  %1168 = vmatmul.mubr.f32.gmra.mxu0 %v2784_v12  ;;  %1617 = vmatmul.mubr.f32.gmra.mxu1 %v2784_v12  ;;  %v2873_v2 = vunpack.i.l.bf16 %v4216_v4  ;;  %v2876_v61 = vunpack.i.h.bf16 %v4216_v4 }
 0x174   : > { %v2786_v14 = vunpack.i.l.bf16 %v2785_v41  ;;  %v2789_v50 = vunpack.i.h.bf16 %v2785_v41 }
 0x176   : > { %1173 = vmatprep.mubr.f32.mxu0 %v2786_v14  ;;  %1622 = vmatprep.mubr.f32.mxu1 %v2786_v14  ;;  %v4219_v33 = vpop.trf.xlu1 }
 0x177   : > { %v2790_v31 = vpop.trf.xlu0  ;;  %1174 = vmatmul.mubr.f32.gmra.mxu0 %v2789_v50  ;;  %1623 = vmatmul.mubr.f32.gmra.mxu1 %v2789_v50  ;;  %v2878_v20 = vunpack.i.l.bf16 %v4219_v33  ;;  %v2881_v29 = vunpack.i.h.bf16 %v4219_v33 }
 0x178   : > { %v2791_v56 = vunpack.i.l.bf16 %v2790_v31  ;;  %v2794_v22 = vunpack.i.h.bf16 %v2790_v31 }
 0x17a   : > { %1179 = vmatprep.mubr.f32.mxu0 %v2791_v56  ;;  %1628 = vmatprep.mubr.f32.mxu1 %v2791_v56  ;;  %v4223_v38 = vpop.trf.xlu1 }
 0x17b   : > { %1180 = vmatmul.mubr.f32.gmra.mxu0 %v2794_v22  ;;  %1629 = vmatmul.mubr.f32.gmra.mxu1 %v2794_v22  ;;  %v2883_v27 = vunpack.i.l.bf16 %v4223_v38  ;;  %v2886_v36 = vunpack.i.h.bf16 %v4223_v38 }
 0x17c   : > { %1185 = vmatprep.mubr.f32.mxu0 %v2828_v26  ;;  %1634 = vmatprep.mubr.f32.mxu1 %v2828_v26 }
 0x17e   : > { %v4227_v47 = vpop.trf.xlu1 }
 0x17f   : > { %1186 = vmatmul.mubr.f32.gmra.mxu0 %v2831_v37  ;;  %1635 = vmatmul.mubr.f32.gmra.mxu1 %v2831_v37  ;;  %v2888_v53 = vunpack.i.l.bf16 %v4227_v47  ;;  %v2891_v8 = vunpack.i.h.bf16 %v4227_v47 }
 0x180   : > { %1191 = vmatprep.mubr.f32.mxu0 %v2833_v16  ;;  %1640 = vmatprep.mubr.f32.mxu1 %v2833_v16 }
 0x182   : > { %v4231_v13 = vpop.trf.xlu1 }
 0x183   : > { %1192 = vmatmul.mubr.f32.gmra.mxu0 %v2836_v17  ;;  %1641 = vmatmul.mubr.f32.gmra.mxu1 %v2836_v17  ;;  %v2893_v18 = vunpack.i.l.bf16 %v4231_v13  ;;  %v2896_v63 = vunpack.i.h.bf16 %v4231_v13 }
 0x184   : > { %1197 = vmatprep.mubr.f32.mxu0 %v2838_v11  ;;  %1646 = vmatprep.mubr.f32.mxu1 %v2838_v11 }
 0x186   : > { %v4235_v35 = vpop.trf.xlu1 }
 0x187   : > { %1198 = vmatmul.mubr.f32.gmra.mxu0 %v2841_v52  ;;  %1647 = vmatmul.mubr.f32.gmra.mxu1 %v2841_v52  ;;  %v2898_v59 = vunpack.i.l.bf16 %v4235_v35  ;;  %v2901_v46 = vunpack.i.h.bf16 %v4235_v35 }
 0x188   : > { %1203 = vmatprep.mubr.f32.mxu0 %v2843_v10  ;;  %1652 = vmatprep.mubr.f32.mxu1 %v2843_v10 }
 0x18a   : > { %v4239_v15 = vpop.trf.xlu1 }
 0x18b   : > { %1204 = vmatmul.mubr.f32.gmra.mxu0 %v2846_v1  ;;  %1653 = vmatmul.mubr.f32.gmra.mxu1 %v2846_v1  ;;  %v2903_v0 = vunpack.i.l.bf16 %v4239_v15  ;;  %v2906_v12 = vunpack.i.h.bf16 %v4239_v15 }
 0x18c   : > { %1209 = vmatprep.mubr.f32.mxu0 %v2848_v45  ;;  %1658 = vmatprep.mubr.f32.mxu1 %v2848_v45 }
 0x18f   : > { %1210 = vmatmul.mubr.f32.gmra.mxu0 %v2851_v54  ;;  %1659 = vmatmul.mubr.f32.gmra.mxu1 %v2851_v54 }
 0x190   : > { %1215 = vmatprep.mubr.f32.mxu0 %v2853_v51  ;;  %1664 = vmatprep.mubr.f32.mxu1 %v2853_v51  ;;  %v4245_v34 = vpop.trf.xlu0  ;;  %v4247_v32 = vpop.trf.xlu1 }
 0x191   : > { %v2940_v55 = vunpack.i.l.bf16 %v4245_v34  ;;  %v2943_v50 = vunpack.i.h.bf16 %v4245_v34 }
 0x193   : > { %1216 = vmatmul.mubr.f32.gmra.mxu0 %v2856_v9  ;;  %1665 = vmatmul.mubr.f32.gmra.mxu1 %v2856_v9 }
 0x194   : > { %1221 = vmatprep.mubr.f32.mxu0 %v2858_v62  ;;  %1670 = vmatprep.mubr.f32.mxu1 %v2858_v62  ;;  %v4251_v19 = vpop.trf.xlu0  ;;  %v4253_v21 = vpop.trf.xlu1 }
 0x195   : > { %v2945_v4 = vunpack.i.l.bf16 %v4251_v19  ;;  %v2948_v56 = vunpack.i.h.bf16 %v4251_v19 }
 0x197   : > { %1222 = vmatmul.mubr.f32.gmra.mxu0 %v2861_v43  ;;  %1671 = vmatmul.mubr.f32.gmra.mxu1 %v2861_v43 }
 0x198   : > { %1227 = vmatprep.mubr.f32.mxu0 %v2863_v5  ;;  %1676 = vmatprep.mubr.f32.mxu1 %v2863_v5  ;;  %v4257_v40 = vpop.trf.xlu0  ;;  %v4259_v42 = vpop.trf.xlu1 }
 0x199   : > { %v2950_v22 = vunpack.i.l.bf16 %v4257_v40  ;;  %v2953_v16 = vunpack.i.h.bf16 %v4257_v40 }
 0x19b   : > { %1228 = vmatmul.mubr.f32.gmra.mxu0 %v2866_v44  ;;  %1677 = vmatmul.mubr.f32.gmra.mxu1 %v2866_v44 }
 0x19c   : > { %1233 = vmatprep.mubr.f32.mxu0 %v2868_v7  ;;  %1682 = vmatprep.mubr.f32.mxu1 %v2868_v7  ;;  %v4263_v24 = vpop.trf.xlu0  ;;  %v4265_v23 = vpop.trf.xlu1 }
 0x19d   : > { %v2955_v38 = vunpack.i.l.bf16 %v4263_v24  ;;  %v2958_v47 = vunpack.i.h.bf16 %v4263_v24 }
 0x19f   : > { %1234 = vmatmul.mubr.f32.gmra.mxu0 %v2871_v25  ;;  %1683 = vmatmul.mubr.f32.gmra.mxu1 %v2871_v25 }
 0x1a0   : > { %1239 = vmatprep.mubr.f32.mxu0 %v2873_v2  ;;  %1688 = vmatprep.mubr.f32.mxu1 %v2873_v2  ;;  %v4269_v6 = vpop.trf.xlu0  ;;  %v4271_v49 = vpop.trf.xlu1 }
 0x1a1   : > { %v2960_v52 = vunpack.i.l.bf16 %v4269_v6  ;;  %v2963_v1 = vunpack.i.h.bf16 %v4269_v6 }
 0x1a3   : > { %1240 = vmatmul.mubr.f32.gmra.mxu0 %v2876_v61  ;;  %1689 = vmatmul.mubr.f32.gmra.mxu1 %v2876_v61 }
 0x1a4   : > { %1245 = vmatprep.mubr.f32.mxu0 %v2878_v20  ;;  %1694 = vmatprep.mubr.f32.mxu1 %v2878_v20  ;;  %v4275_v60 = vpop.trf.xlu0  ;;  %v4277_v39 = vpop.trf.xlu1 }
 0x1a5   : > { %v2965_v45 = vunpack.i.l.bf16 %v4275_v60  ;;  %v2968_v51 = vunpack.i.h.bf16 %v4275_v60 }
 0x1a7   : > { %1246 = vmatmul.mubr.f32.gmra.mxu0 %v2881_v29  ;;  %1695 = vmatmul.mubr.f32.gmra.mxu1 %v2881_v29 }
 0x1a8   : > { %1251 = vmatprep.mubr.f32.mxu0 %v2883_v27  ;;  %1700 = vmatprep.mubr.f32.mxu1 %v2883_v27  ;;  %v4281_v57 = vpop.trf.xlu0  ;;  %v4283_v58 = vpop.trf.xlu1 }
 0x1a9   : > { %v2970_v15 = vunpack.i.l.bf16 %v4281_v57  ;;  %v2973_v43 = vunpack.i.h.bf16 %v4281_v57  ;;  %v3055_v57 = vunpack.i.h.bf16 %v4247_v32 }
 0x1ab   : > { %1252 = vmatmul.mubr.f32.gmra.mxu0 %v2886_v36  ;;  %1701 = vmatmul.mubr.f32.gmra.mxu1 %v2886_v36 }
 0x1ac   : > { %1257 = vmatprep.mubr.f32.mxu0 %v2888_v53  ;;  %1706 = vmatprep.mubr.f32.mxu1 %v2888_v53  ;;  %v4287_v28 = vpop.trf.xlu0  ;;  %v4289_v48 = vpop.trf.xlu1 }
 0x1ad   : > { %v2975_v5 = vunpack.i.l.bf16 %v4287_v28  ;;  %v2978_v34 = vunpack.i.h.bf16 %v4287_v28  ;;  %v387_v28 = vld [vmem:[#allocation2 + $0x10] sm:$0xff] }
 0x1af   : > { %1258 = vmatmul.mubr.f32.gmra.mxu0 %v2891_v8  ;;  %1707 = vmatmul.mubr.f32.gmra.mxu1 %v2891_v8 }
 0x1b0   : > { %1263 = vmatprep.mubr.f32.mxu0 %v2893_v18  ;;  %1712 = vmatprep.mubr.f32.mxu1 %v2893_v18  ;;  %v4293_v3 = vpop.trf.xlu0  ;;  %v4295_v30 = vpop.trf.xlu1  ;;  %v3052_v18 = vunpack.i.l.bf16 %v4247_v32  ;;  %v3062_v32 = vunpack.i.l.bf16 %v4259_v42 }
 0x1b1   : > { %v2980_v44 = vunpack.i.l.bf16 %v4293_v3  ;;  %v2983_v7 = vunpack.i.h.bf16 %v4293_v3  ;;  %v386_v3 = vld [vmem:[#allocation2 + $0x8] sm:$0xff] }
 0x1b3   : > { %1264 = vmatmul.mubr.f32.gmra.mxu0 %v2896_v63  ;;  %1713 = vmatmul.mubr.f32.gmra.mxu1 %v2896_v63  ;;  %v3057_v63 = vunpack.i.l.bf16 %v4253_v21 }
 0x1b4   : > { %1269 = vmatprep.mubr.f32.mxu0 %v2898_v59  ;;  %1718 = vmatprep.mubr.f32.mxu1 %v2898_v59  ;;  %v4299_v41 = vpop.trf.xlu0  ;;  %v4301_v14 = vpop.trf.xlu1  ;;  %v385_v59 = vld [vmem:[#allocation2] sm:$0xff] }
 0x1b5   : > { %v2985_v19 = vunpack.i.l.bf16 %v4299_v41  ;;  %v2988_v25 = vunpack.i.h.bf16 %v4299_v41 }
 0x1b7   : > { %1270 = vmatmul.mubr.f32.gmra.mxu0 %v2901_v46  ;;  %1719 = vmatmul.mubr.f32.gmra.mxu1 %v2901_v46 }
 0x1b8   : > { %1275 = vmatprep.mubr.f32.mxu0 %v2903_v0  ;;  %1724 = vmatprep.mubr.f32.mxu1 %v2903_v0  ;;  %v4305_v31 = vpop.trf.xlu0  ;;  %v4307_v26 = vpop.trf.xlu1 }
 0x1b9   : > { %v2990_v2 = vunpack.i.l.bf16 %v4305_v31  ;;  %v2993_v40 = vunpack.i.h.bf16 %v4305_v31 }
 0x1bb   : > { %1276 = vmatmul.mubr.f32.gmra.mxu0 %v2906_v12  ;;  %1725 = vmatmul.mubr.f32.gmra.mxu1 %v2906_v12  ;;  %v388_v12 = vld [vmem:[#allocation2 + $0x18] sm:$0xff] }
 0x1bc   : > { %1281 = vmatprep.mubr.f32.mxu0 %v2940_v55  ;;  %1730 = vmatprep.mubr.f32.mxu1 %v2940_v55  ;;  %v4311_v33 = vpop.trf.xlu0  ;;  %v4313_v37 = vpop.trf.xlu1  ;;  %v3060_v55 = vunpack.i.h.bf16 %v4253_v21  ;;  %v392_v21 = vld [vmem:[#allocation2 + $0x38] sm:$0xff] }
 0x1bd   : > { %v2995_v61 = vunpack.i.l.bf16 %v4311_v33  ;;  %v2998_v20 = vunpack.i.h.bf16 %v4311_v33 }
 0x1bf   : > { %1282 = vmatmul.mubr.f32.gmra.mxu0 %v2943_v50  ;;  %1731 = vmatmul.mubr.f32.gmra.mxu1 %v2943_v50 }
 0x1c0   : > { %1287 = vmatprep.mubr.f32.mxu0 %v2945_v4  ;;  %1736 = vmatprep.mubr.f32.mxu1 %v2945_v4  ;;  %v4317_v17 = vpop.trf.xlu0  ;;  %v4319_v11 = vpop.trf.xlu1 }
 0x1c1   : > { %v3000_v24 = vunpack.i.l.bf16 %v4317_v17  ;;  %v3003_v29 = vunpack.i.h.bf16 %v4317_v17 }
 0x1c3   : > { %1288 = vmatmul.mubr.f32.gmra.mxu0 %v2948_v56  ;;  %1737 = vmatmul.mubr.f32.gmra.mxu1 %v2948_v56  ;;  %v389_v56 = vld [vmem:[#allocation2 + $0x20] sm:$0xff] }
 0x1c4   : > { %1293 = vmatprep.mubr.f32.mxu0 %v2950_v22  ;;  %1742 = vmatprep.mubr.f32.mxu1 %v2950_v22  ;;  %v4323_v10 = vpop.trf.xlu0  ;;  %v4325_v13 = vpop.trf.xlu1  ;;  %v391_v22 = vld [vmem:[#allocation2 + $0x30] sm:$0xff] }
 0x1c5   : > { %v3005_v27 = vunpack.i.l.bf16 %v4323_v10  ;;  %v3008_v6 = vunpack.i.h.bf16 %v4323_v10 }
 0x1c7   : > { %1294 = vmatmul.mubr.f32.gmra.mxu0 %v2953_v16  ;;  %1743 = vmatmul.mubr.f32.gmra.mxu1 %v2953_v16 }
 0x1c8   : > { %1299 = vmatprep.mubr.f32.mxu0 %v2955_v38  ;;  %1748 = vmatprep.mubr.f32.mxu1 %v2955_v38  ;;  %v4329_v35 = vpop.trf.xlu0  ;;  %v4331_v54 = vpop.trf.xlu1 }
 0x1c9   : > { %v3010_v36 = vunpack.i.l.bf16 %v4329_v35  ;;  %v3013_v53 = vunpack.i.h.bf16 %v4329_v35 }
 0x1cb   : > { %1300 = vmatmul.mubr.f32.gmra.mxu0 %v2958_v47  ;;  %1749 = vmatmul.mubr.f32.gmra.mxu1 %v2958_v47  ;;  %v390_v47 = vld [vmem:[#allocation2 + $0x28] sm:$0xff] }
 0x1cc   : > { %1305 = vmatprep.mubr.f32.mxu0 %v2960_v52  ;;  %1754 = vmatprep.mubr.f32.mxu1 %v2960_v52  ;;  %v4335_v9 = vpop.trf.xlu0  ;;  %v4337_v62 = vpop.trf.xlu1  ;;  %v3065_v52 = vunpack.i.h.bf16 %v4259_v42  ;;  %v394_v42 = vld [vmem:[#allocation2 + $0x48] sm:$0xff] }
 0x1cd   : > { %v3015_v60 = vunpack.i.l.bf16 %v4335_v9  ;;  %v3018_v8 = vunpack.i.h.bf16 %v4335_v9  ;;  %v395_v9 = vld [vmem:[#allocation2 + $0x50] sm:$0xff] }
 0x1cf   : > { %1306 = vmatmul.mubr.f32.gmra.mxu0 %v2963_v1  ;;  %1755 = vmatmul.mubr.f32.gmra.mxu1 %v2963_v1 }
 0x1d0   : > { %1311 = vmatprep.mubr.f32.mxu0 %v2965_v45  ;;  %1760 = vmatprep.mubr.f32.mxu1 %v2965_v45  ;;  %v3067_v45 = vunpack.i.l.bf16 %v4265_v23 }
 0x1d3   : > { %1312 = vmatmul.mubr.f32.gmra.mxu0 %v2968_v51  ;;  %1761 = vmatmul.mubr.f32.gmra.mxu1 %v2968_v51 }
 0x1d4   : > { %1317 = vmatprep.mubr.f32.mxu0 %v2970_v15  ;;  %1766 = vmatprep.mubr.f32.mxu1 %v2970_v15  ;;  %v393_v15 = vld [vmem:[#allocation2 + $0x40] sm:$0xff] }
 0x1d7   : > { %1318 = vmatmul.mubr.f32.gmra.mxu0 %v2973_v43  ;;  %1767 = vmatmul.mubr.f32.gmra.mxu1 %v2973_v43 }
 0x1d8   : > { %1323 = vmatprep.mubr.f32.mxu0 %v2975_v5  ;;  %1772 = vmatprep.mubr.f32.mxu1 %v2975_v5 }
 0x1db   : > { %1324 = vmatmul.mubr.f32.gmra.mxu0 %v2978_v34  ;;  %1773 = vmatmul.mubr.f32.gmra.mxu1 %v2978_v34 }
 0x1dc   : > { %1329 = vmatprep.mubr.f32.mxu0 %v2980_v44  ;;  %1778 = vmatprep.mubr.f32.mxu1 %v2980_v44 }
 0x1df   : > { %1330 = vmatmul.mubr.f32.gmra.mxu0 %v2983_v7  ;;  %1779 = vmatmul.mubr.f32.gmra.mxu1 %v2983_v7  ;;  %v396_v7 = vld [vmem:[#allocation2 + $0x58] sm:$0xff] }
 0x1e0   : > { %1335 = vmatprep.mubr.f32.mxu0 %v2985_v19  ;;  %1784 = vmatprep.mubr.f32.mxu1 %v2985_v19  ;;  %v3070_v19 = vunpack.i.h.bf16 %v4265_v23  ;;  %v398_v23 = vld [vmem:[#allocation2 + $0x68] sm:$0xff] }
 0x1e3   : > { %1336 = vmatmul.mubr.f32.gmra.mxu0 %v2988_v25  ;;  %1785 = vmatmul.mubr.f32.gmra.mxu1 %v2988_v25 }
 0x1e4   : > { %1341 = vmatprep.mubr.f32.mxu0 %v2990_v2  ;;  %1790 = vmatprep.mubr.f32.mxu1 %v2990_v2 }
 0x1e7   : > { %1342 = vmatmul.mubr.f32.gmra.mxu0 %v2993_v40  ;;  %1791 = vmatmul.mubr.f32.gmra.mxu1 %v2993_v40  ;;  %v3072_v40 = vunpack.i.l.bf16 %v4271_v49 }
 0x1e8   : > { %1347 = vmatprep.mubr.f32.mxu0 %v2995_v61  ;;  %1796 = vmatprep.mubr.f32.mxu1 %v2995_v61 }
 0x1eb   : > { %1348 = vmatmul.mubr.f32.gmra.mxu0 %v2998_v20  ;;  %1797 = vmatmul.mubr.f32.gmra.mxu1 %v2998_v20 }
 0x1ec   : > { %1353 = vmatprep.mubr.f32.mxu0 %v3000_v24  ;;  %1802 = vmatprep.mubr.f32.mxu1 %v3000_v24  ;;  %v397_v24 = vld [vmem:[#allocation2 + $0x60] sm:$0xff] }
 0x1ef   : > { %1354 = vmatmul.mubr.f32.gmra.mxu0 %v3003_v29  ;;  %1803 = vmatmul.mubr.f32.gmra.mxu1 %v3003_v29  ;;  %v399_v29 = vld [vmem:[#allocation2 + $0x70] sm:$0xff] }
 0x1f0   : > { %1359 = vmatprep.mubr.f32.mxu0 %v3005_v27  ;;  %1808 = vmatprep.mubr.f32.mxu1 %v3005_v27 }
 0x1f3   : > { %1360 = vmatmul.mubr.f32.gmra.mxu0 %v3008_v6  ;;  %1809 = vmatmul.mubr.f32.gmra.mxu1 %v3008_v6 }
 0x1f4   : > { %1365 = vmatprep.mubr.f32.mxu0 %v3010_v36  ;;  %1814 = vmatprep.mubr.f32.mxu1 %v3010_v36 }
 0x1f7   : > { %1366 = vmatmul.mubr.f32.gmra.mxu0 %v3013_v53  ;;  %1815 = vmatmul.mubr.f32.gmra.mxu1 %v3013_v53 }
 0x1f8   : > { %1371 = vmatprep.mubr.f32.mxu0 %v3015_v60  ;;  %1820 = vmatprep.mubr.f32.mxu1 %v3015_v60  ;;  %v400_v60 = vld [vmem:[#allocation2 + $0x78] sm:$0xff] }
 0x1fb   : > { %1372 = vmatmul.mubr.f32.gmra.mxu0 %v3018_v8  ;;  %1821 = vmatmul.mubr.f32.gmra.mxu1 %v3018_v8  ;;  %v3075_v8 = vunpack.i.h.bf16 %v4271_v49  ;;  %v402_v49 = vld [vmem:[#allocation2 + $0x88] sm:$0xff] }
 0x1fc   : > { %1377 = vmatprep.mubr.f32.mxu0 %v3052_v18  ;;  %1826 = vmatprep.mubr.f32.mxu1 %v3052_v18 }
 0x1ff   : > { %v1091_v46 = vpop.f32.mrf.mxu0  ;;  %1378 = vmatmul.mubr.f32.gmra.mxu0 %v3055_v57  ;;  %v1540_v0 = vpop.f32.mrf.mxu1  ;;  %1827 = vmatmul.mubr.f32.gmra.mxu1 %v3055_v57 }
 0x200   : > { %v1923_v41 = vadd.f32 %v1091_v46, %v385_v59  ;;  %v1925_v50 = vadd.f32 %v1540_v0, %v387_v28  ;;  %1383 = vmatprep.mubr.f32.mxu0 %v3057_v63  ;;  %1832 = vmatprep.mubr.f32.mxu1 %v3057_v63  ;;  %v3077_v63 = vunpack.i.l.bf16 %v4277_v39  ;;  %v401_v46 = vld [vmem:[#allocation2 + $0x80] sm:$0xff]  ;;  %v403_v0 = vld [vmem:[#allocation2 + $0x90] sm:$0xff] }
 0x201   : > { %v1093_v4 = vpop.f32.mrf.mxu0  ;;  %v1542_v31 = vpop.f32.mrf.mxu1 }
 0x202   : > { %2179 = vst [vmem:[#allocation2] sm:$0xff] %v1923_v41  ;;  %2181 = vst [vmem:[#allocation2 + $0x10] sm:$0xff] %v1925_v50  ;;  %v1924_v33 = vadd.f32 %v1093_v4, %v386_v3  ;;  %v1926_v16 = vadd.f32 %v1542_v31, %v388_v12  ;;  %v404_v50 = vld [vmem:[#allocation2 + $0x98] sm:$0xff] }
 0x203   : > { %v1097_v38 = vpop.f32.mrf.mxu0  ;;  %1384 = vmatmul.mubr.f32.gmra.mxu0 %v3060_v55  ;;  %v1546_v17 = vpop.f32.mrf.mxu1  ;;  %1833 = vmatmul.mubr.f32.gmra.mxu1 %v3060_v55 }
 0x204   : > { %2180 = vst [vmem:[#allocation2 + $0x8] sm:$0xff] %v1924_v33  ;;  %2182 = vst [vmem:[#allocation2 + $0x18] sm:$0xff] %v1926_v16  ;;  %v1927_v10 = vadd.f32 %v1097_v38, %v389_v56  ;;  %v1929_v1 = vadd.f32 %v1546_v17, %v391_v22  ;;  %1389 = vmatprep.mubr.f32.mxu0 %v3062_v32  ;;  %1838 = vmatprep.mubr.f32.mxu1 %v3062_v32  ;;  %v3080_v32 = vunpack.i.h.bf16 %v4277_v39  ;;  %v405_v16 = vld [vmem:[#allocation2 + $0xa0] sm:$0xff]  ;;  %v407_v38 = vld [vmem:[#allocation2 + $0xb0] sm:$0xff] }
 0x205   : > { %v1099_v35 = vpop.f32.mrf.mxu0  ;;  %v1548_v51 = vpop.f32.mrf.mxu1  ;;  %v3082_v56 = vunpack.i.l.bf16 %v4283_v58  ;;  %v406_v39 = vld [vmem:[#allocation2 + $0xa8] sm:$0xff] }
 0x206   : > { %2183 = vst [vmem:[#allocation2 + $0x20] sm:$0xff] %v1927_v10  ;;  %2185 = vst [vmem:[#allocation2 + $0x30] sm:$0xff] %v1929_v1  ;;  %v1928_v43 = vadd.f32 %v1099_v35, %v390_v47  ;;  %v1930_v5 = vadd.f32 %v1548_v51, %v392_v21  ;;  %v408_v10 = vld [vmem:[#allocation2 + $0xb8] sm:$0xff]  ;;  %v3085_v1 = vunpack.i.h.bf16 %v4283_v58  ;;  %v3087_v51 = vunpack.i.l.bf16 %v4289_v48  ;;  %v410_v58 = vld [vmem:[#allocation2 + $0xc8] sm:$0xff] }
 0x207   : > { %v1103_v34 = vpop.f32.mrf.mxu0  ;;  %1390 = vmatmul.mubr.f32.gmra.mxu0 %v3065_v52  ;;  %v1552_v44 = vpop.f32.mrf.mxu1  ;;  %1839 = vmatmul.mubr.f32.gmra.mxu1 %v3065_v52 }
 0x208   : > { %2184 = vst [vmem:[#allocation2 + $0x28] sm:$0xff] %v1928_v43  ;;  %2186 = vst [vmem:[#allocation2 + $0x38] sm:$0xff] %v1930_v5  ;;  %v1931_v25 = vadd.f32 %v1103_v34, %v393_v15  ;;  %v1933_v2 = vadd.f32 %v1552_v44, %v395_v9  ;;  %1395 = vmatprep.mubr.f32.mxu0 %v3067_v45  ;;  %1844 = vmatprep.mubr.f32.mxu1 %v3067_v45  ;;  %v409_v43 = vld [vmem:[#allocation2 + $0xc0] sm:$0xff]  ;;  %v411_v5 = vld [vmem:[#allocation2 + $0xd0] sm:$0xff] }
 0x209   : > { %v1105_v61 = vpop.f32.mrf.mxu0  ;;  %v1554_v20 = vpop.f32.mrf.mxu1 }
 0x20a   : > { %2187 = vst [vmem:[#allocation2 + $0x40] sm:$0xff] %v1931_v25  ;;  %2189 = vst [vmem:[#allocation2 + $0x50] sm:$0xff] %v1933_v2  ;;  %v1932_v27 = vadd.f32 %v1105_v61, %v394_v42  ;;  %v1934_v6 = vadd.f32 %v1554_v20, %v396_v7  ;;  %v3090_v25 = vunpack.i.h.bf16 %v4289_v48  ;;  %v3092_v61 = vunpack.i.l.bf16 %v4295_v30 }
 0x20b   : > { %v1109_v36 = vpop.f32.mrf.mxu0  ;;  %1396 = vmatmul.mubr.f32.gmra.mxu0 %v3070_v19  ;;  %v1558_v53 = vpop.f32.mrf.mxu1  ;;  %1845 = vmatmul.mubr.f32.gmra.mxu1 %v3070_v19  ;;  %v412_v19 = vld [vmem:[#allocation2 + $0xd8] sm:$0xff] }
 0x20c   : > { %2188 = vst [vmem:[#allocation2 + $0x48] sm:$0xff] %v1932_v27  ;;  %2190 = vst [vmem:[#allocation2 + $0x58] sm:$0xff] %v1934_v6  ;;  %v1935_v18 = vadd.f32 %v1109_v36, %v397_v24  ;;  %v1937_v57 = vadd.f32 %v1558_v53, %v399_v29  ;;  %1401 = vmatprep.mubr.f32.mxu0 %v3072_v40  ;;  %1850 = vmatprep.mubr.f32.mxu1 %v3072_v40  ;;  %v413_v29 = vld [vmem:[#allocation2 + $0xe0] sm:$0xff]  ;;  %v415_v27 = vld [vmem:[#allocation2 + $0xf0] sm:$0xff]  ;;  %v3095_v53 = vunpack.i.h.bf16 %v4295_v30 }
 0x20d   : > { %v1111_v59 = vpop.f32.mrf.mxu0  ;;  %v1560_v28 = vpop.f32.mrf.mxu1 }
 0x20e   : > { %2191 = vst [vmem:[#allocation2 + $0x60] sm:$0xff] %v1935_v18  ;;  %2193 = vst [vmem:[#allocation2 + $0x70] sm:$0xff] %v1937_v57  ;;  %v1936_v3 = vadd.f32 %v1111_v59, %v398_v23  ;;  %v1938_v12 = vadd.f32 %v1560_v28, %v400_v60  ;;  %v414_v60 = vld [vmem:[#allocation2 + $0xe8] sm:$0xff] }
 0x20f   : > { %v1115_v55 = vpop.f32.mrf.mxu0  ;;  %1402 = vmatmul.mubr.f32.gmra.mxu0 %v3075_v8  ;;  %v1564_v41 = vpop.f32.mrf.mxu1  ;;  %1851 = vmatmul.mubr.f32.gmra.mxu1 %v3075_v8  ;;  %v416_v8 = vld [vmem:[#allocation2 + $0xf8] sm:$0xff] }
 0x210   : > { %2192 = vst [vmem:[#allocation2 + $0x68] sm:$0xff] %v1936_v3  ;;  %2194 = vst [vmem:[#allocation2 + $0x78] sm:$0xff] %v1938_v12  ;;  %v1939_v4 = vadd.f32 %v1115_v55, %v401_v46  ;;  %v1941_v31 = vadd.f32 %v1564_v41, %v403_v0  ;;  %1407 = vmatprep.mubr.f32.mxu0 %v3077_v63  ;;  %1856 = vmatprep.mubr.f32.mxu1 %v3077_v63  ;;  %v3097_v63 = vunpack.i.l.bf16 %v4301_v14  ;;  %v417_v46 = vld [vmem:[#allocation2 + $0x100] sm:$0xff]  ;;  %v419_v0 = vld [vmem:[#allocation2 + $0x110] sm:$0xff] }
 0x211   : > { %v1117_v22 = vpop.f32.mrf.mxu0  ;;  %v1566_v33 = vpop.f32.mrf.mxu1  ;;  %v3100_v12 = vunpack.i.h.bf16 %v4301_v14 }
 0x212   : > { %2195 = vst [vmem:[#allocation2 + $0x80] sm:$0xff] %v1939_v4  ;;  %2197 = vst [vmem:[#allocation2 + $0x90] sm:$0xff] %v1941_v31  ;;  %v1940_v17 = vadd.f32 %v1117_v22, %v402_v49  ;;  %v1942_v47 = vadd.f32 %v1566_v33, %v404_v50  ;;  %v418_v49 = vld [vmem:[#allocation2 + $0x108] sm:$0xff]  ;;  %v420_v50 = vld [vmem:[#allocation2 + $0x118] sm:$0xff]  ;;  %v3102_v31 = vunpack.i.l.bf16 %v4307_v26 }
 0x213   : > { %v1121_v21 = vpop.f32.mrf.mxu0  ;;  %1408 = vmatmul.mubr.f32.gmra.mxu0 %v3080_v32  ;;  %v1570_v52 = vpop.f32.mrf.mxu1  ;;  %1857 = vmatmul.mubr.f32.gmra.mxu1 %v3080_v32  ;;  %v421_v33 = vld [vmem:[#allocation2 + $0x120] sm:$0xff] }
 0x214   : > { %2196 = vst [vmem:[#allocation2 + $0x88] sm:$0xff] %v1940_v17  ;;  %2198 = vst [vmem:[#allocation2 + $0x98] sm:$0xff] %v1942_v47  ;;  %v1943_v45 = vadd.f32 %v1121_v21, %v405_v16  ;;  %v1945_v35 = vadd.f32 %v1570_v52, %v407_v38  ;;  %1413 = vmatprep.mubr.f32.mxu0 %v3082_v56  ;;  %1862 = vmatprep.mubr.f32.mxu1 %v3082_v56  ;;  %v423_v16 = vld [vmem:[#allocation2 + $0x130] sm:$0xff]  ;;  %v3105_v17 = vunpack.i.h.bf16 %v4307_v26  ;;  %v422_v52 = vld [vmem:[#allocation2 + $0x128] sm:$0xff] }
 0x215   : > { %v1123_v15 = vpop.f32.mrf.mxu0  ;;  %v1572_v9 = vpop.f32.mrf.mxu1 }
 0x216   : > { %2199 = vst [vmem:[#allocation2 + $0xa0] sm:$0xff] %v1943_v45  ;;  %2201 = vst [vmem:[#allocation2 + $0xb0] sm:$0xff] %v1945_v35  ;;  %v1944_v34 = vadd.f32 %v1123_v15, %v406_v39  ;;  %v1946_v44 = vadd.f32 %v1572_v9, %v408_v10  ;;  %v424_v39 = vld [vmem:[#allocation2 + $0x138] sm:$0xff]  ;;  %v3107_v45 = vunpack.i.l.bf16 %v4313_v37  ;;  %v425_v15 = vld [vmem:[#allocation2 + $0x140] sm:$0xff] }
 0x217   : > { %v1127_v42 = vpop.f32.mrf.mxu0  ;;  %1414 = vmatmul.mubr.f32.gmra.mxu0 %v3085_v1  ;;  %v1576_v7 = vpop.f32.mrf.mxu1  ;;  %1863 = vmatmul.mubr.f32.gmra.mxu1 %v3085_v1  ;;  %v427_v9 = vld [vmem:[#allocation2 + $0x150] sm:$0xff] }
 0x218   : > { %2200 = vst [vmem:[#allocation2 + $0xa8] sm:$0xff] %v1944_v34  ;;  %2202 = vst [vmem:[#allocation2 + $0xb8] sm:$0xff] %v1946_v44  ;;  %v1947_v2 = vadd.f32 %v1127_v42, %v409_v43  ;;  %v1949_v40 = vadd.f32 %v1576_v7, %v411_v5  ;;  %1419 = vmatprep.mubr.f32.mxu0 %v3087_v51  ;;  %1868 = vmatprep.mubr.f32.mxu1 %v3087_v51  ;;  %v3110_v5 = vunpack.i.h.bf16 %v4313_v37  ;;  %v426_v42 = vld [vmem:[#allocation2 + $0x148] sm:$0xff]  ;;  %v428_v7 = vld [vmem:[#allocation2 + $0x158] sm:$0xff] }
 0x219   : > { %v1129_v20 = vpop.f32.mrf.mxu0  ;;  %v1578_v24 = vpop.f32.mrf.mxu1 }
 0x21a   : > { %2203 = vst [vmem:[#allocation2 + $0xc0] sm:$0xff] %v1947_v2  ;;  %2205 = vst [vmem:[#allocation2 + $0xd0] sm:$0xff] %v1949_v40  ;;  %v1948_v6 = vadd.f32 %v1129_v20, %v410_v58  ;;  %v1950_v36 = vadd.f32 %v1578_v24, %v412_v19  ;;  %v431_v20 = vld [vmem:[#allocation2 + $0x170] sm:$0xff] }
 0x21b   : > { %v1133_v23 = vpop.f32.mrf.mxu0  ;;  %1420 = vmatmul.mubr.f32.gmra.mxu0 %v3090_v25  ;;  %v1582_v48 = vpop.f32.mrf.mxu1  ;;  %1869 = vmatmul.mubr.f32.gmra.mxu1 %v3090_v25  ;;  %v3112_v25 = vunpack.i.l.bf16 %v4319_v11 }
 0x21c   : > { %2204 = vst [vmem:[#allocation2 + $0xc8] sm:$0xff] %v1948_v6  ;;  %2206 = vst [vmem:[#allocation2 + $0xd8] sm:$0xff] %v1950_v36  ;;  %v1951_v18 = vadd.f32 %v1133_v23, %v413_v29  ;;  %v1953_v57 = vadd.f32 %v1582_v48, %v415_v27  ;;  %1425 = vmatprep.mubr.f32.mxu0 %v3092_v61  ;;  %1874 = vmatprep.mubr.f32.mxu1 %v3092_v61  ;;  %v429_v61 = vld [vmem:[#allocation2 + $0x160] sm:$0xff]  ;;  %v3115_v29 = vunpack.i.h.bf16 %v4319_v11  ;;  %v430_v36 = vld [vmem:[#allocation2 + $0x168] sm:$0xff] }
 0x21d   : > { %v1135_v59 = vpop.f32.mrf.mxu0  ;;  %v1584_v28 = vpop.f32.mrf.mxu1 }
 0x21e   : > { %2207 = vst [vmem:[#allocation2 + $0xe0] sm:$0xff] %v1951_v18  ;;  %2209 = vst [vmem:[#allocation2 + $0xf0] sm:$0xff] %v1953_v57  ;;  %v1952_v30 = vadd.f32 %v1135_v59, %v414_v60  ;;  %v1954_v3 = vadd.f32 %v1584_v28, %v416_v8  ;;  %v3117_v60 = vunpack.i.l.bf16 %v4325_v13  ;;  %v433_v57 = vld [vmem:[#allocation2 + $0x180] sm:$0xff]  ;;  %v3120_v28 = vunpack.i.h.bf16 %v4325_v13 }
 0x21f   : > { %v1139_v55 = vpop.f32.mrf.mxu0  ;;  %1426 = vmatmul.mubr.f32.gmra.mxu0 %v3095_v53  ;;  %v1588_v41 = vpop.f32.mrf.mxu1  ;;  %1875 = vmatmul.mubr.f32.gmra.mxu1 %v3095_v53  ;;  %v432_v53 = vld [vmem:[#allocation2 + $0x178] sm:$0xff] }
 0x220   : > { %2208 = vst [vmem:[#allocation2 + $0xe8] sm:$0xff] %v1952_v30  ;;  %2210 = vst [vmem:[#allocation2 + $0xf8] sm:$0xff] %v1954_v3  ;;  %v1955_v32 = vadd.f32 %v1139_v55, %v417_v46  ;;  %v1957_v4 = vadd.f32 %v1588_v41, %v419_v0  ;;  %1431 = vmatprep.mubr.f32.mxu0 %v3097_v63  ;;  %1880 = vmatprep.mubr.f32.mxu1 %v3097_v63  ;;  %v435_v63 = vld [vmem:[#allocation2 + $0x190] sm:$0xff]  ;;  %v434_v30 = vld [vmem:[#allocation2 + $0x188] sm:$0xff]  ;;  %v3122_v41 = vunpack.i.l.bf16 %v4331_v54 }
 0x221   : > { %v1141_v56 = vpop.f32.mrf.mxu0  ;;  %v1590_v22 = vpop.f32.mrf.mxu1  ;;  %v436_v3 = vld [vmem:[#allocation2 + $0x198] sm:$0xff] }
 0x222   : > { %2211 = vst [vmem:[#allocation2 + $0x100] sm:$0xff] %v1955_v32  ;;  %2213 = vst [vmem:[#allocation2 + $0x110] sm:$0xff] %v1957_v4  ;;  %v1956_v14 = vadd.f32 %v1141_v56, %v418_v49  ;;  %v1958_v38 = vadd.f32 %v1590_v22, %v420_v50  ;;  %v437_v32 = vld [vmem:[#allocation2 + $0x1a0] sm:$0xff]  ;;  %v439_v4 = vld [vmem:[#allocation2 + $0x1b0] sm:$0xff]  ;;  %v3125_v56 = vunpack.i.h.bf16 %v4331_v54 }
 0x223   : > { %v1145_v47 = vpop.f32.mrf.mxu0  ;;  %1432 = vmatmul.mubr.f32.gmra.mxu0 %v3100_v12  ;;  %v1594_v21 = vpop.f32.mrf.mxu1  ;;  %1881 = vmatmul.mubr.f32.gmra.mxu1 %v3100_v12 }
 0x224   : > { %2212 = vst [vmem:[#allocation2 + $0x108] sm:$0xff] %v1956_v14  ;;  %2214 = vst [vmem:[#allocation2 + $0x118] sm:$0xff] %v1958_v38  ;;  %v1959_v10 = vadd.f32 %v1145_v47, %v421_v33  ;;  %v1961_v1 = vadd.f32 %v1594_v21, %v423_v16  ;;  %1437 = vmatprep.mubr.f32.mxu0 %v3102_v31  ;;  %1886 = vmatprep.mubr.f32.mxu1 %v3102_v31  ;;  %v438_v16 = vld [vmem:[#allocation2 + $0x1a8] sm:$0xff]  ;;  %v440_v14 = vld [vmem:[#allocation2 + $0x1b8] sm:$0xff]  ;;  %v3127_v47 = vunpack.i.l.bf16 %v4337_v62 }
 0x225   : > { %v1147_v35 = vpop.f32.mrf.mxu0  ;;  %v1596_v51 = vpop.f32.mrf.mxu1 }
 0x226   : > { %2215 = vst [vmem:[#allocation2 + $0x120] sm:$0xff] %v1959_v10  ;;  %2217 = vst [vmem:[#allocation2 + $0x130] sm:$0xff] %v1961_v1  ;;  %v1960_v26 = vadd.f32 %v1147_v35, %v422_v52  ;;  %v1962_v43 = vadd.f32 %v1596_v51, %v424_v39  ;;  %v441_v39 = vld [vmem:[#allocation2 + $0x1c0] sm:$0xff]  ;;  %v443_v10 = vld [vmem:[#allocation2 + $0x1d0] sm:$0xff] }
 0x227   : > { %v1151_v34 = vpop.f32.mrf.mxu0  ;;  %1438 = vmatmul.mubr.f32.gmra.mxu0 %v3105_v17  ;;  %v1600_v44 = vpop.f32.mrf.mxu1  ;;  %1887 = vmatmul.mubr.f32.gmra.mxu1 %v3105_v17 }
 0x228   : > { %2216 = vst [vmem:[#allocation2 + $0x128] sm:$0xff] %v1960_v26  ;;  %2218 = vst [vmem:[#allocation2 + $0x138] sm:$0xff] %v1962_v43  ;;  %v1963_v58 = vadd.f32 %v1151_v34, %v425_v15  ;;  %v1965_v19 = vadd.f32 %v1600_v44, %v427_v9  ;;  %1443 = vmatprep.mubr.f32.mxu0 %v3107_v45  ;;  %1892 = vmatprep.mubr.f32.mxu1 %v3107_v45  ;;  %v3130_v45 = vunpack.i.h.bf16 %v4337_v62  ;;  %v442_v15 = vld [vmem:[#allocation2 + $0x1c8] sm:$0xff]  ;;  %v444_v9 = vld [vmem:[#allocation2 + $0x1d8] sm:$0xff] }
 0x229   : > { %v1153_v2 = vpop.f32.mrf.mxu0  ;;  %v1602_v40 = vpop.f32.mrf.mxu1  ;;  %v445_v44 = vld [vmem:[#allocation2 + $0x1e0] sm:$0xff] }
 0x22a   : > { %2219 = vst [vmem:[#allocation2 + $0x140] sm:$0xff] %v1963_v58  ;;  %2221 = vst [vmem:[#allocation2 + $0x150] sm:$0xff] %v1965_v19  ;;  %v1964_v37 = vadd.f32 %v1153_v2, %v426_v42  ;;  %v1966_v24 = vadd.f32 %v1602_v40, %v428_v7  ;;  %v447_v42 = vld [vmem:[#allocation2 + $0x1f0] sm:$0xff]  ;;  %v448_v2 = vld [vmem:[#allocation2 + $0x1f8] sm:$0xff] }
 0x22b   : > { %v1157_v27 = vpop.f32.mrf.mxu0  ;;  %1444 = vmatmul.mubr.f32.gmra.mxu0 %v3110_v5  ;;  %v1606_v6 = vpop.f32.mrf.mxu1  ;;  %1893 = vmatmul.mubr.f32.gmra.mxu1 %v3110_v5 }
 0x22c   : > { %2220 = vst [vmem:[#allocation2 + $0x148] sm:$0xff] %v1964_v37  ;;  %2222 = vst [vmem:[#allocation2 + $0x158] sm:$0xff] %v1966_v24  ;;  %v1967_v23 = vadd.f32 %v1157_v27, %v429_v61  ;;  %v1969_v48 = vadd.f32 %v1606_v6, %v431_v20  ;;  %1449 = vmatprep.mubr.f32.mxu0 %v3112_v25  ;;  %1898 = vmatprep.mubr.f32.mxu1 %v3112_v25  ;;  %v446_v25 = vld [vmem:[#allocation2 + $0x1e8] sm:$0xff]  ;;  %v449_v24 = vld [vmem:[#allocation2 + $0x200] sm:$0xff] }
 0x22d   : > { %v1159_v8 = vpop.f32.mrf.mxu0  ;;  %v1608_v18 = vpop.f32.mrf.mxu1 }
 0x22e   : > { %2223 = vst [vmem:[#allocation2 + $0x160] sm:$0xff] %v1967_v23  ;;  %2225 = vst [vmem:[#allocation2 + $0x170] sm:$0xff] %v1969_v48  ;;  %v1968_v11 = vadd.f32 %v1159_v8, %v430_v36  ;;  %v1970_v59 = vadd.f32 %v1608_v18, %v432_v53  ;;  %v450_v23 = vld [vmem:[#allocation2 + $0x208] sm:$0xff]  ;;  %v452_v48 = vld [vmem:[#allocation2 + $0x218] sm:$0xff] }
 0x22f   : > { %v1163_v46 = vpop.f32.mrf.mxu0  ;;  %1450 = vmatmul.mubr.f32.gmra.mxu0 %v3115_v29  ;;  %v1612_v0 = vpop.f32.mrf.mxu1  ;;  %1899 = vmatmul.mubr.f32.gmra.mxu1 %v3115_v29  ;;  %v451_v29 = vld [vmem:[#allocation2 + $0x210] sm:$0xff] }
 0x230   : > { %2224 = vst [vmem:[#allocation2 + $0x168] sm:$0xff] %v1968_v11  ;;  %2226 = vst [vmem:[#allocation2 + $0x178] sm:$0xff] %v1970_v59  ;;  %v1971_v12 = vadd.f32 %v1163_v46, %v433_v57  ;;  %v1973_v55 = vadd.f32 %v1612_v0, %v435_v63  ;;  %1455 = vmatprep.mubr.f32.mxu0 %v3117_v60  ;;  %1904 = vmatprep.mubr.f32.mxu1 %v3117_v60  ;;  %v453_v63 = vld [vmem:[#allocation2 + $0x220] sm:$0xff]  ;;  %v455_v11 = vld [vmem:[#allocation2 + $0x230] sm:$0xff] }
 0x231   : > { %v1165_v49 = vpop.f32.mrf.mxu0  ;;  %v1614_v50 = vpop.f32.mrf.mxu1 }
 0x232   : > { %2227 = vst [vmem:[#allocation2 + $0x180] sm:$0xff] %v1971_v12  ;;  %2229 = vst [vmem:[#allocation2 + $0x190] sm:$0xff] %v1973_v55  ;;  %v1972_v13 = vadd.f32 %v1165_v49, %v434_v30  ;;  %v1974_v31 = vadd.f32 %v1614_v50, %v436_v3  ;;  %v454_v30 = vld [vmem:[#allocation2 + $0x228] sm:$0xff]  ;;  %v456_v3 = vld [vmem:[#allocation2 + $0x238] sm:$0xff] }
 0x233   : > { %v1169_v22 = vpop.f32.mrf.mxu0  ;;  %1456 = vmatmul.mubr.f32.gmra.mxu0 %v3120_v28  ;;  %v1618_v33 = vpop.f32.mrf.mxu1  ;;  %1905 = vmatmul.mubr.f32.gmra.mxu1 %v3120_v28  ;;  %v457_v50 = vld [vmem:[#allocation2 + $0x240] sm:$0xff] }
 0x234   : > { %2228 = vst [vmem:[#allocation2 + $0x188] sm:$0xff] %v1972_v13  ;;  %2230 = vst [vmem:[#allocation2 + $0x198] sm:$0xff] %v1974_v31  ;;  %v1975_v38 = vadd.f32 %v1169_v22, %v437_v32  ;;  %v1977_v17 = vadd.f32 %v1618_v33, %v439_v4  ;;  %1461 = vmatprep.mubr.f32.mxu0 %v3122_v41  ;;  %1910 = vmatprep.mubr.f32.mxu1 %v3122_v41  ;;  %v459_v32 = vld [vmem:[#allocation2 + $0x250] sm:$0xff]  ;;  %v458_v22 = vld [vmem:[#allocation2 + $0x248] sm:$0xff] }
 0x235   : > { %v1171_v21 = vpop.f32.mrf.mxu0  ;;  %v1620_v52 = vpop.f32.mrf.mxu1  ;;  %v460_v33 = vld [vmem:[#allocation2 + $0x258] sm:$0xff] }
 0x236   : > { %2231 = vst [vmem:[#allocation2 + $0x1a0] sm:$0xff] %v1975_v38  ;;  %2233 = vst [vmem:[#allocation2 + $0x1b0] sm:$0xff] %v1977_v17  ;;  %v1976_v54 = vadd.f32 %v1171_v21, %v438_v16  ;;  %v1978_v1 = vadd.f32 %v1620_v52, %v440_v14  ;;  %v463_v21 = vld [vmem:[#allocation2 + $0x270] sm:$0xff] }
 0x237   : > { %v1175_v35 = vpop.f32.mrf.mxu0  ;;  %1462 = vmatmul.mubr.f32.gmra.mxu0 %v3125_v56  ;;  %v1624_v51 = vpop.f32.mrf.mxu1  ;;  %1911 = vmatmul.mubr.f32.gmra.mxu1 %v3125_v56 }
 0x238   : > { %2232 = vst [vmem:[#allocation2 + $0x1a8] sm:$0xff] %v1976_v54  ;;  %2234 = vst [vmem:[#allocation2 + $0x1b8] sm:$0xff] %v1978_v1  ;;  %v1979_v26 = vadd.f32 %v1175_v35, %v441_v39  ;;  %v1981_v43 = vadd.f32 %v1624_v51, %v443_v10  ;;  %1467 = vmatprep.mubr.f32.mxu0 %v3127_v47  ;;  %1916 = vmatprep.mubr.f32.mxu1 %v3127_v47  ;;  %v461_v47 = vld [vmem:[#allocation2 + $0x260] sm:$0xff]  ;;  %v462_v1 = vld [vmem:[#allocation2 + $0x268] sm:$0xff] }
 0x239   : > { %v1177_v5 = vpop.f32.mrf.mxu0  ;;  %v1626_v34 = vpop.f32.mrf.mxu1 }
 0x23a   : > { %2235 = vst [vmem:[#allocation2 + $0x1c0] sm:$0xff] %v1979_v26  ;;  %2237 = vst [vmem:[#allocation2 + $0x1d0] sm:$0xff] %v1981_v43  ;;  %v1980_v7 = vadd.f32 %v1177_v5, %v442_v15  ;;  %v1982_v62 = vadd.f32 %v1626_v34, %v444_v9  ;;  %v465_v26 = vld [vmem:[#allocation2 + $0x280] sm:$0xff]  ;;  %v467_v43 = vld [vmem:[#allocation2 + $0x290] sm:$0xff] }
 0x23b   : > { %v1181_v58 = vpop.f32.mrf.mxu0  ;;  %1468 = vmatmul.mubr.f32.gmra.mxu0 %v3130_v45  ;;  %v1630_v19 = vpop.f32.mrf.mxu1  ;;  %1917 = vmatmul.mubr.f32.gmra.mxu1 %v3130_v45  ;;  %v464_v45 = vld [vmem:[#allocation2 + $0x278] sm:$0xff] }
 0x23c   : > { %2236 = vst [vmem:[#allocation2 + $0x1c8] sm:$0xff] %v1980_v7  ;;  %2238 = vst [vmem:[#allocation2 + $0x1d8] sm:$0xff] %v1982_v62  ;;  %v1983_v40 = vadd.f32 %v1181_v58, %v445_v44  ;;  %v1985_v61 = vadd.f32 %v1630_v19, %v447_v42  ;;  %v466_v7 = vld [vmem:[#allocation2 + $0x288] sm:$0xff]  ;;  %v468_v62 = vld [vmem:[#allocation2 + $0x298] sm:$0xff] }
 0x23d   : > { %v1183_v20 = vpop.f32.mrf.mxu0  ;;  %v1632_v37 = vpop.f32.mrf.mxu1 }
 0x23e   : > { %2239 = vst [vmem:[#allocation2 + $0x1e0] sm:$0xff] %v1983_v40  ;;  %2241 = vst [vmem:[#allocation2 + $0x1f0] sm:$0xff] %v1985_v61  ;;  %v1984_v27 = vadd.f32 %v1183_v20, %v446_v25  ;;  %v1986_v6 = vadd.f32 %v1632_v37, %v448_v2  ;;  %v469_v40 = vld [vmem:[#allocation2 + $0x2a0] sm:$0xff]  ;;  %v471_v61 = vld [vmem:[#allocation2 + $0x2b0] sm:$0xff] }
 0x23f   : > { %v1187_v36 = vpop.f32.mrf.mxu0  ;;  %v1636_v53 = vpop.f32.mrf.mxu1 }
 0x240   : > { %2240 = vst [vmem:[#allocation2 + $0x1e8] sm:$0xff] %v1984_v27  ;;  %2242 = vst [vmem:[#allocation2 + $0x1f8] sm:$0xff] %v1986_v6  ;;  %v1987_v60 = vadd.f32 %v1187_v36, %v449_v24  ;;  %v1989_v8 = vadd.f32 %v1636_v53, %v451_v29  ;;  %v470_v27 = vld [vmem:[#allocation2 + $0x2a8] sm:$0xff]  ;;  %v472_v6 = vld [vmem:[#allocation2 + $0x2b8] sm:$0xff] }
 0x241   : > { %v1189_v18 = vpop.f32.mrf.mxu0  ;;  %v1638_v57 = vpop.f32.mrf.mxu1 }
 0x242   : > { %2243 = vst [vmem:[#allocation2 + $0x200] sm:$0xff] %v1987_v60  ;;  %2245 = vst [vmem:[#allocation2 + $0x210] sm:$0xff] %v1989_v8  ;;  %v1988_v59 = vadd.f32 %v1189_v18, %v450_v23  ;;  %v1990_v28 = vadd.f32 %v1638_v57, %v452_v48  ;;  %v473_v60 = vld [vmem:[#allocation2 + $0x2c0] sm:$0xff]  ;;  %v475_v8 = vld [vmem:[#allocation2 + $0x2d0] sm:$0xff] }
 0x243   : > { %v1193_v46 = vpop.f32.mrf.mxu0  ;;  %v1642_v0 = vpop.f32.mrf.mxu1 }
 0x244   : > { %2244 = vst [vmem:[#allocation2 + $0x208] sm:$0xff] %v1988_v59  ;;  %2246 = vst [vmem:[#allocation2 + $0x218] sm:$0xff] %v1990_v28  ;;  %v1991_v12 = vadd.f32 %v1193_v46, %v453_v63  ;;  %v1993_v55 = vadd.f32 %v1642_v0, %v455_v11  ;;  %v474_v59 = vld [vmem:[#allocation2 + $0x2c8] sm:$0xff]  ;;  %v476_v28 = vld [vmem:[#allocation2 + $0x2d8] sm:$0xff] }
 0x245   : > { %v1195_v41 = vpop.f32.mrf.mxu0  ;;  %v1644_v49 = vpop.f32.mrf.mxu1 }
 0x246   : > { %2247 = vst [vmem:[#allocation2 + $0x220] sm:$0xff] %v1991_v12  ;;  %2249 = vst [vmem:[#allocation2 + $0x230] sm:$0xff] %v1993_v55  ;;  %v1992_v4 = vadd.f32 %v1195_v41, %v454_v30  ;;  %v1994_v13 = vadd.f32 %v1644_v49, %v456_v3  ;;  %v477_v12 = vld [vmem:[#allocation2 + $0x2e0] sm:$0xff]  ;;  %v479_v55 = vld [vmem:[#allocation2 + $0x2f0] sm:$0xff] }
 0x247   : > { %v1199_v31 = vpop.f32.mrf.mxu0  ;;  %v1648_v56 = vpop.f32.mrf.mxu1 }
 0x248   : > { %2248 = vst [vmem:[#allocation2 + $0x228] sm:$0xff] %v1992_v4  ;;  %2250 = vst [vmem:[#allocation2 + $0x238] sm:$0xff] %v1994_v13  ;;  %v1995_v16 = vadd.f32 %v1199_v31, %v457_v50  ;;  %v1997_v14 = vadd.f32 %v1648_v56, %v459_v32  ;;  %v478_v4 = vld [vmem:[#allocation2 + $0x2e8] sm:$0xff]  ;;  %v480_v13 = vld [vmem:[#allocation2 + $0x2f8] sm:$0xff] }
 0x249   : > { %v1201_v38 = vpop.f32.mrf.mxu0  ;;  %v1650_v17 = vpop.f32.mrf.mxu1 }
 0x24a   : > { %2251 = vst [vmem:[#allocation2 + $0x240] sm:$0xff] %v1995_v16  ;;  %2253 = vst [vmem:[#allocation2 + $0x250] sm:$0xff] %v1997_v14  ;;  %v1996_v52 = vadd.f32 %v1201_v38, %v458_v22  ;;  %v1998_v39 = vadd.f32 %v1650_v17, %v460_v33  ;;  %v481_v16 = vld [vmem:[#allocation2 + $0x300] sm:$0xff]  ;;  %v483_v14 = vld [vmem:[#allocation2 + $0x310] sm:$0xff] }
 0x24b   : > { %v1205_v10 = vpop.f32.mrf.mxu0  ;;  %v1654_v54 = vpop.f32.mrf.mxu1 }
 0x24c   : > { %2252 = vst [vmem:[#allocation2 + $0x248] sm:$0xff] %v1996_v52  ;;  %2254 = vst [vmem:[#allocation2 + $0x258] sm:$0xff] %v1998_v39  ;;  %v1999_v35 = vadd.f32 %v1205_v10, %v461_v47  ;;  %v2001_v51 = vadd.f32 %v1654_v54, %v463_v21  ;;  %v482_v52 = vld [vmem:[#allocation2 + $0x308] sm:$0xff]  ;;  %v484_v39 = vld [vmem:[#allocation2 + $0x318] sm:$0xff] }
 0x24d   : > { %v1207_v15 = vpop.f32.mrf.mxu0  ;;  %v1656_v9 = vpop.f32.mrf.mxu1 }
 0x24e   : > { %2255 = vst [vmem:[#allocation2 + $0x260] sm:$0xff] %v1999_v35  ;;  %2257 = vst [vmem:[#allocation2 + $0x270] sm:$0xff] %v2001_v51  ;;  %v2000_v5 = vadd.f32 %v1207_v15, %v462_v1  ;;  %v2002_v34 = vadd.f32 %v1656_v9, %v464_v45  ;;  %v485_v35 = vld [vmem:[#allocation2 + $0x320] sm:$0xff]  ;;  %v487_v51 = vld [vmem:[#allocation2 + $0x330] sm:$0xff] }
 0x24f   : > { %v1211_v44 = vpop.f32.mrf.mxu0  ;;  %v1660_v42 = vpop.f32.mrf.mxu1 }
 0x250   : > { %2256 = vst [vmem:[#allocation2 + $0x268] sm:$0xff] %v2000_v5  ;;  %2258 = vst [vmem:[#allocation2 + $0x278] sm:$0xff] %v2002_v34  ;;  %v2003_v58 = vadd.f32 %v1211_v44, %v465_v26  ;;  %v2005_v19 = vadd.f32 %v1660_v42, %v467_v43  ;;  %v486_v5 = vld [vmem:[#allocation2 + $0x328] sm:$0xff]  ;;  %v488_v34 = vld [vmem:[#allocation2 + $0x338] sm:$0xff] }
 0x251   : > { %v1213_v25 = vpop.f32.mrf.mxu0  ;;  %v1662_v2 = vpop.f32.mrf.mxu1 }
 0x252   : > { %2259 = vst [vmem:[#allocation2 + $0x280] sm:$0xff] %v2003_v58  ;;  %2261 = vst [vmem:[#allocation2 + $0x290] sm:$0xff] %v2005_v19  ;;  %v2004_v20 = vadd.f32 %v1213_v25, %v466_v7  ;;  %v2006_v37 = vadd.f32 %v1662_v2, %v468_v62  ;;  %v489_v58 = vld [vmem:[#allocation2 + $0x340] sm:$0xff]  ;;  %v491_v19 = vld [vmem:[#allocation2 + $0x350] sm:$0xff] }
 0x253   : > { %v1217_v24 = vpop.f32.mrf.mxu0  ;;  %v1666_v29 = vpop.f32.mrf.mxu1 }
 0x254   : > { %2260 = vst [vmem:[#allocation2 + $0x288] sm:$0xff] %v2004_v20  ;;  %2262 = vst [vmem:[#allocation2 + $0x298] sm:$0xff] %v2006_v37  ;;  %v2007_v36 = vadd.f32 %v1217_v24, %v469_v40  ;;  %v2009_v53 = vadd.f32 %v1666_v29, %v471_v61  ;;  %v490_v20 = vld [vmem:[#allocation2 + $0x348] sm:$0xff]  ;;  %v492_v37 = vld [vmem:[#allocation2 + $0x358] sm:$0xff] }
 0x255   : > { %v1219_v23 = vpop.f32.mrf.mxu0  ;;  %v1668_v48 = vpop.f32.mrf.mxu1 }
 0x256   : > { %2263 = vst [vmem:[#allocation2 + $0x2a0] sm:$0xff] %v2007_v36  ;;  %2265 = vst [vmem:[#allocation2 + $0x2b0] sm:$0xff] %v2009_v53  ;;  %v2008_v18 = vadd.f32 %v1219_v23, %v470_v27  ;;  %v2010_v57 = vadd.f32 %v1668_v48, %v472_v6  ;;  %v493_v36 = vld [vmem:[#allocation2 + $0x360] sm:$0xff]  ;;  %v495_v53 = vld [vmem:[#allocation2 + $0x370] sm:$0xff] }
 0x257   : > { %v1223_v63 = vpop.f32.mrf.mxu0  ;;  %v1672_v11 = vpop.f32.mrf.mxu1 }
 0x258   : > { %2264 = vst [vmem:[#allocation2 + $0x2a8] sm:$0xff] %v2008_v18  ;;  %2266 = vst [vmem:[#allocation2 + $0x2b8] sm:$0xff] %v2010_v57  ;;  %v2011_v46 = vadd.f32 %v1223_v63, %v473_v60  ;;  %v2013_v0 = vadd.f32 %v1672_v11, %v475_v8  ;;  %v494_v18 = vld [vmem:[#allocation2 + $0x368] sm:$0xff]  ;;  %v496_v57 = vld [vmem:[#allocation2 + $0x378] sm:$0xff] }
 0x259   : > { %v1225_v30 = vpop.f32.mrf.mxu0  ;;  %v1674_v3 = vpop.f32.mrf.mxu1 }
 0x25a   : > { %2267 = vst [vmem:[#allocation2 + $0x2c0] sm:$0xff] %v2011_v46  ;;  %2269 = vst [vmem:[#allocation2 + $0x2d0] sm:$0xff] %v2013_v0  ;;  %v2012_v41 = vadd.f32 %v1225_v30, %v474_v59  ;;  %v2014_v49 = vadd.f32 %v1674_v3, %v476_v28  ;;  %v497_v46 = vld [vmem:[#allocation2 + $0x380] sm:$0xff]  ;;  %v499_v0 = vld [vmem:[#allocation2 + $0x390] sm:$0xff] }
 0x25b   : > { %v1229_v50 = vpop.f32.mrf.mxu0  ;;  %v1678_v32 = vpop.f32.mrf.mxu1 }
 0x25c   : > { %2268 = vst [vmem:[#allocation2 + $0x2c8] sm:$0xff] %v2012_v41  ;;  %2270 = vst [vmem:[#allocation2 + $0x2d8] sm:$0xff] %v2014_v49  ;;  %v2015_v31 = vadd.f32 %v1229_v50, %v477_v12  ;;  %v2017_v56 = vadd.f32 %v1678_v32, %v479_v55  ;;  %v498_v41 = vld [vmem:[#allocation2 + $0x388] sm:$0xff]  ;;  %v500_v49 = vld [vmem:[#allocation2 + $0x398] sm:$0xff] }
 0x25d   : > { %v1231_v22 = vpop.f32.mrf.mxu0  ;;  %v1680_v33 = vpop.f32.mrf.mxu1 }
 0x25e   : > { %2271 = vst [vmem:[#allocation2 + $0x2e0] sm:$0xff] %v2015_v31  ;;  %2273 = vst [vmem:[#allocation2 + $0x2f0] sm:$0xff] %v2017_v56  ;;  %v2016_v38 = vadd.f32 %v1231_v22, %v478_v4  ;;  %v2018_v17 = vadd.f32 %v1680_v33, %v480_v13  ;;  %v501_v31 = vld [vmem:[#allocation2 + $0x3a0] sm:$0xff]  ;;  %v503_v56 = vld [vmem:[#allocation2 + $0x3b0] sm:$0xff] }
 0x25f   : > { %v1235_v47 = vpop.f32.mrf.mxu0  ;;  %v1684_v21 = vpop.f32.mrf.mxu1 }
 0x260   : > { %2272 = vst [vmem:[#allocation2 + $0x2e8] sm:$0xff] %v2016_v38  ;;  %2274 = vst [vmem:[#allocation2 + $0x2f8] sm:$0xff] %v2018_v17  ;;  %v2019_v10 = vadd.f32 %v1235_v47, %v481_v16  ;;  %v2021_v54 = vadd.f32 %v1684_v21, %v483_v14  ;;  %v502_v38 = vld [vmem:[#allocation2 + $0x3a8] sm:$0xff]  ;;  %v504_v17 = vld [vmem:[#allocation2 + $0x3b8] sm:$0xff] }
 0x261   : > { %v1237_v1 = vpop.f32.mrf.mxu0  ;;  %v1686_v45 = vpop.f32.mrf.mxu1 }
 0x262   : > { %2275 = vst [vmem:[#allocation2 + $0x300] sm:$0xff] %v2019_v10  ;;  %2277 = vst [vmem:[#allocation2 + $0x310] sm:$0xff] %v2021_v54  ;;  %v2020_v15 = vadd.f32 %v1237_v1, %v482_v52  ;;  %v2022_v9 = vadd.f32 %v1686_v45, %v484_v39  ;;  %v505_v10 = vld [vmem:[#allocation2 + $0x3c0] sm:$0xff]  ;;  %v507_v54 = vld [vmem:[#allocation2 + $0x3d0] sm:$0xff] }
 0x263   : > { %v1241_v26 = vpop.f32.mrf.mxu0  ;;  %v1690_v43 = vpop.f32.mrf.mxu1 }
 0x264   : > { %2276 = vst [vmem:[#allocation2 + $0x308] sm:$0xff] %v2020_v15  ;;  %2278 = vst [vmem:[#allocation2 + $0x318] sm:$0xff] %v2022_v9  ;;  %v2023_v44 = vadd.f32 %v1241_v26, %v485_v35  ;;  %v2025_v42 = vadd.f32 %v1690_v43, %v487_v51  ;;  %v506_v15 = vld [vmem:[#allocation2 + $0x3c8] sm:$0xff]  ;;  %v508_v9 = vld [vmem:[#allocation2 + $0x3d8] sm:$0xff] }
 0x265   : > { %v1243_v7 = vpop.f32.mrf.mxu0  ;;  %v1692_v62 = vpop.f32.mrf.mxu1 }
 0x266   : > { %2279 = vst [vmem:[#allocation2 + $0x320] sm:$0xff] %v2023_v44  ;;  %2281 = vst [vmem:[#allocation2 + $0x330] sm:$0xff] %v2025_v42  ;;  %v2024_v25 = vadd.f32 %v1243_v7, %v486_v5  ;;  %v2026_v2 = vadd.f32 %v1692_v62, %v488_v34  ;;  %v509_v44 = vld [vmem:[#allocation2 + $0x3e0] sm:$0xff]  ;;  %v511_v42 = vld [vmem:[#allocation2 + $0x3f0] sm:$0xff] }
 0x267   : > { %v1247_v40 = vpop.f32.mrf.mxu0  ;;  %v1696_v61 = vpop.f32.mrf.mxu1 }
 0x268   : > { %2280 = vst [vmem:[#allocation2 + $0x328] sm:$0xff] %v2024_v25  ;;  %2282 = vst [vmem:[#allocation2 + $0x338] sm:$0xff] %v2026_v2  ;;  %v2027_v24 = vadd.f32 %v1247_v40, %v489_v58  ;;  %v2029_v29 = vadd.f32 %v1696_v61, %v491_v19  ;;  %v510_v25 = vld [vmem:[#allocation2 + $0x3e8] sm:$0xff]  ;;  %v512_v2 = vld [vmem:[#allocation2 + $0x3f8] sm:$0xff] }
 0x269   : > { %v1249_v27 = vpop.f32.mrf.mxu0  ;;  %v1698_v6 = vpop.f32.mrf.mxu1 }
 0x26a   : > { %2283 = vst [vmem:[#allocation2 + $0x340] sm:$0xff] %v2027_v24  ;;  %2285 = vst [vmem:[#allocation2 + $0x350] sm:$0xff] %v2029_v29  ;;  %v2028_v23 = vadd.f32 %v1249_v27, %v490_v20  ;;  %v2030_v48 = vadd.f32 %v1698_v6, %v492_v37  ;;  %v513_v24 = vld [vmem:[#allocation2 + $0x400] sm:$0xff]  ;;  %v515_v29 = vld [vmem:[#allocation2 + $0x410] sm:$0xff] }
 0x26b   : > { %v1253_v60 = vpop.f32.mrf.mxu0  ;;  %v1702_v8 = vpop.f32.mrf.mxu1 }
 0x26c   : > { %2284 = vst [vmem:[#allocation2 + $0x348] sm:$0xff] %v2028_v23  ;;  %2286 = vst [vmem:[#allocation2 + $0x358] sm:$0xff] %v2030_v48  ;;  %v2031_v63 = vadd.f32 %v1253_v60, %v493_v36  ;;  %v2033_v11 = vadd.f32 %v1702_v8, %v495_v53  ;;  %v514_v23 = vld [vmem:[#allocation2 + $0x408] sm:$0xff]  ;;  %v516_v48 = vld [vmem:[#allocation2 + $0x418] sm:$0xff] }
 0x26d   : > { %v1255_v59 = vpop.f32.mrf.mxu0  ;;  %v1704_v28 = vpop.f32.mrf.mxu1 }
 0x26e   : > { %2287 = vst [vmem:[#allocation2 + $0x360] sm:$0xff] %v2031_v63  ;;  %2289 = vst [vmem:[#allocation2 + $0x370] sm:$0xff] %v2033_v11  ;;  %v2032_v30 = vadd.f32 %v1255_v59, %v494_v18  ;;  %v2034_v3 = vadd.f32 %v1704_v28, %v496_v57  ;;  %v517_v63 = vld [vmem:[#allocation2 + $0x420] sm:$0xff]  ;;  %v519_v11 = vld [vmem:[#allocation2 + $0x430] sm:$0xff] }
 0x26f   : > { %v1259_v12 = vpop.f32.mrf.mxu0  ;;  %v1708_v55 = vpop.f32.mrf.mxu1 }
 0x270   : > { %2288 = vst [vmem:[#allocation2 + $0x368] sm:$0xff] %v2032_v30  ;;  %2290 = vst [vmem:[#allocation2 + $0x378] sm:$0xff] %v2034_v3  ;;  %v2035_v50 = vadd.f32 %v1259_v12, %v497_v46  ;;  %v2037_v32 = vadd.f32 %v1708_v55, %v499_v0  ;;  %v518_v30 = vld [vmem:[#allocation2 + $0x428] sm:$0xff]  ;;  %v520_v3 = vld [vmem:[#allocation2 + $0x438] sm:$0xff] }
 0x271   : > { %v1261_v4 = vpop.f32.mrf.mxu0  ;;  %v1710_v13 = vpop.f32.mrf.mxu1 }
 0x272   : > { %2291 = vst [vmem:[#allocation2 + $0x380] sm:$0xff] %v2035_v50  ;;  %2293 = vst [vmem:[#allocation2 + $0x390] sm:$0xff] %v2037_v32  ;;  %v2036_v22 = vadd.f32 %v1261_v4, %v498_v41  ;;  %v2038_v33 = vadd.f32 %v1710_v13, %v500_v49  ;;  %v521_v50 = vld [vmem:[#allocation2 + $0x440] sm:$0xff]  ;;  %v523_v32 = vld [vmem:[#allocation2 + $0x450] sm:$0xff] }
 0x273   : > { %v1265_v16 = vpop.f32.mrf.mxu0  ;;  %v1714_v14 = vpop.f32.mrf.mxu1 }
 0x274   : > { %2292 = vst [vmem:[#allocation2 + $0x388] sm:$0xff] %v2036_v22  ;;  %2294 = vst [vmem:[#allocation2 + $0x398] sm:$0xff] %v2038_v33  ;;  %v2039_v47 = vadd.f32 %v1265_v16, %v501_v31  ;;  %v2041_v21 = vadd.f32 %v1714_v14, %v503_v56  ;;  %v522_v22 = vld [vmem:[#allocation2 + $0x448] sm:$0xff]  ;;  %v524_v33 = vld [vmem:[#allocation2 + $0x458] sm:$0xff] }
 0x275   : > { %v1267_v52 = vpop.f32.mrf.mxu0  ;;  %v1716_v39 = vpop.f32.mrf.mxu1 }
 0x276   : > { %2295 = vst [vmem:[#allocation2 + $0x3a0] sm:$0xff] %v2039_v47  ;;  %2297 = vst [vmem:[#allocation2 + $0x3b0] sm:$0xff] %v2041_v21  ;;  %v2040_v1 = vadd.f32 %v1267_v52, %v502_v38  ;;  %v2042_v45 = vadd.f32 %v1716_v39, %v504_v17  ;;  %v525_v47 = vld [vmem:[#allocation2 + $0x460] sm:$0xff]  ;;  %v527_v21 = vld [vmem:[#allocation2 + $0x470] sm:$0xff] }
 0x277   : > { %v1271_v35 = vpop.f32.mrf.mxu0  ;;  %v1720_v51 = vpop.f32.mrf.mxu1 }
 0x278   : > { %2296 = vst [vmem:[#allocation2 + $0x3a8] sm:$0xff] %v2040_v1  ;;  %2298 = vst [vmem:[#allocation2 + $0x3b8] sm:$0xff] %v2042_v45  ;;  %v2043_v26 = vadd.f32 %v1271_v35, %v505_v10  ;;  %v2045_v43 = vadd.f32 %v1720_v51, %v507_v54  ;;  %v526_v1 = vld [vmem:[#allocation2 + $0x468] sm:$0xff]  ;;  %v528_v45 = vld [vmem:[#allocation2 + $0x478] sm:$0xff] }
 0x279   : > { %v1273_v5 = vpop.f32.mrf.mxu0  ;;  %v1722_v34 = vpop.f32.mrf.mxu1 }
 0x27a   : > { %2299 = vst [vmem:[#allocation2 + $0x3c0] sm:$0xff] %v2043_v26  ;;  %2301 = vst [vmem:[#allocation2 + $0x3d0] sm:$0xff] %v2045_v43  ;;  %v2044_v7 = vadd.f32 %v1273_v5, %v506_v15  ;;  %v2046_v62 = vadd.f32 %v1722_v34, %v508_v9  ;;  %v529_v26 = vld [vmem:[#allocation2 + $0x480] sm:$0xff]  ;;  %v531_v43 = vld [vmem:[#allocation2 + $0x490] sm:$0xff] }
 0x27b   : > { %v1277_v58 = vpop.f32.mrf.mxu0  ;;  %v1726_v19 = vpop.f32.mrf.mxu1 }
 0x27c   : > { %2300 = vst [vmem:[#allocation2 + $0x3c8] sm:$0xff] %v2044_v7  ;;  %2302 = vst [vmem:[#allocation2 + $0x3d8] sm:$0xff] %v2046_v62  ;;  %v2047_v40 = vadd.f32 %v1277_v58, %v509_v44  ;;  %v2049_v61 = vadd.f32 %v1726_v19, %v511_v42  ;;  %v530_v7 = vld [vmem:[#allocation2 + $0x488] sm:$0xff]  ;;  %v532_v62 = vld [vmem:[#allocation2 + $0x498] sm:$0xff] }
 0x27d   : > { %v1279_v20 = vpop.f32.mrf.mxu0  ;;  %v1728_v37 = vpop.f32.mrf.mxu1 }
 0x27e   : > { %2303 = vst [vmem:[#allocation2 + $0x3e0] sm:$0xff] %v2047_v40  ;;  %2305 = vst [vmem:[#allocation2 + $0x3f0] sm:$0xff] %v2049_v61  ;;  %v2048_v27 = vadd.f32 %v1279_v20, %v510_v25  ;;  %v2050_v6 = vadd.f32 %v1728_v37, %v512_v2  ;;  %v533_v40 = vld [vmem:[#allocation2 + $0x4a0] sm:$0xff]  ;;  %v535_v61 = vld [vmem:[#allocation2 + $0x4b0] sm:$0xff] }
 0x27f   : > { %v1283_v36 = vpop.f32.mrf.mxu0  ;;  %v1732_v53 = vpop.f32.mrf.mxu1 }
 0x280   : > { %2304 = vst [vmem:[#allocation2 + $0x3e8] sm:$0xff] %v2048_v27  ;;  %2306 = vst [vmem:[#allocation2 + $0x3f8] sm:$0xff] %v2050_v6  ;;  %v2051_v60 = vadd.f32 %v1283_v36, %v513_v24  ;;  %v2053_v8 = vadd.f32 %v1732_v53, %v515_v29  ;;  %v534_v27 = vld [vmem:[#allocation2 + $0x4a8] sm:$0xff]  ;;  %v536_v6 = vld [vmem:[#allocation2 + $0x4b8] sm:$0xff] }
 0x281   : > { %v1285_v18 = vpop.f32.mrf.mxu0  ;;  %v1734_v57 = vpop.f32.mrf.mxu1 }
 0x282   : > { %2307 = vst [vmem:[#allocation2 + $0x400] sm:$0xff] %v2051_v60  ;;  %2309 = vst [vmem:[#allocation2 + $0x410] sm:$0xff] %v2053_v8  ;;  %v2052_v59 = vadd.f32 %v1285_v18, %v514_v23  ;;  %v2054_v28 = vadd.f32 %v1734_v57, %v516_v48  ;;  %v537_v60 = vld [vmem:[#allocation2 + $0x4c0] sm:$0xff]  ;;  %v539_v8 = vld [vmem:[#allocation2 + $0x4d0] sm:$0xff] }
 0x283   : > { %v1289_v46 = vpop.f32.mrf.mxu0  ;;  %v1738_v0 = vpop.f32.mrf.mxu1 }
 0x284   : > { %2308 = vst [vmem:[#allocation2 + $0x408] sm:$0xff] %v2052_v59  ;;  %2310 = vst [vmem:[#allocation2 + $0x418] sm:$0xff] %v2054_v28  ;;  %v2055_v12 = vadd.f32 %v1289_v46, %v517_v63  ;;  %v2057_v55 = vadd.f32 %v1738_v0, %v519_v11  ;;  %v538_v59 = vld [vmem:[#allocation2 + $0x4c8] sm:$0xff]  ;;  %v540_v28 = vld [vmem:[#allocation2 + $0x4d8] sm:$0xff] }
 0x285   : > { %v1291_v41 = vpop.f32.mrf.mxu0  ;;  %v1740_v49 = vpop.f32.mrf.mxu1 }
 0x286   : > { %2311 = vst [vmem:[#allocation2 + $0x420] sm:$0xff] %v2055_v12  ;;  %2313 = vst [vmem:[#allocation2 + $0x430] sm:$0xff] %v2057_v55  ;;  %v2056_v4 = vadd.f32 %v1291_v41, %v518_v30  ;;  %v2058_v13 = vadd.f32 %v1740_v49, %v520_v3  ;;  %v541_v12 = vld [vmem:[#allocation2 + $0x4e0] sm:$0xff]  ;;  %v543_v55 = vld [vmem:[#allocation2 + $0x4f0] sm:$0xff] }
 0x287   : > { %v1295_v31 = vpop.f32.mrf.mxu0  ;;  %v1744_v56 = vpop.f32.mrf.mxu1 }
 0x288   : > { %2312 = vst [vmem:[#allocation2 + $0x428] sm:$0xff] %v2056_v4  ;;  %2314 = vst [vmem:[#allocation2 + $0x438] sm:$0xff] %v2058_v13  ;;  %v2059_v16 = vadd.f32 %v1295_v31, %v521_v50  ;;  %v2061_v14 = vadd.f32 %v1744_v56, %v523_v32  ;;  %v542_v4 = vld [vmem:[#allocation2 + $0x4e8] sm:$0xff]  ;;  %v544_v13 = vld [vmem:[#allocation2 + $0x4f8] sm:$0xff] }
 0x289   : > { %v1297_v38 = vpop.f32.mrf.mxu0  ;;  %v1746_v17 = vpop.f32.mrf.mxu1 }
 0x28a   : > { %2315 = vst [vmem:[#allocation2 + $0x440] sm:$0xff] %v2059_v16  ;;  %2317 = vst [vmem:[#allocation2 + $0x450] sm:$0xff] %v2061_v14  ;;  %v2060_v52 = vadd.f32 %v1297_v38, %v522_v22  ;;  %v2062_v39 = vadd.f32 %v1746_v17, %v524_v33  ;;  %v545_v16 = vld [vmem:[#allocation2 + $0x500] sm:$0xff]  ;;  %v547_v14 = vld [vmem:[#allocation2 + $0x510] sm:$0xff] }
 0x28b   : > { %v1301_v10 = vpop.f32.mrf.mxu0  ;;  %v1750_v54 = vpop.f32.mrf.mxu1 }
 0x28c   : > { %2316 = vst [vmem:[#allocation2 + $0x448] sm:$0xff] %v2060_v52  ;;  %2318 = vst [vmem:[#allocation2 + $0x458] sm:$0xff] %v2062_v39  ;;  %v2063_v35 = vadd.f32 %v1301_v10, %v525_v47  ;;  %v2065_v51 = vadd.f32 %v1750_v54, %v527_v21  ;;  %v546_v52 = vld [vmem:[#allocation2 + $0x508] sm:$0xff]  ;;  %v548_v39 = vld [vmem:[#allocation2 + $0x518] sm:$0xff] }
 0x28d   : > { %v1303_v15 = vpop.f32.mrf.mxu0  ;;  %v1752_v9 = vpop.f32.mrf.mxu1 }
 0x28e   : > { %2319 = vst [vmem:[#allocation2 + $0x460] sm:$0xff] %v2063_v35  ;;  %2321 = vst [vmem:[#allocation2 + $0x470] sm:$0xff] %v2065_v51  ;;  %v2064_v5 = vadd.f32 %v1303_v15, %v526_v1  ;;  %v2066_v34 = vadd.f32 %v1752_v9, %v528_v45  ;;  %v549_v35 = vld [vmem:[#allocation2 + $0x520] sm:$0xff]  ;;  %v551_v51 = vld [vmem:[#allocation2 + $0x530] sm:$0xff] }
 0x28f   : > { %v1307_v44 = vpop.f32.mrf.mxu0  ;;  %v1756_v42 = vpop.f32.mrf.mxu1 }
 0x290   : > { %2320 = vst [vmem:[#allocation2 + $0x468] sm:$0xff] %v2064_v5  ;;  %2322 = vst [vmem:[#allocation2 + $0x478] sm:$0xff] %v2066_v34  ;;  %v2067_v58 = vadd.f32 %v1307_v44, %v529_v26  ;;  %v2069_v19 = vadd.f32 %v1756_v42, %v531_v43  ;;  %v550_v5 = vld [vmem:[#allocation2 + $0x528] sm:$0xff]  ;;  %v552_v34 = vld [vmem:[#allocation2 + $0x538] sm:$0xff] }
 0x291   : > { %v1309_v25 = vpop.f32.mrf.mxu0  ;;  %v1758_v2 = vpop.f32.mrf.mxu1 }
 0x292   : > { %2323 = vst [vmem:[#allocation2 + $0x480] sm:$0xff] %v2067_v58  ;;  %2325 = vst [vmem:[#allocation2 + $0x490] sm:$0xff] %v2069_v19  ;;  %v2068_v20 = vadd.f32 %v1309_v25, %v530_v7  ;;  %v2070_v37 = vadd.f32 %v1758_v2, %v532_v62  ;;  %v553_v58 = vld [vmem:[#allocation2 + $0x540] sm:$0xff]  ;;  %v555_v19 = vld [vmem:[#allocation2 + $0x550] sm:$0xff] }
 0x293   : > { %v1313_v24 = vpop.f32.mrf.mxu0  ;;  %v1762_v29 = vpop.f32.mrf.mxu1 }
 0x294   : > { %2324 = vst [vmem:[#allocation2 + $0x488] sm:$0xff] %v2068_v20  ;;  %2326 = vst [vmem:[#allocation2 + $0x498] sm:$0xff] %v2070_v37  ;;  %v2071_v36 = vadd.f32 %v1313_v24, %v533_v40  ;;  %v2073_v53 = vadd.f32 %v1762_v29, %v535_v61  ;;  %v554_v20 = vld [vmem:[#allocation2 + $0x548] sm:$0xff]  ;;  %v556_v37 = vld [vmem:[#allocation2 + $0x558] sm:$0xff] }
 0x295   : > { %v1315_v23 = vpop.f32.mrf.mxu0  ;;  %v1764_v48 = vpop.f32.mrf.mxu1 }
 0x296   : > { %2327 = vst [vmem:[#allocation2 + $0x4a0] sm:$0xff] %v2071_v36  ;;  %2329 = vst [vmem:[#allocation2 + $0x4b0] sm:$0xff] %v2073_v53  ;;  %v2072_v18 = vadd.f32 %v1315_v23, %v534_v27  ;;  %v2074_v57 = vadd.f32 %v1764_v48, %v536_v6  ;;  %v557_v36 = vld [vmem:[#allocation2 + $0x560] sm:$0xff]  ;;  %v559_v53 = vld [vmem:[#allocation2 + $0x570] sm:$0xff] }
 0x297   : > { %v1319_v63 = vpop.f32.mrf.mxu0  ;;  %v1768_v11 = vpop.f32.mrf.mxu1 }
 0x298   : > { %2328 = vst [vmem:[#allocation2 + $0x4a8] sm:$0xff] %v2072_v18  ;;  %2330 = vst [vmem:[#allocation2 + $0x4b8] sm:$0xff] %v2074_v57  ;;  %v2075_v46 = vadd.f32 %v1319_v63, %v537_v60  ;;  %v2077_v0 = vadd.f32 %v1768_v11, %v539_v8  ;;  %v558_v18 = vld [vmem:[#allocation2 + $0x568] sm:$0xff]  ;;  %v560_v57 = vld [vmem:[#allocation2 + $0x578] sm:$0xff] }
 0x299   : > { %v1321_v30 = vpop.f32.mrf.mxu0  ;;  %v1770_v3 = vpop.f32.mrf.mxu1 }
 0x29a   : > { %2331 = vst [vmem:[#allocation2 + $0x4c0] sm:$0xff] %v2075_v46  ;;  %2333 = vst [vmem:[#allocation2 + $0x4d0] sm:$0xff] %v2077_v0  ;;  %v2076_v41 = vadd.f32 %v1321_v30, %v538_v59  ;;  %v2078_v49 = vadd.f32 %v1770_v3, %v540_v28  ;;  %v561_v46 = vld [vmem:[#allocation2 + $0x580] sm:$0xff]  ;;  %v563_v0 = vld [vmem:[#allocation2 + $0x590] sm:$0xff] }
 0x29b   : > { %v1325_v50 = vpop.f32.mrf.mxu0  ;;  %v1774_v32 = vpop.f32.mrf.mxu1 }
 0x29c   : > { %2332 = vst [vmem:[#allocation2 + $0x4c8] sm:$0xff] %v2076_v41  ;;  %2334 = vst [vmem:[#allocation2 + $0x4d8] sm:$0xff] %v2078_v49  ;;  %v2079_v31 = vadd.f32 %v1325_v50, %v541_v12  ;;  %v2081_v56 = vadd.f32 %v1774_v32, %v543_v55  ;;  %v562_v41 = vld [vmem:[#allocation2 + $0x588] sm:$0xff]  ;;  %v564_v49 = vld [vmem:[#allocation2 + $0x598] sm:$0xff] }
 0x29d   : > { %v1327_v22 = vpop.f32.mrf.mxu0  ;;  %v1776_v33 = vpop.f32.mrf.mxu1 }
 0x29e   : > { %2335 = vst [vmem:[#allocation2 + $0x4e0] sm:$0xff] %v2079_v31  ;;  %2337 = vst [vmem:[#allocation2 + $0x4f0] sm:$0xff] %v2081_v56  ;;  %v2080_v38 = vadd.f32 %v1327_v22, %v542_v4  ;;  %v2082_v17 = vadd.f32 %v1776_v33, %v544_v13  ;;  %v565_v31 = vld [vmem:[#allocation2 + $0x5a0] sm:$0xff]  ;;  %v567_v56 = vld [vmem:[#allocation2 + $0x5b0] sm:$0xff] }
 0x29f   : > { %v1331_v47 = vpop.f32.mrf.mxu0  ;;  %v1780_v21 = vpop.f32.mrf.mxu1 }
 0x2a0   : > { %2336 = vst [vmem:[#allocation2 + $0x4e8] sm:$0xff] %v2080_v38  ;;  %2338 = vst [vmem:[#allocation2 + $0x4f8] sm:$0xff] %v2082_v17  ;;  %v2083_v10 = vadd.f32 %v1331_v47, %v545_v16  ;;  %v2085_v54 = vadd.f32 %v1780_v21, %v547_v14  ;;  %v566_v38 = vld [vmem:[#allocation2 + $0x5a8] sm:$0xff]  ;;  %v568_v17 = vld [vmem:[#allocation2 + $0x5b8] sm:$0xff] }
 0x2a1   : > { %v1333_v1 = vpop.f32.mrf.mxu0  ;;  %v1782_v45 = vpop.f32.mrf.mxu1 }
 0x2a2   : > { %2339 = vst [vmem:[#allocation2 + $0x500] sm:$0xff] %v2083_v10  ;;  %2341 = vst [vmem:[#allocation2 + $0x510] sm:$0xff] %v2085_v54  ;;  %v2084_v15 = vadd.f32 %v1333_v1, %v546_v52  ;;  %v2086_v9 = vadd.f32 %v1782_v45, %v548_v39  ;;  %v569_v10 = vld [vmem:[#allocation2 + $0x5c0] sm:$0xff]  ;;  %v571_v54 = vld [vmem:[#allocation2 + $0x5d0] sm:$0xff] }
 0x2a3   : > { %v1337_v26 = vpop.f32.mrf.mxu0  ;;  %v1786_v43 = vpop.f32.mrf.mxu1 }
 0x2a4   : > { %2340 = vst [vmem:[#allocation2 + $0x508] sm:$0xff] %v2084_v15  ;;  %2342 = vst [vmem:[#allocation2 + $0x518] sm:$0xff] %v2086_v9  ;;  %v2087_v44 = vadd.f32 %v1337_v26, %v549_v35  ;;  %v2089_v42 = vadd.f32 %v1786_v43, %v551_v51  ;;  %v570_v15 = vld [vmem:[#allocation2 + $0x5c8] sm:$0xff]  ;;  %v572_v9 = vld [vmem:[#allocation2 + $0x5d8] sm:$0xff] }
 0x2a5   : > { %v1339_v7 = vpop.f32.mrf.mxu0  ;;  %v1788_v62 = vpop.f32.mrf.mxu1 }
 0x2a6   : > { %2343 = vst [vmem:[#allocation2 + $0x520] sm:$0xff] %v2087_v44  ;;  %2345 = vst [vmem:[#allocation2 + $0x530] sm:$0xff] %v2089_v42  ;;  %v2088_v25 = vadd.f32 %v1339_v7, %v550_v5  ;;  %v2090_v2 = vadd.f32 %v1788_v62, %v552_v34  ;;  %v573_v44 = vld [vmem:[#allocation2 + $0x5e0] sm:$0xff]  ;;  %v575_v42 = vld [vmem:[#allocation2 + $0x5f0] sm:$0xff] }
 0x2a7   : > { %v1343_v40 = vpop.f32.mrf.mxu0  ;;  %v1792_v61 = vpop.f32.mrf.mxu1 }
 0x2a8   : > { %2344 = vst [vmem:[#allocation2 + $0x528] sm:$0xff] %v2088_v25  ;;  %2346 = vst [vmem:[#allocation2 + $0x538] sm:$0xff] %v2090_v2  ;;  %v2091_v24 = vadd.f32 %v1343_v40, %v553_v58  ;;  %v2093_v29 = vadd.f32 %v1792_v61, %v555_v19  ;;  %v574_v25 = vld [vmem:[#allocation2 + $0x5e8] sm:$0xff]  ;;  %v576_v2 = vld [vmem:[#allocation2 + $0x5f8] sm:$0xff] }
 0x2a9   : > { %v1345_v27 = vpop.f32.mrf.mxu0  ;;  %v1794_v6 = vpop.f32.mrf.mxu1 }
 0x2aa   : > { %2347 = vst [vmem:[#allocation2 + $0x540] sm:$0xff] %v2091_v24  ;;  %2349 = vst [vmem:[#allocation2 + $0x550] sm:$0xff] %v2093_v29  ;;  %v2092_v23 = vadd.f32 %v1345_v27, %v554_v20  ;;  %v2094_v48 = vadd.f32 %v1794_v6, %v556_v37  ;;  %v577_v24 = vld [vmem:[#allocation2 + $0x600] sm:$0xff]  ;;  %v579_v29 = vld [vmem:[#allocation2 + $0x610] sm:$0xff] }
 0x2ab   : > { %v1349_v60 = vpop.f32.mrf.mxu0  ;;  %v1798_v8 = vpop.f32.mrf.mxu1 }
 0x2ac   : > { %2348 = vst [vmem:[#allocation2 + $0x548] sm:$0xff] %v2092_v23  ;;  %2350 = vst [vmem:[#allocation2 + $0x558] sm:$0xff] %v2094_v48  ;;  %v2095_v63 = vadd.f32 %v1349_v60, %v557_v36  ;;  %v2097_v11 = vadd.f32 %v1798_v8, %v559_v53  ;;  %v578_v23 = vld [vmem:[#allocation2 + $0x608] sm:$0xff]  ;;  %v580_v48 = vld [vmem:[#allocation2 + $0x618] sm:$0xff] }
 0x2ad   : > { %v1351_v59 = vpop.f32.mrf.mxu0  ;;  %v1800_v28 = vpop.f32.mrf.mxu1 }
 0x2ae   : > { %2351 = vst [vmem:[#allocation2 + $0x560] sm:$0xff] %v2095_v63  ;;  %2353 = vst [vmem:[#allocation2 + $0x570] sm:$0xff] %v2097_v11  ;;  %v2096_v30 = vadd.f32 %v1351_v59, %v558_v18  ;;  %v2098_v3 = vadd.f32 %v1800_v28, %v560_v57  ;;  %v581_v63 = vld [vmem:[#allocation2 + $0x620] sm:$0xff]  ;;  %v583_v11 = vld [vmem:[#allocation2 + $0x630] sm:$0xff] }
 0x2af   : > { %v1355_v12 = vpop.f32.mrf.mxu0  ;;  %v1804_v55 = vpop.f32.mrf.mxu1 }
 0x2b0   : > { %2352 = vst [vmem:[#allocation2 + $0x568] sm:$0xff] %v2096_v30  ;;  %2354 = vst [vmem:[#allocation2 + $0x578] sm:$0xff] %v2098_v3  ;;  %v2099_v50 = vadd.f32 %v1355_v12, %v561_v46  ;;  %v2101_v32 = vadd.f32 %v1804_v55, %v563_v0  ;;  %v582_v30 = vld [vmem:[#allocation2 + $0x628] sm:$0xff]  ;;  %v584_v3 = vld [vmem:[#allocation2 + $0x638] sm:$0xff] }
 0x2b1   : > { %v1357_v4 = vpop.f32.mrf.mxu0  ;;  %v1806_v13 = vpop.f32.mrf.mxu1 }
 0x2b2   : > { %2355 = vst [vmem:[#allocation2 + $0x580] sm:$0xff] %v2099_v50  ;;  %2357 = vst [vmem:[#allocation2 + $0x590] sm:$0xff] %v2101_v32  ;;  %v2100_v22 = vadd.f32 %v1357_v4, %v562_v41  ;;  %v2102_v33 = vadd.f32 %v1806_v13, %v564_v49  ;;  %v585_v50 = vld [vmem:[#allocation2 + $0x640] sm:$0xff]  ;;  %v587_v32 = vld [vmem:[#allocation2 + $0x650] sm:$0xff] }
 0x2b3   : > { %v1361_v16 = vpop.f32.mrf.mxu0  ;;  %v1810_v14 = vpop.f32.mrf.mxu1 }
 0x2b4   : > { %2356 = vst [vmem:[#allocation2 + $0x588] sm:$0xff] %v2100_v22  ;;  %2358 = vst [vmem:[#allocation2 + $0x598] sm:$0xff] %v2102_v33  ;;  %v2103_v47 = vadd.f32 %v1361_v16, %v565_v31  ;;  %v2105_v21 = vadd.f32 %v1810_v14, %v567_v56  ;;  %v586_v22 = vld [vmem:[#allocation2 + $0x648] sm:$0xff]  ;;  %v588_v33 = vld [vmem:[#allocation2 + $0x658] sm:$0xff] }
 0x2b5   : > { %v1363_v52 = vpop.f32.mrf.mxu0  ;;  %v1812_v39 = vpop.f32.mrf.mxu1 }
 0x2b6   : > { %2359 = vst [vmem:[#allocation2 + $0x5a0] sm:$0xff] %v2103_v47  ;;  %2361 = vst [vmem:[#allocation2 + $0x5b0] sm:$0xff] %v2105_v21  ;;  %v2104_v1 = vadd.f32 %v1363_v52, %v566_v38  ;;  %v2106_v45 = vadd.f32 %v1812_v39, %v568_v17  ;;  %v589_v47 = vld [vmem:[#allocation2 + $0x660] sm:$0xff]  ;;  %v591_v21 = vld [vmem:[#allocation2 + $0x670] sm:$0xff] }
 0x2b7   : > { %v1367_v35 = vpop.f32.mrf.mxu0  ;;  %v1816_v51 = vpop.f32.mrf.mxu1 }
 0x2b8   : > { %2360 = vst [vmem:[#allocation2 + $0x5a8] sm:$0xff] %v2104_v1  ;;  %2362 = vst [vmem:[#allocation2 + $0x5b8] sm:$0xff] %v2106_v45  ;;  %v2107_v26 = vadd.f32 %v1367_v35, %v569_v10  ;;  %v2109_v43 = vadd.f32 %v1816_v51, %v571_v54  ;;  %v590_v1 = vld [vmem:[#allocation2 + $0x668] sm:$0xff]  ;;  %v592_v45 = vld [vmem:[#allocation2 + $0x678] sm:$0xff] }
 0x2b9   : > { %v1369_v5 = vpop.f32.mrf.mxu0  ;;  %v1818_v34 = vpop.f32.mrf.mxu1 }
 0x2ba   : > { %2363 = vst [vmem:[#allocation2 + $0x5c0] sm:$0xff] %v2107_v26  ;;  %2365 = vst [vmem:[#allocation2 + $0x5d0] sm:$0xff] %v2109_v43  ;;  %v2108_v7 = vadd.f32 %v1369_v5, %v570_v15  ;;  %v2110_v62 = vadd.f32 %v1818_v34, %v572_v9  ;;  %v593_v26 = vld [vmem:[#allocation2 + $0x680] sm:$0xff]  ;;  %v595_v43 = vld [vmem:[#allocation2 + $0x690] sm:$0xff] }
 0x2bb   : > { %v1373_v58 = vpop.f32.mrf.mxu0  ;;  %v1822_v19 = vpop.f32.mrf.mxu1 }
 0x2bc   : > { %2364 = vst [vmem:[#allocation2 + $0x5c8] sm:$0xff] %v2108_v7  ;;  %2366 = vst [vmem:[#allocation2 + $0x5d8] sm:$0xff] %v2110_v62  ;;  %v2111_v40 = vadd.f32 %v1373_v58, %v573_v44  ;;  %v2113_v61 = vadd.f32 %v1822_v19, %v575_v42  ;;  %v594_v7 = vld [vmem:[#allocation2 + $0x688] sm:$0xff]  ;;  %v596_v62 = vld [vmem:[#allocation2 + $0x698] sm:$0xff] }
 0x2bd   : > { %v1375_v20 = vpop.f32.mrf.mxu0  ;;  %v1824_v37 = vpop.f32.mrf.mxu1 }
 0x2be   : > { %2367 = vst [vmem:[#allocation2 + $0x5e0] sm:$0xff] %v2111_v40  ;;  %2369 = vst [vmem:[#allocation2 + $0x5f0] sm:$0xff] %v2113_v61  ;;  %v2112_v27 = vadd.f32 %v1375_v20, %v574_v25  ;;  %v2114_v6 = vadd.f32 %v1824_v37, %v576_v2  ;;  %v597_v40 = vld [vmem:[#allocation2 + $0x6a0] sm:$0xff]  ;;  %v599_v61 = vld [vmem:[#allocation2 + $0x6b0] sm:$0xff] }
 0x2bf   : > { %v1379_v36 = vpop.f32.mrf.mxu0  ;;  %v1828_v53 = vpop.f32.mrf.mxu1 }
 0x2c0   : > { %2368 = vst [vmem:[#allocation2 + $0x5e8] sm:$0xff] %v2112_v27  ;;  %2370 = vst [vmem:[#allocation2 + $0x5f8] sm:$0xff] %v2114_v6  ;;  %v2115_v60 = vadd.f32 %v1379_v36, %v577_v24  ;;  %v2117_v8 = vadd.f32 %v1828_v53, %v579_v29  ;;  %v598_v27 = vld [vmem:[#allocation2 + $0x6a8] sm:$0xff]  ;;  %v600_v6 = vld [vmem:[#allocation2 + $0x6b8] sm:$0xff] }
 0x2c1   : > { %v1381_v18 = vpop.f32.mrf.mxu0  ;;  %v1830_v57 = vpop.f32.mrf.mxu1 }
 0x2c2   : > { %2371 = vst [vmem:[#allocation2 + $0x600] sm:$0xff] %v2115_v60  ;;  %2373 = vst [vmem:[#allocation2 + $0x610] sm:$0xff] %v2117_v8  ;;  %v2116_v59 = vadd.f32 %v1381_v18, %v578_v23  ;;  %v2118_v28 = vadd.f32 %v1830_v57, %v580_v48  ;;  %v601_v60 = vld [vmem:[#allocation2 + $0x6c0] sm:$0xff]  ;;  %v603_v8 = vld [vmem:[#allocation2 + $0x6d0] sm:$0xff] }
 0x2c3   : > { %v1385_v46 = vpop.f32.mrf.mxu0  ;;  %v1834_v0 = vpop.f32.mrf.mxu1 }
 0x2c4   : > { %2372 = vst [vmem:[#allocation2 + $0x608] sm:$0xff] %v2116_v59  ;;  %2374 = vst [vmem:[#allocation2 + $0x618] sm:$0xff] %v2118_v28  ;;  %v2119_v12 = vadd.f32 %v1385_v46, %v581_v63  ;;  %v2121_v55 = vadd.f32 %v1834_v0, %v583_v11  ;;  %v602_v59 = vld [vmem:[#allocation2 + $0x6c8] sm:$0xff]  ;;  %v604_v28 = vld [vmem:[#allocation2 + $0x6d8] sm:$0xff] }
 0x2c5   : > { %v1387_v41 = vpop.f32.mrf.mxu0  ;;  %v1836_v49 = vpop.f32.mrf.mxu1 }
 0x2c6   : > { %2375 = vst [vmem:[#allocation2 + $0x620] sm:$0xff] %v2119_v12  ;;  %2377 = vst [vmem:[#allocation2 + $0x630] sm:$0xff] %v2121_v55  ;;  %v2120_v4 = vadd.f32 %v1387_v41, %v582_v30  ;;  %v2122_v13 = vadd.f32 %v1836_v49, %v584_v3  ;;  %v605_v12 = vld [vmem:[#allocation2 + $0x6e0] sm:$0xff]  ;;  %v607_v55 = vld [vmem:[#allocation2 + $0x6f0] sm:$0xff] }
 0x2c7   : > { %v1391_v31 = vpop.f32.mrf.mxu0  ;;  %v1840_v56 = vpop.f32.mrf.mxu1 }
 0x2c8   : > { %2376 = vst [vmem:[#allocation2 + $0x628] sm:$0xff] %v2120_v4  ;;  %2378 = vst [vmem:[#allocation2 + $0x638] sm:$0xff] %v2122_v13  ;;  %v2123_v16 = vadd.f32 %v1391_v31, %v585_v50  ;;  %v2125_v14 = vadd.f32 %v1840_v56, %v587_v32  ;;  %v606_v4 = vld [vmem:[#allocation2 + $0x6e8] sm:$0xff]  ;;  %v608_v13 = vld [vmem:[#allocation2 + $0x6f8] sm:$0xff] }
 0x2c9   : > { %v1393_v38 = vpop.f32.mrf.mxu0  ;;  %v1842_v17 = vpop.f32.mrf.mxu1 }
 0x2ca   : > { %2379 = vst [vmem:[#allocation2 + $0x640] sm:$0xff] %v2123_v16  ;;  %2381 = vst [vmem:[#allocation2 + $0x650] sm:$0xff] %v2125_v14  ;;  %v2124_v52 = vadd.f32 %v1393_v38, %v586_v22  ;;  %v2126_v39 = vadd.f32 %v1842_v17, %v588_v33  ;;  %v609_v16 = vld [vmem:[#allocation2 + $0x700] sm:$0xff]  ;;  %v611_v14 = vld [vmem:[#allocation2 + $0x710] sm:$0xff] }
 0x2cb   : > { %v1397_v10 = vpop.f32.mrf.mxu0  ;;  %v1846_v54 = vpop.f32.mrf.mxu1 }
 0x2cc   : > { %2380 = vst [vmem:[#allocation2 + $0x648] sm:$0xff] %v2124_v52  ;;  %2382 = vst [vmem:[#allocation2 + $0x658] sm:$0xff] %v2126_v39  ;;  %v2127_v35 = vadd.f32 %v1397_v10, %v589_v47  ;;  %v2129_v51 = vadd.f32 %v1846_v54, %v591_v21  ;;  %v610_v52 = vld [vmem:[#allocation2 + $0x708] sm:$0xff]  ;;  %v612_v39 = vld [vmem:[#allocation2 + $0x718] sm:$0xff] }
 0x2cd   : > { %v1399_v15 = vpop.f32.mrf.mxu0  ;;  %v1848_v9 = vpop.f32.mrf.mxu1 }
 0x2ce   : > { %2383 = vst [vmem:[#allocation2 + $0x660] sm:$0xff] %v2127_v35  ;;  %2385 = vst [vmem:[#allocation2 + $0x670] sm:$0xff] %v2129_v51  ;;  %v2128_v5 = vadd.f32 %v1399_v15, %v590_v1  ;;  %v2130_v34 = vadd.f32 %v1848_v9, %v592_v45  ;;  %v613_v35 = vld [vmem:[#allocation2 + $0x720] sm:$0xff]  ;;  %v615_v51 = vld [vmem:[#allocation2 + $0x730] sm:$0xff] }
 0x2cf   : > { %v1403_v44 = vpop.f32.mrf.mxu0  ;;  %v1852_v42 = vpop.f32.mrf.mxu1 }
 0x2d0   : > { %2384 = vst [vmem:[#allocation2 + $0x668] sm:$0xff] %v2128_v5  ;;  %2386 = vst [vmem:[#allocation2 + $0x678] sm:$0xff] %v2130_v34  ;;  %v2131_v58 = vadd.f32 %v1403_v44, %v593_v26  ;;  %v2133_v19 = vadd.f32 %v1852_v42, %v595_v43  ;;  %v614_v5 = vld [vmem:[#allocation2 + $0x728] sm:$0xff]  ;;  %v616_v34 = vld [vmem:[#allocation2 + $0x738] sm:$0xff] }
 0x2d1   : > { %v1405_v25 = vpop.f32.mrf.mxu0  ;;  %v1854_v2 = vpop.f32.mrf.mxu1 }
 0x2d2   : > { %2387 = vst [vmem:[#allocation2 + $0x680] sm:$0xff] %v2131_v58  ;;  %2389 = vst [vmem:[#allocation2 + $0x690] sm:$0xff] %v2133_v19  ;;  %v2132_v20 = vadd.f32 %v1405_v25, %v594_v7  ;;  %v2134_v37 = vadd.f32 %v1854_v2, %v596_v62  ;;  %v617_v58 = vld [vmem:[#allocation2 + $0x740] sm:$0xff]  ;;  %v619_v19 = vld [vmem:[#allocation2 + $0x750] sm:$0xff] }
 0x2d3   : > { %v1409_v24 = vpop.f32.mrf.mxu0  ;;  %v1858_v29 = vpop.f32.mrf.mxu1 }
 0x2d4   : > { %2388 = vst [vmem:[#allocation2 + $0x688] sm:$0xff] %v2132_v20  ;;  %2390 = vst [vmem:[#allocation2 + $0x698] sm:$0xff] %v2134_v37  ;;  %v2135_v36 = vadd.f32 %v1409_v24, %v597_v40  ;;  %v2137_v53 = vadd.f32 %v1858_v29, %v599_v61  ;;  %v618_v20 = vld [vmem:[#allocation2 + $0x748] sm:$0xff]  ;;  %v620_v37 = vld [vmem:[#allocation2 + $0x758] sm:$0xff] }
 0x2d5   : > { %v1411_v23 = vpop.f32.mrf.mxu0  ;;  %v1860_v48 = vpop.f32.mrf.mxu1 }
 0x2d6   : > { %2391 = vst [vmem:[#allocation2 + $0x6a0] sm:$0xff] %v2135_v36  ;;  %2393 = vst [vmem:[#allocation2 + $0x6b0] sm:$0xff] %v2137_v53  ;;  %v2136_v18 = vadd.f32 %v1411_v23, %v598_v27  ;;  %v2138_v57 = vadd.f32 %v1860_v48, %v600_v6  ;;  %v621_v36 = vld [vmem:[#allocation2 + $0x760] sm:$0xff]  ;;  %v623_v53 = vld [vmem:[#allocation2 + $0x770] sm:$0xff] }
 0x2d7   : > { %v1415_v63 = vpop.f32.mrf.mxu0  ;;  %v1864_v11 = vpop.f32.mrf.mxu1 }
 0x2d8   : > { %2392 = vst [vmem:[#allocation2 + $0x6a8] sm:$0xff] %v2136_v18  ;;  %2394 = vst [vmem:[#allocation2 + $0x6b8] sm:$0xff] %v2138_v57  ;;  %v2139_v46 = vadd.f32 %v1415_v63, %v601_v60  ;;  %v2141_v0 = vadd.f32 %v1864_v11, %v603_v8  ;;  %v622_v18 = vld [vmem:[#allocation2 + $0x768] sm:$0xff]  ;;  %v624_v57 = vld [vmem:[#allocation2 + $0x778] sm:$0xff] }
 0x2d9   : > { %v1417_v30 = vpop.f32.mrf.mxu0  ;;  %v1866_v3 = vpop.f32.mrf.mxu1 }
 0x2da   : > { %2395 = vst [vmem:[#allocation2 + $0x6c0] sm:$0xff] %v2139_v46  ;;  %2397 = vst [vmem:[#allocation2 + $0x6d0] sm:$0xff] %v2141_v0  ;;  %v2140_v41 = vadd.f32 %v1417_v30, %v602_v59  ;;  %v2142_v49 = vadd.f32 %v1866_v3, %v604_v28  ;;  %v625_v46 = vld [vmem:[#allocation2 + $0x780] sm:$0xff]  ;;  %v627_v0 = vld [vmem:[#allocation2 + $0x790] sm:$0xff] }
 0x2db   : > { %v1421_v50 = vpop.f32.mrf.mxu0  ;;  %v1870_v32 = vpop.f32.mrf.mxu1 }
 0x2dc   : > { %2396 = vst [vmem:[#allocation2 + $0x6c8] sm:$0xff] %v2140_v41  ;;  %2398 = vst [vmem:[#allocation2 + $0x6d8] sm:$0xff] %v2142_v49  ;;  %v2143_v31 = vadd.f32 %v1421_v50, %v605_v12  ;;  %v2145_v56 = vadd.f32 %v1870_v32, %v607_v55  ;;  %v626_v41 = vld [vmem:[#allocation2 + $0x788] sm:$0xff]  ;;  %v628_v49 = vld [vmem:[#allocation2 + $0x798] sm:$0xff] }
 0x2dd   : > { %v1423_v22 = vpop.f32.mrf.mxu0  ;;  %v1872_v33 = vpop.f32.mrf.mxu1 }
 0x2de   : > { %2399 = vst [vmem:[#allocation2 + $0x6e0] sm:$0xff] %v2143_v31  ;;  %2401 = vst [vmem:[#allocation2 + $0x6f0] sm:$0xff] %v2145_v56  ;;  %v2144_v38 = vadd.f32 %v1423_v22, %v606_v4  ;;  %v2146_v17 = vadd.f32 %v1872_v33, %v608_v13  ;;  %v629_v31 = vld [vmem:[#allocation2 + $0x7a0] sm:$0xff]  ;;  %v631_v56 = vld [vmem:[#allocation2 + $0x7b0] sm:$0xff] }
 0x2df   : > { %v1427_v47 = vpop.f32.mrf.mxu0  ;;  %v1876_v21 = vpop.f32.mrf.mxu1 }
 0x2e0   : > { %2400 = vst [vmem:[#allocation2 + $0x6e8] sm:$0xff] %v2144_v38  ;;  %2402 = vst [vmem:[#allocation2 + $0x6f8] sm:$0xff] %v2146_v17  ;;  %v2147_v10 = vadd.f32 %v1427_v47, %v609_v16  ;;  %v2149_v54 = vadd.f32 %v1876_v21, %v611_v14  ;;  %v630_v38 = vld [vmem:[#allocation2 + $0x7a8] sm:$0xff]  ;;  %v632_v17 = vld [vmem:[#allocation2 + $0x7b8] sm:$0xff] }
 0x2e1   : > { %v1429_v1 = vpop.f32.mrf.mxu0  ;;  %v1878_v45 = vpop.f32.mrf.mxu1 }
 0x2e2   : > { %2403 = vst [vmem:[#allocation2 + $0x700] sm:$0xff] %v2147_v10  ;;  %2405 = vst [vmem:[#allocation2 + $0x710] sm:$0xff] %v2149_v54  ;;  %v2148_v15 = vadd.f32 %v1429_v1, %v610_v52  ;;  %v2150_v9 = vadd.f32 %v1878_v45, %v612_v39  ;;  %v633_v10 = vld [vmem:[#allocation2 + $0x7c0] sm:$0xff]  ;;  %v635_v54 = vld [vmem:[#allocation2 + $0x7d0] sm:$0xff] }
 0x2e3   : > { %v1433_v26 = vpop.f32.mrf.mxu0  ;;  %v1882_v43 = vpop.f32.mrf.mxu1 }
 0x2e4   : > { %2404 = vst [vmem:[#allocation2 + $0x708] sm:$0xff] %v2148_v15  ;;  %2406 = vst [vmem:[#allocation2 + $0x718] sm:$0xff] %v2150_v9  ;;  %v2151_v44 = vadd.f32 %v1433_v26, %v613_v35  ;;  %v2153_v42 = vadd.f32 %v1882_v43, %v615_v51  ;;  %v634_v15 = vld [vmem:[#allocation2 + $0x7c8] sm:$0xff]  ;;  %v636_v9 = vld [vmem:[#allocation2 + $0x7d8] sm:$0xff] }
 0x2e5   : > { %v1435_v7 = vpop.f32.mrf.mxu0  ;;  %v1884_v62 = vpop.f32.mrf.mxu1 }
 0x2e6   : > { %2407 = vst [vmem:[#allocation2 + $0x720] sm:$0xff] %v2151_v44  ;;  %2409 = vst [vmem:[#allocation2 + $0x730] sm:$0xff] %v2153_v42  ;;  %v2152_v25 = vadd.f32 %v1435_v7, %v614_v5  ;;  %v2154_v2 = vadd.f32 %v1884_v62, %v616_v34  ;;  %v637_v44 = vld [vmem:[#allocation2 + $0x7e0] sm:$0xff]  ;;  %v639_v42 = vld [vmem:[#allocation2 + $0x7f0] sm:$0xff] }
 0x2e7   : > { %v1439_v40 = vpop.f32.mrf.mxu0  ;;  %v1888_v61 = vpop.f32.mrf.mxu1 }
 0x2e8   : > { %2408 = vst [vmem:[#allocation2 + $0x728] sm:$0xff] %v2152_v25  ;;  %2410 = vst [vmem:[#allocation2 + $0x738] sm:$0xff] %v2154_v2  ;;  %v2155_v24 = vadd.f32 %v1439_v40, %v617_v58  ;;  %v2157_v29 = vadd.f32 %v1888_v61, %v619_v19  ;;  %v638_v25 = vld [vmem:[#allocation2 + $0x7e8] sm:$0xff]  ;;  %v640_v2 = vld [vmem:[#allocation2 + $0x7f8] sm:$0xff] }
 0x2e9   : > { %v1441_v27 = vpop.f32.mrf.mxu0  ;;  %v1890_v6 = vpop.f32.mrf.mxu1 }
 0x2ea   : > { %2411 = vst [vmem:[#allocation2 + $0x740] sm:$0xff] %v2155_v24  ;;  %2413 = vst [vmem:[#allocation2 + $0x750] sm:$0xff] %v2157_v29  ;;  %v2156_v23 = vadd.f32 %v1441_v27, %v618_v20  ;;  %v2158_v48 = vadd.f32 %v1890_v6, %v620_v37 }
 0x2eb   : > { %v1445_v60 = vpop.f32.mrf.mxu0  ;;  %v1894_v8 = vpop.f32.mrf.mxu1 }
 0x2ec   : > { %2412 = vst [vmem:[#allocation2 + $0x748] sm:$0xff] %v2156_v23  ;;  %2414 = vst [vmem:[#allocation2 + $0x758] sm:$0xff] %v2158_v48  ;;  %v2159_v63 = vadd.f32 %v1445_v60, %v621_v36  ;;  %v2161_v11 = vadd.f32 %v1894_v8, %v623_v53 }
 0x2ed   : > { %v1447_v59 = vpop.f32.mrf.mxu0  ;;  %v1896_v28 = vpop.f32.mrf.mxu1 }
 0x2ee   : > { %2415 = vst [vmem:[#allocation2 + $0x760] sm:$0xff] %v2159_v63  ;;  %2417 = vst [vmem:[#allocation2 + $0x770] sm:$0xff] %v2161_v11  ;;  %v2160_v30 = vadd.f32 %v1447_v59, %v622_v18  ;;  %v2162_v3 = vadd.f32 %v1896_v28, %v624_v57 }
 0x2ef   : > { %v1451_v12 = vpop.f32.mrf.mxu0  ;;  %v1900_v55 = vpop.f32.mrf.mxu1 }
 0x2f0   : > { %2416 = vst [vmem:[#allocation2 + $0x768] sm:$0xff] %v2160_v30  ;;  %2418 = vst [vmem:[#allocation2 + $0x778] sm:$0xff] %v2162_v3  ;;  %v2163_v50 = vadd.f32 %v1451_v12, %v625_v46  ;;  %v2165_v32 = vadd.f32 %v1900_v55, %v627_v0 }
 0x2f1   : > { %v1453_v4 = vpop.f32.mrf.mxu0  ;;  %v1902_v13 = vpop.f32.mrf.mxu1 }
 0x2f2   : > { %2419 = vst [vmem:[#allocation2 + $0x780] sm:$0xff] %v2163_v50  ;;  %2421 = vst [vmem:[#allocation2 + $0x790] sm:$0xff] %v2165_v32  ;;  %v2164_v22 = vadd.f32 %v1453_v4, %v626_v41  ;;  %v2166_v33 = vadd.f32 %v1902_v13, %v628_v49 }
 0x2f3   : > { %v1457_v16 = vpop.f32.mrf.mxu0  ;;  %v1906_v14 = vpop.f32.mrf.mxu1 }
 0x2f4   : > { %2420 = vst [vmem:[#allocation2 + $0x788] sm:$0xff] %v2164_v22  ;;  %2422 = vst [vmem:[#allocation2 + $0x798] sm:$0xff] %v2166_v33  ;;  %v2167_v47 = vadd.f32 %v1457_v16, %v629_v31  ;;  %v2169_v21 = vadd.f32 %v1906_v14, %v631_v56 }
 0x2f5   : > { %v1459_v52 = vpop.f32.mrf.mxu0  ;;  %v1908_v39 = vpop.f32.mrf.mxu1 }
 0x2f6   : > { %2423 = vst [vmem:[#allocation2 + $0x7a0] sm:$0xff] %v2167_v47  ;;  %2425 = vst [vmem:[#allocation2 + $0x7b0] sm:$0xff] %v2169_v21  ;;  %v2168_v1 = vadd.f32 %v1459_v52, %v630_v38  ;;  %v2170_v45 = vadd.f32 %v1908_v39, %v632_v17 }
 0x2f7   : > { %v1463_v35 = vpop.f32.mrf.mxu0  ;;  %v1912_v51 = vpop.f32.mrf.mxu1 }
 0x2f8   : > { %2424 = vst [vmem:[#allocation2 + $0x7a8] sm:$0xff] %v2168_v1  ;;  %2426 = vst [vmem:[#allocation2 + $0x7b8] sm:$0xff] %v2170_v45  ;;  %v2171_v26 = vadd.f32 %v1463_v35, %v633_v10  ;;  %v2173_v43 = vadd.f32 %v1912_v51, %v635_v54 }
 0x2f9   : > { %v1465_v5 = vpop.f32.mrf.mxu0  ;;  %v1914_v34 = vpop.f32.mrf.mxu1 }
 0x2fa   : > { %2427 = vst [vmem:[#allocation2 + $0x7c0] sm:$0xff] %v2171_v26  ;;  %2429 = vst [vmem:[#allocation2 + $0x7d0] sm:$0xff] %v2173_v43  ;;  %v2172_v7 = vadd.f32 %v1465_v5, %v634_v15  ;;  %v2174_v62 = vadd.f32 %v1914_v34, %v636_v9 }
 0x2fb   : > { %v1469_v58 = vpop.f32.mrf.mxu0  ;;  %v1918_v19 = vpop.f32.mrf.mxu1 }
 0x2fc   : > { %2428 = vst [vmem:[#allocation2 + $0x7c8] sm:$0xff] %v2172_v7  ;;  %2430 = vst [vmem:[#allocation2 + $0x7d8] sm:$0xff] %v2174_v62  ;;  %v2175_v40 = vadd.f32 %v1469_v58, %v637_v44  ;;  %v2177_v61 = vadd.f32 %v1918_v19, %v639_v42  ;;  %2438 = sbr.rel (%p2582_p8) target bundleno = 789 (0x315), region = 36 }
 0x2fd   : > { %v1471_v20 = vpop.f32.mrf.mxu0  ;;  %v1920_v37 = vpop.f32.mrf.mxu1 }
 0x2fe   : > { %2431 = vst [vmem:[#allocation2 + $0x7e0] sm:$0xff] %v2175_v40  ;;  %2433 = vst [vmem:[#allocation2 + $0x7f0] sm:$0xff] %v2177_v61  ;;  %v2176_v24 = vadd.f32 %v1471_v20, %v638_v25  ;;  %v2178_v29 = vadd.f32 %v1920_v37, %v640_v2 }
 0x300   : > { %2432 = vst [vmem:[#allocation2 + $0x7e8] sm:$0xff] %v2176_v24  ;;  %2434 = vst [vmem:[#allocation2 + $0x7f8] sm:$0xff] %v2178_v29 }
 0x301   : > { %v2439_v27 = vlaneseq  ;;  %v3243_v60 = vmov 0.0   ;;  %v3247_v8 = vmov 0.0   ;;  %v3251_v18 = vmov 0.0  }
 0x302   : > { %v3255_v57 = vmov 0.0  }
 0x303   : > { %v2440_v6 = vshrl.u32 %v2439_v27, 7  ;;  %v2442_v36 = vand.u32 127, %v2439_v27 }
 0x305   : > { %v2443_v53 = vadd.s32 128, %v2442_v36  ;;  %v2444_v23 = vadd.s32 256, %v2442_v36  ;;  %v2445_v48 = vadd.s32 384, %v2442_v36 }
 0x306 LB: >> { %s2583_s15 = sshll.u32 %s3261_s9, 3  ;;  %v3267_v55 = vmov 0.0   ;;  %s2451_s9 = sadd.s32 1, %s3261_s9   ;;  %s3261_s9 = sphi %s4391_s9, %s2451_s9   ;;  %v3257_v57 = vphi %v3255_v57, %v3256_v57   ;;  %v3253_v18 = vphi %v3251_v18, %v3252_v18   ;;  %v3249_v8 = vphi %v3247_v8, %v3248_v8   ;;  %v3245_v60 = vphi %v3243_v60, %v3244_v60  }
 0x307   : >> { %s2457_s20 = sshra.s32 %s2583_s15, 3  ;;  %v2470_v63 = vstv %s2583_s15  ;;  %p2448_p1 = scmp.ge.s32.totalorder %s2451_s9, 64  }
 0x308   : >> { %s2592_s21 = sshll.u32 %s2457_s20, 5  ;;  %v2471_v11 = vadd.s32 %v2470_v63, %v2440_v6 }
 0x309   : >> { %s2461_s22 = scalar_lea.vmem [#allocation2], %s2592_s21 }
 0x30a   : >> { %v2462_v59 = vld [vmem:[%s2461_s22] sm:$0xff]  ;;  %v2463_v28 = vld [vmem:[%s2461_s22 + $0x8] sm:$0xff]  ;;  %v2464_v46 = vld [vmem:[%s2461_s22 + $0x10] sm:$0xff]  ;;  %vm2472_vm0 = vcmp.eq.s32.totalorder %v2471_v11, %v2442_v36  ;;  %vm2473_vm1 = vcmp.eq.s32.totalorder %v2471_v11, %v2443_v53  ;;  %vm2474_vm2 = vcmp.eq.s32.totalorder %v2471_v11, %v2444_v23  ;;  %vm2475_vm3 = vcmp.eq.s32.totalorder %v2471_v11, %v2445_v48 }
 0x30b   : >> { %v2465_v0 = vld [vmem:[%s2461_s22 + $0x18] sm:$0xff]  ;;  %v2466_v30 = vmul.f32 0.0009765625, %v2462_v59  ;;  %v2467_v3 = vmul.f32 0.0009765625, %v2463_v28  ;;  %v2468_v12 = vmul.f32 0.0009765625, %v2464_v46  ;;  %v2476_v41 = vsel %vm2472_vm0, 1.0, %v3267_v55 }
 0x30c   : >> { %v2469_v49 = vmul.f32 0.0009765625, %v2465_v0  ;;  %v2477_v50 = vsel %vm2473_vm1, 1.0, %v3267_v55  ;;  %v2478_v32 = vsel %vm2474_vm2, 1.0, %v3267_v55  ;;  %v2479_v4 = vsel %vm2475_vm3, 1.0, %v3267_v55 }
 0x30d   : >> { %v2480_v13 = vsub.f32 %v2466_v30, %v2476_v41  ;;  %v2481_v31 = vsub.f32 %v2467_v3, %v2477_v50  ;;  %v2482_v56 = vsub.f32 %v2468_v12, %v2478_v32 }
 0x30e   : >> { %v2483_v22 = vsub.f32 %v2469_v49, %v2479_v4 }
 0x30f   : >> { %v2484_v33 = vmul.f32 %v2480_v13, %v2480_v13  ;;  %v2485_v16 = vmul.f32 %v2481_v31, %v2481_v31  ;;  %v2486_v14 = vmul.f32 %v2482_v56, %v2482_v56 }
 0x310   : >> { %v2487_v38 = vmul.f32 %v2483_v22, %v2483_v22  ;;  %2450 = sbr.rel (!%p2448_p1) target bundleno = 774 (0x306), region = 77 }
 0x311   : >> { %v2488_v17 = vadd.f32 %v3257_v57, %v2484_v33   ;;  %v2489_v47 = vadd.f32 %v3253_v18, %v2485_v16   ;;  %v2490_v21 = vadd.f32 %v3249_v8, %v2486_v14  }
 0x312   : >> { %v2491_v52 = vadd.f32 %v3245_v60, %v2487_v38  }
 0x313   : >> { %v3248_v8 = vmov %v2490_v21   ;;  %v3252_v18 = vmov %v2489_v47   ;;  %v3256_v57 = vmov %v2488_v17   ;;  %2492 = vst [vmem:[#allocation6] sm:$0xff] (%p2448_p1), %v2488_v17  ;;  %2493 = vst [vmem:[#allocation6 + $0x8] sm:$0xff] (%p2448_p1), %v2489_v47 }
 0x314   : >> { %v3244_v60 = vmov %v2491_v52   ;;  %2494 = vst [vmem:[#allocation6 + $0x10] sm:$0xff] (%p2448_p1), %v2490_v21  ;;  %2495 = vst [vmem:[#allocation6 + $0x18] sm:$0xff] (%p2448_p1), %v2491_v52 }
 0x315 PF: > { %p2604_p2 = scmp.eq.s32.totalorder %s3298_s10, 3  ;;  %s3268_s23 = smov [#allocation6]  }
 0x316   : > { %s2503_s24 = sshll.u32 %s3268_s23, 4  ;;  %s2504_s24 = int_to_ptr.vmem [resolvable:$true] %s2503_s24 }
 0x317   : > { %s3159_s25 = scalar_lea.vmem %s2504_s24, 512  ;;  %p3166_p6 = scmp.lt.s32.totalorder %s2504_s24, %s2504_s24 }
 0x318   : > { %p3160_p3 = scmp.ne.s32.totalorder %s2504_s24, %s3159_s25  ;;  %p3167_p10 = scmp.lt.s32.totalorder %s3159_s25, %s3159_s25 }
 0x31a   : > { %p3161_p4 = pnand %p3160_p3, %p2604_p2  ;;  %p3168_p12 = por %p3167_p10, %p3166_p6 }
 0x31c   : > { %p3162_p5 = pneg %p3161_p4 }
 0x31e   : > { %p3169_p11 = pnand %p3168_p12, %p3162_p5 }
 0x320   : > { %3172 = shalt.err (!%p3169_p11)
}
 0x321   : > { %2596 = dma.vmem_to_hbm [thread:$0]  (%p2604_p2), %s2504_s24, 512, %s4426_s1, [#allocation5]  }
 0x322   : > { %3224 = dma.done.wait (%p2604_p2), [#allocation5], 512  }
 0x323   : > { %3226 = vsyncadd (%p2604_p2), [#allocation5], 4294966784 }
 0x324 PF: > { %p12_p13 = scmp.ge.s32.totalorder %s3301_s11, 6   ;;  %s4509_s6 = smov %s3233_s7 }
 0x325   : > { %s4510_s7 = smov %s3237_s8  ;;  %s4511_s8 = smov %s3311_s14 }
 0x326   : > { %s4512_s9 = smov %s3301_s11  ;;  %14 = sbr.rel (!%p12_p13) target bundleno = 4 (0x4), region = 88 }
 0x32b   :  { %2516 = vsyncpa [#allocation4], 1 }
 0x32c   :  { %2518 = vsyncpa [#allocation4 + $0x1], 1 }
 0x32d   :  { %2519 = vsyncpa [#allocation5], 1 }
 0x32e   :  { %2521 = vsyncpa [#allocation5 + $0x1], 1 }

</bundles_post_ra>
